<compile_context>
chip_gen: v5e
topology: v5e:2x2
jax: 0.10.0
libtpu: 0.0.40
codegen_flags: <defaults>
</compile_context>

<pallas_src>
import functools

import jax
import jax.numpy as jnp
import numpy as np
from jax.experimental import pallas as pl
from jax.experimental.pallas import tpu as pltpu


def _vmem_limit_bytes():
    # Generation-aware VMEM request: ~3/4 of physical capacity, capped.
    # (v7x: 64 MiB/core -> 48 MiB; v5e/v6e: 128 MiB -> 96 MiB.)
    try:
        cap = pltpu.get_tpu_info().vmem_capacity_bytes
    except Exception:
        cap = 64 * 1024 * 1024
    return int(min(cap * 3 // 4, 96 * 1024 * 1024))


# --------------------------------------------------------------------------
# Fused kernel: one image (H*W rows) per grid step.
# --------------------------------------------------------------------------
def _bottleneck_kernel(x_ref, w1_ref, s1_ref, b1_ref,
                       w2_ref, s2_ref, b2_ref,
                       w3_ref, s3_ref, b3_ref,
                       o_ref, h_scr, *, H, W, dil):
    hw = H * W
    halo = dil * W                       # zero-halo rows above/below the image
    Pp = w1_ref.shape[1]                 # lane-padded `planes`

    x_f32 = x_ref[...]                   # (hw, Cin) f32: residual + MXU input

    # ---- conv1 (1x1) + BN1 + ReLU : bf16 operands, f32 accumulation --------
    t1 = jnp.dot(x_f32.astype(jnp.bfloat16), w1_ref[...],
                 preferred_element_type=jnp.float32)
    t1 = jnp.maximum(t1 * s1_ref[...] + b1_ref[...], 0.0)       # (hw, Pp) f32

    # ---- stage three horizontally shifted bf16 copies of t1 into the -------
    # ---- halo-padded scratch; vertical taps become aligned slices.   -------
    h_scr[pl.ds(0, halo), :] = jnp.zeros((halo, 3 * Pp), jnp.bfloat16)
    h_scr[pl.ds(halo + hw, halo), :] = jnp.zeros((halo, 3 * Pp), jnp.bfloat16)

    # Horizontal boundary masks, hoisted (computed once, reused by the rolls).
    w_idx = jax.lax.broadcasted_iota(jnp.int32, (hw, 1), 0) % W
    left = jnp.where(w_idx >= dil,                     # reads pixel (h, w-dil)
                     pltpu.roll(t1, shift=dil, axis=0), 0.0)
    right = jnp.where(w_idx < W - dil,                 # reads pixel (h, w+dil)
                      pltpu.roll(t1, shift=(hw - dil) % hw, axis=0), 0.0)

    rows = pl.ds(halo, hw)
    h_scr[rows, pl.ds(0, Pp)] = left.astype(jnp.bfloat16)        # kx = -dil
    h_scr[rows, pl.ds(Pp, Pp)] = t1.astype(jnp.bfloat16)         # kx =  0
    h_scr[rows, pl.ds(2 * Pp, Pp)] = right.astype(jnp.bfloat16)  # kx = +dil

    # ---- conv2 (3x3, padding=dil, dilation=dil) + BN2 + ReLU ---------------
    # One wide-K matmul per vertical offset (K = 3*Pp); accumulation stays in
    # registers / MXU results -- no per-tap VMEM read-modify-write.
    y2 = jnp.dot(h_scr[pl.ds(0, hw), :], w2_ref[0],              # ky = -dil
                 preferred_element_type=jnp.float32)
    y2 = y2 + jnp.dot(h_scr[pl.ds(halo, hw), :], w2_ref[1],      # ky =  0
                      preferred_element_type=jnp.float32)
    y2 = y2 + jnp.dot(h_scr[pl.ds(2 * halo, hw), :], w2_ref[2],  # ky = +dil
                      preferred_element_type=jnp.float32)
    t2 = jnp.maximum(y2 * s2_ref[...] + b2_ref[...], 0.0).astype(jnp.bfloat16)

    # ---- conv3 (1x1) + BN3 + f32 residual + ReLU ---------------------------
    y3 = jnp.dot(t2, w3_ref[...], preferred_element_type=jnp.float32)
    y3 = y3 * s3_ref[...] + b3_ref[...] + x_f32
    o_ref[...] = jnp.maximum(y3, 0.0).astype(o_ref.dtype)


# --------------------------------------------------------------------------
# Wrapper
# --------------------------------------------------------------------------
def bottleneck_forward(x_nchw, params, *, dilation=1):
    """Bottleneck forward (stride=1, downsample=None, eval-mode BN)."""
    N, cin, H, W = x_nchw.shape
    planes = params["w1"].shape[1]
    cout = planes * 4
    assert cin == cout, "downsample=None requires inplanes == planes*4"
    hw = H * W
    assert hw % 8 == 0, "H*W must be sublane aligned"
    assert (dilation * W) % 8 == 0, "dilation*W must be sublane aligned"
    assert 2 * dilation < W, "dilation too large for this image width"

    Pp = ((planes + 127) // 128) * 128   # lane-dense intermediate channels
    pp = Pp - planes
    halo = dilation * W

    # NCHW -> NHWC rows (f32).  This single HBM read per image feeds both the
    # bf16 MXU input of conv1 and the f32 residual add of conv3.
    rows = jnp.transpose(x_nchw, (0, 2, 3, 1)).reshape(N * hw, cin)
    rows = rows.astype(jnp.float32)

    # Zero-pad the `planes` dim to 128 lanes.  Padded channels stay exactly
    # zero: padded scale/bias are zero and the next conv's padded rows are 0.
    w1 = jnp.pad(params["w1"], ((0, 0), (0, pp))).astype(jnp.bfloat16)
    s1 = jnp.pad(params["s1"], ((0, 0), (0, pp)))
    b1 = jnp.pad(params["b1"], ((0, 0), (0, pp)))
    w2 = jnp.pad(params["w2_hwio"], ((0, 0), (0, 0), (0, pp), (0, pp)))
    w2 = w2.reshape(3, 3 * Pp, Pp).astype(jnp.bfloat16)   # rows = (kx, cin)
    s2 = jnp.pad(params["s2"], ((0, 0), (0, pp)))
    b2 = jnp.pad(params["b2"], ((0, 0), (0, pp)))
    w3 = jnp.pad(params["w3"], ((0, pp), (0, 0))).astype(jnp.bfloat16)
    s3, b3 = params["s3"], params["b3"]

    kernel = functools.partial(_bottleneck_kernel, H=H, W=W, dil=dilation)

    flops = 2 * N * hw * (cin * Pp + 9 * Pp * Pp + Pp * cout)
    bytes_accessed = (N * hw * cin * 4 + N * hw * cout * 4
                      + 2 * (cin * Pp + 9 * Pp * Pp + Pp * cout)
                      + 4 * (4 * Pp + 2 * cout))
    cost = pl.CostEstimate(flops=flops, transcendentals=0,
                           bytes_accessed=bytes_accessed)

    def resident(shape):                  # weights / BN params stay in VMEM
        return pl.BlockSpec(shape, lambda n, _s=len(shape): (0,) * _s)

    out = pl.pallas_call(
        kernel,
        out_shape=jax.ShapeDtypeStruct((N * hw, cout), jnp.float32),
        grid=(N,),
        in_specs=[
            pl.BlockSpec((hw, cin), lambda n: (n, 0)),
            resident((cin, Pp)), resident((1, Pp)), resident((1, Pp)),
            resident((3, 3 * Pp, Pp)), resident((1, Pp)), resident((1, Pp)),
            resident((Pp, cout)), resident((1, cout)), resident((1, cout)),
        ],
        out_specs=pl.BlockSpec((hw, cout), lambda n: (n, 0)),
        scratch_shapes=[pltpu.VMEM((hw + 2 * halo, 3 * Pp), jnp.bfloat16)],
        compiler_params=pltpu.CompilerParams(
            dimension_semantics=("parallel",),
            vmem_limit_bytes=_vmem_limit_bytes()),
        cost_estimate=cost,
    )(rows, w1, s1, b1, w2, s2, b2, w3, s3, b3)

    return jnp.transpose(out.reshape(N, H, W, cout), (0, 3, 1, 2))


# --------------------------------------------------------------------------
# Deterministic parameter construction & pure-JAX reference
# --------------------------------------------------------------------------
def make_params(key, inplanes, planes, eps=1e-5):
    ks = jax.random.split(key, 12)
    expansion = 4

    def bn(kg, kb, km, kv, c):
        gamma = 1.0 + 0.1 * jax.random.normal(kg, (c,), jnp.float32)
        beta = 0.1 * jax.random.normal(kb, (c,), jnp.float32)
        mean = 0.05 * jax.random.normal(km, (c,), jnp.float32)
        var = jax.random.uniform(kv, (c,), jnp.float32, 0.5, 1.5)
        scale = gamma / jnp.sqrt(var + eps)
        bias = beta - mean * scale
        return scale.reshape(1, c), bias.reshape(1, c)

    w1 = 0.1 * jax.random.normal(ks[0], (inplanes, planes), jnp.float32)
    w2 = 0.1 * jax.random.normal(ks[1], (3, 3, planes, planes), jnp.float32)
    w3 = 0.1 * jax.random.normal(ks[2], (planes, planes * expansion),
                                 jnp.float32)
    s1, b1 = bn(ks[3], ks[4], ks[5], ks[6], planes)
    s2, b2 = bn(ks[7], ks[8], ks[9], ks[10], planes)
    s3, b3 = bn(ks[11], ks[0], ks[1], ks[2], planes * expansion)

    return {"w1": w1, "s1": s1, "b1": b1,
            "w2_hwio": w2, "s2": s2, "b2": b2,
            "w3": w3, "s3": s3, "b3": b3}


def reference_forward(x_nchw, params, *, dilation=1):
    """Pure-JAX reference mirroring the kernel's precision policy:
    conv inputs/weights rounded to bf16, f32 conv math / BN / residual."""
    def q(a):
        return a.astype(jnp.bfloat16).astype(jnp.float32)

    x = jnp.transpose(x_nchw, (0, 2, 3, 1))            # NHWC, f32 residual
    dn = ("NHWC", "HWIO", "NHWC")
    cin = x.shape[-1]
    planes = params["w1"].shape[1]

    y = jax.lax.conv_general_dilated(
        q(x), q(params["w1"]).reshape(1, 1, cin, planes), (1, 1), "VALID",
        dimension_numbers=dn)
    y = jnp.maximum(y * params["s1"] + params["b1"], 0.0)

    pad = dilation
    y = jax.lax.conv_general_dilated(
        q(y), q(params["w2_hwio"]), (1, 1), [(pad, pad), (pad, pad)],
        rhs_dilation=(dilation, dilation), dimension_numbers=dn)
    y = jnp.maximum(y * params["s2"] + params["b2"], 0.0)

    y = jax.lax.conv_general_dilated(
        q(y), q(params["w3"]).reshape(1, 1, planes, cin), (1, 1), "VALID",
        dimension_numbers=dn)
    y = jnp.maximum(y * params["s3"] + params["b3"] + x, 0.0)
    return jnp.transpose(y, (0, 3, 1, 2))


# --------------------------------------------------------------------------
if __name__ == "__main__":
    key = jax.random.PRNGKey(0)
    kx, kp = jax.random.split(key)

    N, planes, H, W = 2, 8, 16, 16
    inplanes = planes * 4      # residual add shape-compatible (downsample=None)
    dilation = 1

    x = jax.random.normal(kx, (N, inplanes, H, W), jnp.float32)
    params = make_params(kp, inplanes, planes)

    fwd = jax.jit(functools.partial(bottleneck_forward, dilation=dilation))
    out = jax.block_until_ready(fwd(x, params))

    ref = jax.block_until_ready(
        reference_forward(x, params, dilation=dilation))

    np.testing.assert_allclose(np.asarray(out), np.asarray(ref),
                               rtol=2e-2, atol=2e-2)
    assert out.shape == (N, inplanes, H, W)
    print("KERNEL_OK")
</pallas_src>

<mosaic_0001>
module attributes {stable_mosaic.version = 11 : i64} {
  func.func @_bottleneck_kernel(%arg0: i32, %arg1: memref<256x32xf32, #tpu.memory_space<vmem>>, %arg2: memref<32x128xbf16, #tpu.memory_space<vmem>>, %arg3: memref<1x128xf32, #tpu.memory_space<vmem>>, %arg4: memref<1x128xf32, #tpu.memory_space<vmem>>, %arg5: memref<3x384x128xbf16, #tpu.memory_space<vmem>>, %arg6: memref<1x128xf32, #tpu.memory_space<vmem>>, %arg7: memref<1x128xf32, #tpu.memory_space<vmem>>, %arg8: memref<128x32xbf16, #tpu.memory_space<vmem>>, %arg9: memref<1x32xf32, #tpu.memory_space<vmem>>, %arg10: memref<1x32xf32, #tpu.memory_space<vmem>>, %arg11: memref<256x32xf32, #tpu.memory_space<vmem>>, %arg12: memref<288x384xbf16, #tpu.memory_space<vmem>>) attributes {dimension_semantics = [#tpu.dimension_semantics<parallel>], iteration_bounds = array<i64: 2>, scalar_prefetch = 0 : i64, scratch_operands = 1 : i64, tpu.core_type = #tpu.core_type<tc>, window_params = [{transform_indices = @transform_0, window_bounds = array<i64: 256, 32>}, {pipeline_mode = #tpu.pipeline_mode<synchronous>, transform_indices = @transform_1, window_bounds = array<i64: 32, 128>}, {pipeline_mode = #tpu.pipeline_mode<synchronous>, transform_indices = @transform_2, window_bounds = array<i64: 1, 128>}, {pipeline_mode = #tpu.pipeline_mode<synchronous>, transform_indices = @transform_3, window_bounds = array<i64: 1, 128>}, {pipeline_mode = #tpu.pipeline_mode<synchronous>, transform_indices = @transform_4, window_bounds = array<i64: 3, 384, 128>}, {pipeline_mode = #tpu.pipeline_mode<synchronous>, transform_indices = @transform_5, window_bounds = array<i64: 1, 128>}, {pipeline_mode = #tpu.pipeline_mode<synchronous>, transform_indices = @transform_6, window_bounds = array<i64: 1, 128>}, {pipeline_mode = #tpu.pipeline_mode<synchronous>, transform_indices = @transform_7, window_bounds = array<i64: 128, 32>}, {pipeline_mode = #tpu.pipeline_mode<synchronous>, transform_indices = @transform_8, window_bounds = array<i64: 1, 32>}, {pipeline_mode = #tpu.pipeline_mode<synchronous>, transform_indices = @transform_9, window_bounds = array<i64: 1, 32>}, {transform_indices = @transform_10, window_bounds = array<i64: 256, 32>}]} {
    %c0 = arith.constant 0 : index
    %c0_0 = arith.constant 0 : index
    %0 = vector.load %arg1[%c0, %c0_0] : memref<256x32xf32, #tpu.memory_space<vmem>>, vector<256x32xf32>
    %1 = arith.truncf %0 : vector<256x32xf32> to vector<256x32xbf16>
    %c0_1 = arith.constant 0 : index
    %c0_2 = arith.constant 0 : index
    %2 = vector.load %arg2[%c0_1, %c0_2] : memref<32x128xbf16, #tpu.memory_space<vmem>>, vector<32x128xbf16>
    %cst = arith.constant dense<0.000000e+00> : vector<256x128xf32>
    %3 = tpu.matmul %1, %2, %cst {dimension_numbers = #tpu.dot_dimension_numbers<[1], [0], [0], [1], [0, 0, 1, 1], [], []>} : vector<256x32xbf16>, vector<32x128xbf16>, vector<256x128xf32> -> vector<256x128xf32>
    %c0_3 = arith.constant 0 : index
    %c0_4 = arith.constant 0 : index
    %4 = vector.load %arg3[%c0_3, %c0_4] : memref<1x128xf32, #tpu.memory_space<vmem>>, vector<1x128xf32>
    %5 = vector.broadcast %4 : vector<1x128xf32> to vector<256x128xf32>
    %6 = arith.mulf %3, %5 : vector<256x128xf32>
    %c0_5 = arith.constant 0 : index
    %c0_6 = arith.constant 0 : index
    %7 = vector.load %arg4[%c0_5, %c0_6] : memref<1x128xf32, #tpu.memory_space<vmem>>, vector<1x128xf32>
    %8 = vector.broadcast %7 : vector<1x128xf32> to vector<256x128xf32>
    %9 = arith.addf %6, %8 : vector<256x128xf32>
    %cst_7 = arith.constant 0.000000e+00 : f32
    %10 = vector.broadcast %cst_7 : f32 to vector<256x128xf32>
    %11 = arith.maximumf %9, %10 : vector<256x128xf32>
    %cst_8 = arith.constant 0.000000e+00 : bf16
    %12 = vector.broadcast %cst_8 : bf16 to vector<16x384xbf16>
    %c0_9 = arith.constant 0 : index
    %c0_10 = arith.constant 0 : index
    %13 = vector.load %arg12[%c0_9, %c0_10] : memref<288x384xbf16, #tpu.memory_space<vmem>>, vector<16x384xbf16>
    tpu.vector_store %arg12[%c0_9, %c0_10], %12 {strides = array<i32>} : memref<288x384xbf16, #tpu.memory_space<vmem>>, vector<16x384xbf16>,
    %cst_11 = arith.constant 0.000000e+00 : bf16
    %14 = vector.broadcast %cst_11 : bf16 to vector<16x384xbf16>
    %c272 = arith.constant 272 : index
    %c0_12 = arith.constant 0 : index
    %15 = vector.load %arg12[%c272, %c0_12] : memref<288x384xbf16, #tpu.memory_space<vmem>>, vector<16x384xbf16>
    tpu.vector_store %arg12[%c272, %c0_12], %14 {strides = array<i32>} : memref<288x384xbf16, #tpu.memory_space<vmem>>, vector<16x384xbf16>,
    %16 = tpu.iota {dimensions = array<i32: 0>} : vector<256x1xi32>
    %c16_i32 = arith.constant 16 : i32
    %c0_i32 = arith.constant 0 : i32
    %17 = arith.cmpi eq, %c16_i32, %c0_i32 : i32
    %c1_i32 = arith.constant 1 : i32
    %18 = arith.select %17, %c1_i32, %c16_i32 : i32
    %19 = vector.broadcast %18 : i32 to vector<256x1xi32>
    %20 = arith.remsi %16, %19 : vector<256x1xi32>
    %c0_i32_13 = arith.constant 0 : i32
    %21 = vector.broadcast %c0_i32_13 : i32 to vector<256x1xi32>
    %22 = arith.cmpi ne, %20, %21 : vector<256x1xi32>
    %c0_i32_14 = arith.constant 0 : i32
    %23 = vector.broadcast %c0_i32_14 : i32 to vector<256x1xi32>
    %24 = arith.cmpi slt, %20, %23 : vector<256x1xi32>
    %c0_i32_15 = arith.constant 0 : i32
    %25 = arith.cmpi slt, %18, %c0_i32_15 : i32
    %26 = vector.broadcast %25 : i1 to vector<256x1xi1>
    %27 = vector.broadcast %26 : vector<256x1xi1> to vector<256x1xi1>
    %28 = arith.xori %24, %27 : vector<256x1xi1>
    %29 = arith.andi %28, %22 : vector<256x1xi1>
    %30 = vector.broadcast %18 : i32 to vector<256x1xi32>
    %31 = arith.addi %20, %30 : vector<256x1xi32>
    %32 = arith.select %29, %31, %20 : vector<256x1xi1>, vector<256x1xi32>
    %c1_i32_16 = arith.constant 1 : i32
    %33 = vector.broadcast %c1_i32_16 : i32 to vector<256x1xi32>
    %34 = arith.cmpi sge, %32, %33 : vector<256x1xi32>
    %c1_i32_17 = arith.constant 1 : i32
    %35 = tpu.dynamic_rotate %11 by %c1_i32_17 dim 0 : vector<256x128xf32>, i32 -> vector<256x128xf32>
    %cst_18 = arith.constant 0.000000e+00 : f32
    %36 = vector.shape_cast %34 : vector<256x1xi1> to vector<256x1xi1>
    %37 = vector.broadcast %36 : vector<256x1xi1> to vector<256x128xi1>
    %38 = vector.broadcast %cst_18 : f32 to vector<256x128xf32>
    %39 = arith.select %37, %35, %38 : vector<256x128xi1>, vector<256x128xf32>
    %c15_i32 = arith.constant 15 : i32
    %40 = vector.broadcast %c15_i32 : i32 to vector<256x1xi32>
    %41 = arith.cmpi slt, %32, %40 : vector<256x1xi32>
    %c255_i32 = arith.constant 255 : i32
    %42 = tpu.dynamic_rotate %11 by %c255_i32 dim 0 : vector<256x128xf32>, i32 -> vector<256x128xf32>
    %cst_19 = arith.constant 0.000000e+00 : f32
    %43 = vector.shape_cast %41 : vector<256x1xi1> to vector<256x1xi1>
    %44 = vector.broadcast %43 : vector<256x1xi1> to vector<256x128xi1>
    %45 = vector.broadcast %cst_19 : f32 to vector<256x128xf32>
    %46 = arith.select %44, %42, %45 : vector<256x128xi1>, vector<256x128xf32>
    %47 = arith.truncf %39 : vector<256x128xf32> to vector<256x128xbf16>
    %c16 = arith.constant 16 : index
    %c0_20 = arith.constant 0 : index
    %48 = vector.load %arg12[%c16, %c0_20] : memref<288x384xbf16, #tpu.memory_space<vmem>>, vector<256x128xbf16>
    tpu.vector_store %arg12[%c16, %c0_20], %47 {strides = array<i32>} : memref<288x384xbf16, #tpu.memory_space<vmem>>, vector<256x128xbf16>,
    %49 = arith.truncf %11 : vector<256x128xf32> to vector<256x128xbf16>
    %c16_21 = arith.constant 16 : index
    %c128 = arith.constant 128 : index
    %50 = vector.load %arg12[%c16_21, %c128] : memref<288x384xbf16, #tpu.memory_space<vmem>>, vector<256x128xbf16>
    tpu.vector_store %arg12[%c16_21, %c128], %49 {strides = array<i32>} : memref<288x384xbf16, #tpu.memory_space<vmem>>, vector<256x128xbf16>,
    %51 = arith.truncf %46 : vector<256x128xf32> to vector<256x128xbf16>
    %c16_22 = arith.constant 16 : index
    %c256 = arith.constant 256 : index
    %52 = vector.load %arg12[%c16_22, %c256] : memref<288x384xbf16, #tpu.memory_space<vmem>>, vector<256x128xbf16>
    tpu.vector_store %arg12[%c16_22, %c256], %51 {strides = array<i32>} : memref<288x384xbf16, #tpu.memory_space<vmem>>, vector<256x128xbf16>,
    %c0_23 = arith.constant 0 : index
    %c0_24 = arith.constant 0 : index
    %53 = vector.load %arg12[%c0_23, %c0_24] : memref<288x384xbf16, #tpu.memory_space<vmem>>, vector<256x384xbf16>
    %c0_25 = arith.constant 0 : index
    %c0_26 = arith.constant 0 : index
    %c0_27 = arith.constant 0 : index
    %54 = vector.load %arg5[%c0_25, %c0_26, %c0_27] : memref<3x384x128xbf16, #tpu.memory_space<vmem>>, vector<1x384x128xbf16>
    %55 = vector.shape_cast %54 : vector<1x384x128xbf16> to vector<384x128xbf16>
    %cst_28 = arith.constant dense<0.000000e+00> : vector<256x128xf32>
    %56 = tpu.matmul %53, %55, %cst_28 {dimension_numbers = #tpu.dot_dimension_numbers<[1], [0], [0], [1], [0, 0, 1, 1], [], []>} : vector<256x384xbf16>, vector<384x128xbf16>, vector<256x128xf32> -> vector<256x128xf32>
    %c16_29 = arith.constant 16 : index
    %c0_30 = arith.constant 0 : index
    %57 = vector.load %arg12[%c16_29, %c0_30] : memref<288x384xbf16, #tpu.memory_space<vmem>>, vector<256x384xbf16>
    %c1 = arith.constant 1 : index
    %c0_31 = arith.constant 0 : index
    %c0_32 = arith.constant 0 : index
    %58 = vector.load %arg5[%c1, %c0_31, %c0_32] : memref<3x384x128xbf16, #tpu.memory_space<vmem>>, vector<1x384x128xbf16>
    %59 = vector.shape_cast %58 : vector<1x384x128xbf16> to vector<384x128xbf16>
    %cst_33 = arith.constant dense<0.000000e+00> : vector<256x128xf32>
    %60 = tpu.matmul %57, %59, %cst_33 {dimension_numbers = #tpu.dot_dimension_numbers<[1], [0], [0], [1], [0, 0, 1, 1], [], []>} : vector<256x384xbf16>, vector<384x128xbf16>, vector<256x128xf32> -> vector<256x128xf32>
    %61 = arith.addf %56, %60 : vector<256x128xf32>
    %c32 = arith.constant 32 : index
    %c0_34 = arith.constant 0 : index
    %62 = vector.load %arg12[%c32, %c0_34] : memref<288x384xbf16, #tpu.memory_space<vmem>>, vector<256x384xbf16>
    %c2 = arith.constant 2 : index
    %c0_35 = arith.constant 0 : index
    %c0_36 = arith.constant 0 : index
    %63 = vector.load %arg5[%c2, %c0_35, %c0_36] : memref<3x384x128xbf16, #tpu.memory_space<vmem>>, vector<1x384x128xbf16>
    %64 = vector.shape_cast %63 : vector<1x384x128xbf16> to vector<384x128xbf16>
    %cst_37 = arith.constant dense<0.000000e+00> : vector<256x128xf32>
    %65 = tpu.matmul %62, %64, %cst_37 {dimension_numbers = #tpu.dot_dimension_numbers<[1], [0], [0], [1], [0, 0, 1, 1], [], []>} : vector<256x384xbf16>, vector<384x128xbf16>, vector<256x128xf32> -> vector<256x128xf32>
    %66 = arith.addf %61, %65 : vector<256x128xf32>
    %c0_38 = arith.constant 0 : index
    %c0_39 = arith.constant 0 : index
    %67 = vector.load %arg6[%c0_38, %c0_39] : memref<1x128xf32, #tpu.memory_space<vmem>>, vector<1x128xf32>
    %68 = vector.broadcast %67 : vector<1x128xf32> to vector<256x128xf32>
    %69 = arith.mulf %66, %68 : vector<256x128xf32>
    %c0_40 = arith.constant 0 : index
    %c0_41 = arith.constant 0 : index
    %70 = vector.load %arg7[%c0_40, %c0_41] : memref<1x128xf32, #tpu.memory_space<vmem>>, vector<1x128xf32>
    %71 = vector.broadcast %70 : vector<1x128xf32> to vector<256x128xf32>
    %72 = arith.addf %69, %71 : vector<256x128xf32>
    %cst_42 = arith.constant 0.000000e+00 : f32
    %73 = vector.broadcast %cst_42 : f32 to vector<256x128xf32>
    %74 = arith.maximumf %72, %73 : vector<256x128xf32>
    %75 = arith.truncf %74 : vector<256x128xf32> to vector<256x128xbf16>
    %c0_43 = arith.constant 0 : index
    %c0_44 = arith.constant 0 : index
    %76 = vector.load %arg8[%c0_43, %c0_44] : memref<128x32xbf16, #tpu.memory_space<vmem>>, vector<128x32xbf16>
    %cst_45 = arith.constant dense<0.000000e+00> : vector<256x32xf32>
    %77 = tpu.matmul %75, %76, %cst_45 {dimension_numbers = #tpu.dot_dimension_numbers<[1], [0], [0], [1], [0, 0, 1, 1], [], []>} : vector<256x128xbf16>, vector<128x32xbf16>, vector<256x32xf32> -> vector<256x32xf32>
    %c0_46 = arith.constant 0 : index
    %c0_47 = arith.constant 0 : index
    %78 = vector.load %arg9[%c0_46, %c0_47] : memref<1x32xf32, #tpu.memory_space<vmem>>, vector<1x32xf32>
    %79 = vector.broadcast %78 : vector<1x32xf32> to vector<256x32xf32>
    %80 = arith.mulf %77, %79 : vector<256x32xf32>
    %c0_48 = arith.constant 0 : index
    %c0_49 = arith.constant 0 : index
    %81 = vector.load %arg10[%c0_48, %c0_49] : memref<1x32xf32, #tpu.memory_space<vmem>>, vector<1x32xf32>
    %82 = vector.broadcast %81 : vector<1x32xf32> to vector<256x32xf32>
    %83 = arith.addf %80, %82 : vector<256x32xf32>
    %84 = arith.addf %83, %0 : vector<256x32xf32>
    %cst_50 = arith.constant 0.000000e+00 : f32
    %85 = vector.broadcast %cst_50 : f32 to vector<256x32xf32>
    %86 = arith.maximumf %84, %85 : vector<256x32xf32>
    %c0_51 = arith.constant 0 : index
    %c0_52 = arith.constant 0 : index
    %87 = vector.load %arg11[%c0_51, %c0_52] : memref<256x32xf32, #tpu.memory_space<vmem>>, vector<256x32xf32>
    tpu.vector_store %arg11[%c0_51, %c0_52], %86 {strides = array<i32>} : memref<256x32xf32, #tpu.memory_space<vmem>>, vector<256x32xf32>,
    return
  }
  func.func @transform_0(%arg0: i32) -> (i32, i32) {
    %c0_i32 = arith.constant 0 : i32
    %c0_i32_0 = arith.constant 0 : i32
    return %arg0, %c0_i32 : i32, i32
  }
  func.func @transform_1(%arg0: i32) -> (i32, i32) {
    %c0_i32 = arith.constant 0 : i32
    %c0_i32_0 = arith.constant 0 : i32
    %c0_i32_1 = arith.constant 0 : i32
    return %c0_i32, %c0_i32_0 : i32, i32
  }
  func.func @transform_2(%arg0: i32) -> (i32, i32) {
    %c0_i32 = arith.constant 0 : i32
    %c0_i32_0 = arith.constant 0 : i32
    %c0_i32_1 = arith.constant 0 : i32
    return %c0_i32, %c0_i32_0 : i32, i32
  }
  func.func @transform_3(%arg0: i32) -> (i32, i32) {
    %c0_i32 = arith.constant 0 : i32
    %c0_i32_0 = arith.constant 0 : i32
    %c0_i32_1 = arith.constant 0 : i32
    return %c0_i32, %c0_i32_0 : i32, i32
  }
  func.func @transform_4(%arg0: i32) -> (i32, i32, i32) {
    %c0_i32 = arith.constant 0 : i32
    %c0_i32_0 = arith.constant 0 : i32
    %c0_i32_1 = arith.constant 0 : i32
    %c0_i32_2 = arith.constant 0 : i32
    return %c0_i32, %c0_i32_0, %c0_i32_1 : i32, i32, i32
  }
  func.func @transform_5(%arg0: i32) -> (i32, i32) {
    %c0_i32 = arith.constant 0 : i32
    %c0_i32_0 = arith.constant 0 : i32
    %c0_i32_1 = arith.constant 0 : i32
    return %c0_i32, %c0_i32_0 : i32, i32
  }
  func.func @transform_6(%arg0: i32) -> (i32, i32) {
    %c0_i32 = arith.constant 0 : i32
    %c0_i32_0 = arith.constant 0 : i32
    %c0_i32_1 = arith.constant 0 : i32
    return %c0_i32, %c0_i32_0 : i32, i32
  }
  func.func @transform_7(%arg0: i32) -> (i32, i32) {
    %c0_i32 = arith.constant 0 : i32
    %c0_i32_0 = arith.constant 0 : i32
    %c0_i32_1 = arith.constant 0 : i32
    return %c0_i32, %c0_i32_0 : i32, i32
  }
  func.func @transform_8(%arg0: i32) -> (i32, i32) {
    %c0_i32 = arith.constant 0 : i32
    %c0_i32_0 = arith.constant 0 : i32
    %c0_i32_1 = arith.constant 0 : i32
    return %c0_i32, %c0_i32_0 : i32, i32
  }
  func.func @transform_9(%arg0: i32) -> (i32, i32) {
    %c0_i32 = arith.constant 0 : i32
    %c0_i32_0 = arith.constant 0 : i32
    %c0_i32_1 = arith.constant 0 : i32
    return %c0_i32, %c0_i32_0 : i32, i32
  }
  func.func @transform_10(%arg0: i32) -> (i32, i32) {
    %c0_i32 = arith.constant 0 : i32
    %c0_i32_0 = arith.constant 0 : i32
    return %arg0, %c0_i32 : i32, i32
  }
}

</mosaic_0001>

<bundles_post_ra>
// kernel: bottleneck_forward.1
= control target key start
LH: loop header
LB: loop body
LE: loop exit
PB: predicated region body
PF: predicated region fallthrough
CT: control target
= control target key end

     0   :  { %15 = vsyncpa [#allocation4], 0  ;;  %s7424_s0 = inlined_call_operand.vmem [shape: f32[512,32], index: 0, kind: input, shape index: {}]   ;;  %s7425_s1 = inlined_call_operand.vmem [shape: bf16[32,128], index: 1, kind: input, shape index: {}]   ;;  %s7426_s2 = inlined_call_operand.vmem [shape: f32[1,128], index: 2, kind: input, shape index: {}]   ;;  %s7427_s3 = inlined_call_operand.vmem [shape: f32[1,128], index: 3, kind: input, shape index: {}]   ;;  %s7428_s4 = inlined_call_operand.vmem [shape: bf16[3,384,128], index: 4, kind: input, shape index: {}]   ;;  %s7429_s5 = inlined_call_operand.vmem [shape: f32[1,128], index: 5, kind: input, shape index: {}]   ;;  %s7430_s6 = inlined_call_operand.vmem [shape: f32[1,128], index: 6, kind: input, shape index: {}]   ;;  %s7431_s7 = inlined_call_operand.vmem [shape: bf16[128,32], index: 7, kind: input, shape index: {}]   ;;  %s7432_s8 = inlined_call_operand.vmem [shape: f32[1,32], index: 8, kind: input, shape index: {}]   ;;  %s7433_s9 = inlined_call_operand.vmem [shape: f32[1,32], index: 9, kind: input, shape index: {}]   ;;  %s7434_s10 = inlined_call_operand.hbm [shape: f32[512,32], index: 10, kind: output, shape index: {}]  }
   0x1   :  { %17 = vsyncpa [#allocation4 + $0x1], 0  ;;  %s5515_s13 = smov 0   ;;  %s5517_s14 = smov 0  }
   0x2   :  { %s5519_s15 = smov 0   ;;  %s5521_s16 = smov 0  }
   0x3 LB: > { %s5536_s17 = sadd.s32 4294967295, %s5455_s16   ;;  %s4261_s18 = sadd.s32 4294967294, %s5455_s16   ;;  %s5455_s16 = sphi %s5521_s16, %s7612_s16   ;;  %s5451_s15 = sphi %s5519_s15, %s7611_s15   ;;  %s5447_s14 = sphi %s5517_s14, %s7610_s14   ;;  %s5443_s13 = sphi %s5515_s13, %s7609_s13  }
   0x4   : > { %s5540_s19 = sadd.s32 1, %s5455_s16   ;;  %s245_s20 = sadd.s32 1, %s5451_s15 }
   0x5   : > { %s242_s21 = ssub.s32 %s5455_s16, %s5540_s19  ;;  %p255_p0 = scmp.ne.s32.totalorder %s5451_s15, %s5447_s14 }
   0x6   : > { %p243_p1 = scmp.eq.s32.totalorder %s242_s21, 0  ;;  %p256_p2 = scmp.eq.s32.totalorder %s5536_s17, 1 }
   0x7   : > { %p261_p3 = scmp.ne.s32.totalorder %s5447_s14, %s5443_s13  ;;  %p262_p4 = scmp.eq.s32.totalorder %s4261_s18, 1 }
   0x8   : > { %s5551_s22 = scalar_select %p243_p1, %s5451_s15, %s245_s20  }
   0x9   : > { %p5553_p5 = por %p256_p2, %p255_p0  ;;  %p5557_p6 = por %p262_p4, %p261_p3 }
   0xa   : > { %p4264_p7 = scmp.ge.s32.totalorder %s5455_s16, 1  ;;  %p316_p8 = scmp.lt.s32.totalorder %s5455_s16, 3 }
   0xc   : > { %p317_p9 = pnand %p4264_p7, %p316_p8 }
   0xe   : > { %320 = sbr.rel (%p317_p9) target bundleno = 1306 (0x51a), region = 60 }
  0x13   : > { %v5110_v0 = vld [vmem:[%s7425_s1 + $0x8] sm:$0xff]  ;;  %s4266_s27 = sshll.u32 %s5536_s17, 5  ;;  %v5109_v1 = vld [vmem:[%s7425_s1] sm:$0xff]  ;;  %vm426_vm0 = vcmask 261120   ;;  %v5605_v29 = vld [vmem:[%s7428_s4 + $0x138] sm:$0xff]  ;;  %v676_v52 = vlaneseq  ;;  %s351_s29 = sand.u32 1, %s5447_s14  }
  0x14   : > { %p355_p10 = scmp.lt.s32.totalorder %s4266_s27, 63  ;;  %481 = vmatpush.bf16.msra.mxu0 %v5110_v0  ;;  %5291 = vmatpush.bf16.msra.mxu3 %v5110_v0  ;;  %v5613_v33 = vld [vmem:[%s7428_s4 + $0x130] sm:$0xff]  ;;  %v5620_v34 = vld [vmem:[%s7428_s4 + $0x128] sm:$0xff]  ;;  %v5626_v35 = vld [vmem:[%s7428_s4 + $0x120] sm:$0xff]  ;;  %s5290_s26 = sshll.u32 %s5536_s17, 8 }
  0x15   : > { %2325 = vmatpush.bf16.msra.mxu2 %v5605_v29  ;;  %v5632_v36 = vld [vmem:[%s7428_s4 + $0x118] sm:$0xff]  ;;  %v5640_v40 = vld [vmem:[%s7428_s4 + $0x110] sm:$0xff]  ;;  %v5647_v41 = vld [vmem:[%s7428_s4 + $0x108] sm:$0xff]  ;;  %v5677_v58 = vshrl.u32 %v676_v52, 7  ;;  %s4184_s17 = scalar_lea.sflag [#allocation4], %s351_s29  ;;  %s5413_s28 = scalar_lea.hbm %s7434_s10, 512 }
  0x16   : > { %s7614_s27 = smov (!%p355_p10, %s4266_s27), 63  ;;  %v5653_v42 = vld [vmem:[%s7428_s4 + $0x100] sm:$0xff]  ;;  %v5193_v59 = vld [vmem:[%s7428_s4 + $0xf8] sm:$0xff] }
  0x17   : > { %s4267_s30 = sshll.u32 %s7614_s27, 3  ;;  %v5661_v45 = vld [vmem:[%s7426_s2] ss:$0 sm:$0xff]  ;;  %2236 = vmatpush.bf16.msra.mxu1 %v5193_v59  ;;  %vm1157_vm1 = vcmp.lt.s32.totalorder %v5677_v58, 1  ;;  %vm1350_vm2 = vcmp.lt.s32.totalorder %v5677_v58, 7 }
  0x18   : > { %482 = vmatpush.bf16.msra.mxu0 %v5109_v1  ;;  %5292 = vmatpush.bf16.msra.mxu3 %v5109_v1  ;;  %s5573_s18 = scalar_lea.vmem %s7424_s0, %s4267_s30  ;;  %v5666_v46 = vld [vmem:[%s7427_s3] ss:$0 sm:$0xff]  ;;  %v678_v1 = vadd.s32 8, %v5677_v58  ;;  %s4265_s30 = sshll.u32 %s351_s29, 8 }
  0x19   : > { %v362_v2 = vld [vmem:[%s5573_s18] sm:$0xff]  ;;  %v363_v3 = vld [vmem:[%s5573_s18 + $0x8] sm:$0xff]  ;;  %v388_v4 = vld [vmem:[%s5573_s18 + $0xd0] sm:$0xff]  ;;  %2326 = vmatpush.bf16.msra.mxu2 %v5613_v33  ;;  %s7161_s11 = scalar_lea.vmem [#allocation3], %s4265_s30  ;;  %s4195_s30 = scalar_lea.hbm %s7434_s10, %s5290_s26 }
  0x1a   : > { %v394_v5 = vpack.c.bf16 %v363_v3, %v362_v2  ;;  %v389_v6 = vld [vmem:[%s5573_s18 + $0xd8] sm:$0xff]  ;;  %v364_v8 = vld [vmem:[%s5573_s18 + $0x10] sm:$0xff]  ;;  %v390_v10 = vld [vmem:[%s5573_s18 + $0xe0] sm:$0xff]  ;;  %v679_v3 = vadd.s32 16, %v5677_v58  ;;  %s4196_s12 = sshll.u32 %s7161_s11, 4  ;;  %s4198_s20 = sshll.u32 %s4195_s30, 4  ;;  %s4197_s12 = int_to_ptr.vmem [resolvable:$true] %s4196_s12  ;;  %s4199_s20 = int_to_ptr.hbm [resolvable:$true] %s4198_s20 }
  0x1b   : > { %v407_v7 = vpack.c.bf16 %v389_v6, %v388_v4  ;;  %v365_v9 = vld [vmem:[%s5573_s18 + $0x18] sm:$0xff]  ;;  %v391_v11 = vld [vmem:[%s5573_s18 + $0xe8] sm:$0xff]  ;;  %v366_v14 = vld [vmem:[%s5573_s18 + $0x20] sm:$0xff]  ;;  %s5407_s21 = sshra.s32 %s4199_s20, 4  ;;  %s5408_s21 = int_to_ptr.hbm [resolvable:$true] %s5407_s21 }
  0x1c   : > { %4276 = vmatmul.msk.bf16.vlgmr.msra.gmra.mxu0 %vm426_vm0, %v394_v5  ;;  %v395_v12 = vpack.c.bf16 %v365_v9, %v364_v8  ;;  %v408_v13 = vpack.c.bf16 %v391_v11, %v390_v10  ;;  %v367_v15 = vld [vmem:[%s5573_s18 + $0x28] sm:$0xff]  ;;  %v392_v16 = vld [vmem:[%s5573_s18 + $0xf0] sm:$0xff]  ;;  %v393_v17 = vld [vmem:[%s5573_s18 + $0xf8] sm:$0xff]  ;;  %5293 = vmatpush.bf16.msrb.mxu3 %v5193_v59  ;;  %s5409_s25 = scalar_lea.hbm %s5408_s21, 256  ;;  %p5414_p0 = scmp.lt.s32.totalorder %s5408_s21, %s7434_s10 }
  0x1d   : > { %4289 = vmatmul.msk.bf16.vlgmr.msra.gmra.mxu3 %vm426_vm0, %v407_v7  ;;  %v396_v18 = vpack.c.bf16 %v367_v15, %v366_v14  ;;  %v409_v19 = vpack.c.bf16 %v393_v17, %v392_v16  ;;  %v368_v20 = vld [vmem:[%s5573_s18 + $0x30] sm:$0xff]  ;;  %v369_v21 = vld [vmem:[%s5573_s18 + $0x38] sm:$0xff]  ;;  %v370_v23 = vld [vmem:[%s5573_s18 + $0x40] sm:$0xff]  ;;  %2327 = vmatpush.bf16.msra.mxu2 %v5620_v34  ;;  %v720_v15 = vand.u32 15, %v678_v1  ;;  %p5410_p11 = scmp.ne.s32.totalorder %s5408_s21, %s5409_s25  ;;  %p5415_p1 = scmp.lt.s32.totalorder %s5413_s28, %s5409_s25 }
  0x1e   : > { %v397_v22 = vpack.c.bf16 %v369_v21, %v368_v20  ;;  %v371_v24 = vld [vmem:[%s5573_s18 + $0x48] sm:$0xff]  ;;  %v372_v26 = vld [vmem:[%s5573_s18 + $0x50] sm:$0xff]  ;;  %v373_v27 = vld [vmem:[%s5573_s18 + $0x58] sm:$0xff] }
  0x1f   : > { %v398_v25 = vpack.c.bf16 %v371_v24, %v370_v23  ;;  %v399_v28 = vpack.c.bf16 %v373_v27, %v372_v26  ;;  %v374_v30 = vld [vmem:[%s5573_s18 + $0x60] sm:$0xff]  ;;  %v375_v31 = vld [vmem:[%s5573_s18 + $0x68] sm:$0xff]  ;;  %v376_v37 = vld [vmem:[%s5573_s18 + $0x70] sm:$0xff]  ;;  %v704_v23 = vadd.s32 216, %v5677_v58  ;;  %v705_v26 = vadd.s32 224, %v5677_v58  ;;  %p5411_p12 = pnand %p5410_p11, %p5553_p5  ;;  %p5416_p2 = por %p5415_p1, %p5414_p0 }
  0x20   : > { %v400_v32 = vpack.c.bf16 %v375_v31, %v374_v30  ;;  %v377_v38 = vld [vmem:[%s5573_s18 + $0x78] sm:$0xff]  ;;  %v378_v43 = vld [vmem:[%s5573_s18 + $0x80] sm:$0xff]  ;;  %v379_v44 = vld [vmem:[%s5573_s18 + $0x88] sm:$0xff]  ;;  %vm5733_vm4 = vcmp.lt.s32.totalorder %v720_v15, 15 }
  0x21   : > { %2328 = vmatpush.bf16.msra.mxu2 %v5626_v35  ;;  %v401_v39 = vpack.c.bf16 %v377_v38, %v376_v37  ;;  %v402_v47 = vpack.c.bf16 %v379_v44, %v378_v43  ;;  %v380_v62 = vld [vmem:[%s5573_s18 + $0x90] sm:$0xff]  ;;  %v381_v63 = vld [vmem:[%s5573_s18 + $0x98] sm:$0xff]  ;;  %v5191_v24 = vld [vmem:[%s7428_s4 + $0xe8] sm:$0xff]  ;;  %v902_v44 = vand.u32 15, %v704_v23  ;;  %p5412_p13 = pneg %p5411_p12 }
  0x22   : > { %v403_v6 = vpack.c.bf16 %v381_v63, %v380_v62  ;;  %v5192_v7 = vld [vmem:[%s7428_s4 + $0xf0] sm:$0xff] }
  0x23   : > { %2237 = vmatpush.bf16.msra.mxu1 %v5192_v7  ;;  %5294 = vmatpush.bf16.msrb.mxu3 %v5192_v7  ;;  %vm5801_vm6 = vcmp.lt.s32.totalorder %v902_v44, 15  ;;  %p5417_p3 = pnand %p5416_p2, %p5412_p13 }
  0x25   : > { %2329 = vmatpush.bf16.msra.mxu2 %v5632_v36 }
  0x27   : > { %2238 = vmatpush.bf16.msra.mxu1 %v5191_v24  ;;  %5295 = vmatpush.bf16.msrb.mxu3 %v5191_v24 }
  0x29   : > { %2330 = vmatpush.bf16.msra.mxu2 %v5640_v40 }
  0x2c   : > { %4277 = vmatmul.msk.bf16.gmra.mxu0 %vm426_vm0, %v395_v12 }
  0x2d   : > { %4290 = vmatmul.msk.bf16.gmra.mxu3 %vm426_vm0, %v408_v13  ;;  %2331 = vmatpush.bf16.msra.mxu2 %v5647_v41 }
  0x31   : > { %2332 = vmatpush.bf16.msra.mxu2 %v5653_v42 }
  0x3c   : > { %4278 = vmatmul.msk.bf16.gmra.mxu0 %vm426_vm0, %v396_v18 }
  0x3d   : > { %4291 = vmatmul.msk.bf16.gmra.mxu3 %vm426_vm0, %v409_v19  ;;  %v727_v19 = vand.u32 15, %v679_v3  ;;  %v5776_v3 = vld [vmem:[%s5573_s18 + $0xa0] sm:$0xff] }
  0x3f   : > { %vm5729_vm3 = vcmp.ge.s32.totalorder %v727_v19, 1  ;;  %v5165_v19 = vld [vmem:[%s7428_s4 + $0x30] sm:$0xff] }
  0x4c   : > { %4279 = vmatmul.msk.bf16.gmra.mxu0 %vm426_vm0, %v397_v22 }
  0x5c   : > { %4280 = vmatmul.msk.bf16.gmra.mxu0 %vm426_vm0, %v398_v25 }
  0x6c   : > { %4281 = vmatmul.msk.bf16.gmra.mxu0 %vm426_vm0, %v399_v28 }
  0x7c   : > { %4282 = vmatmul.msk.bf16.gmra.mxu0 %vm426_vm0, %v400_v32  ;;  %v5188_v32 = vld [vmem:[%s7428_s4 + $0xd0] sm:$0xff] }
  0x8c   : > { %4283 = vmatmul.msk.bf16.gmra.mxu0 %vm426_vm0, %v401_v39 }
  0x99   : > { %v484_v48 = vpop.f32.mrf.mxu0 }
  0x9a   : > { %v568_v49 = vmul.f32 %v5661_v45, %v484_v48 }
  0x9c   : > { %v604_v50 = vadd.f32 %v5666_v46, %v568_v49  ;;  %4284 = vmatmul.msk.bf16.gmra.mxu0 %vm426_vm0, %v402_v47  ;;  %v5190_v47 = vld [vmem:[%s7428_s4 + $0xe0] sm:$0xff] }
  0x9d   : > { %2239 = vmatpush.bf16.msra.mxu1 %v5190_v47  ;;  %5296 = vmatpush.bf16.msrb.mxu3 %v5190_v47  ;;  %v706_v47 = vadd.s32 232, %v5677_v58 }
  0x9e   : > { %v5671_v51 = vmax.f32 %v604_v50, 0.0 }
  0xa0   : > { %v1543_v53 = vpack.c.bf16 %v5671_v51, %v5671_v51  ;;  %v549_v54 = vpop.f32.mrf.mxu3  ;;  %v1125_v4 = vrot.slane %v5671_v51, 7  ;;  %v1318_v8 = vrot.slane %v5671_v51, 1 }
  0xa1   : > { %v594_v55 = vmul.f32 %v5661_v45, %v549_v54  ;;  %v486_v56 = vpop.f32.mrf.mxu0 }
  0xa2   : > { %1575 = vst [vmem:[#allocation2 + $0x1c] sm:$0xf] %v1543_v53  ;;  %v569_v57 = vmul.f32 %v5661_v45, %v486_v56  ;;  %v909_v53 = vand.u32 15, %v705_v26 }
  0xa3   : > { %v630_v60 = vadd.f32 %v5666_v46, %v594_v55 }
  0xa4   : > { %v605_v61 = vadd.f32 %v5666_v46, %v569_v57  ;;  %vm5797_vm5 = vcmp.ge.s32.totalorder %v909_v53, 1 }
  0xa5   : > { %v5686_v0 = vmax.f32 %v630_v60, 0.0  ;;  %v5762_v60 = vadd.s32 24, %v5677_v58 }
  0xa6   : > { %v5689_v2 = vmax.f32 %v605_v61, 0.0  ;;  %v5166_v61 = vld [vmem:[%s7428_s4 + $0x38] sm:$0xff] }
  0xa7   : > { %v1569_v5 = vpack.c.bf16 %v5686_v0, %v5686_v0  ;;  %v1151_v27 = vrot.slane %v5686_v0, 7  ;;  %v1344_v28 = vrot.slane %v5686_v0, 1  ;;  %2663 = vmatpush.bf16.msrb.mxu0 %v5166_v61 }
  0xa8   : > { %v1126_v9 = vrot.slane %v5689_v2, 7  ;;  %v1319_v10 = vrot.slane %v5689_v2, 1  ;;  %v1544_v11 = vpack.c.bf16 %v5689_v2, %v5689_v2  ;;  %v551_v12 = vpop.f32.mrf.mxu3 }
  0xa9   : > { %1601 = vst [vmem:[#allocation2 + $0x154] sm:$0xf] %v1569_v5  ;;  %v595_v13 = vmul.f32 %v5661_v45, %v551_v12  ;;  %v489_v14 = vpop.f32.mrf.mxu0  ;;  %v5114_v12 = vld [vmem:[#allocation2 + $0x1c] sm:$0xf] }
  0xaa   : > { %v1188_v16 = vsel %vm1157_vm1, %v1125_v4, %v1126_v9  ;;  %v1381_v17 = vsel %vm1350_vm2, %v1318_v8, %v1319_v10  ;;  %1576 = vst [vmem:[#allocation2 + $0x28] sm:$0xf] %v1544_v11  ;;  %v570_v18 = vmul.f32 %v5661_v45, %v489_v14 }
  0xab   : > { %v1480_v20 = vpack.c.bf16 %v1188_v16, %v1188_v16  ;;  %v1607_v21 = vpack.c.bf16 %v1381_v17, %v1381_v17  ;;  %v631_v22 = vadd.f32 %v5666_v46, %v595_v13  ;;  %v681_v16 = vadd.s32 32, %v5677_v58  ;;  %2664 = vmatpush.bf16.msrb.mxu0 %v5165_v19 }
  0xac   : > { %v606_v25 = vadd.f32 %v5666_v46, %v570_v18  ;;  %4285 = vmatmul.msk.bf16.gmra.mxu0 %vm426_vm0, %v403_v6 }
  0xad   : > { %1512 = vst [vmem:[#allocation2 + $0x24] sm:$0xf] %v1480_v20  ;;  %v5725_v30 = vmax.f32 %v631_v22, 0.0  ;;  %v741_v44 = vand.u32 15, %v681_v16 }
  0xae   : > { %1639 = vst [vmem:[#allocation2 + $0x20] sm:$0xf] %v1607_v21  ;;  %v5727_v31 = vmax.f32 %v606_v25, 0.0 }
  0xaf   : > { %v1152_v38 = vrot.slane %v5725_v30, 7  ;;  %v1345_v39 = vrot.slane %v5725_v30, 1  ;;  %v1570_v43 = vpack.c.bf16 %v5725_v30, %v5725_v30  ;;  %vm5869_vm7 = vcmp.ge.s32.totalorder %v741_v44, 1 }
  0xb0   : > { %v1127_v48 = vrot.slane %v5727_v31, 7  ;;  %v1320_v49 = vrot.slane %v5727_v31, 1  ;;  %v1545_v50 = vpack.c.bf16 %v5727_v31, %v5727_v31  ;;  %v554_v52 = vpop.f32.mrf.mxu3 }
  0xb1   : > { %v1162_v54 = vsel %vm1157_vm1, %v1151_v27, %v1152_v38  ;;  %v1355_v55 = vsel %vm1350_vm2, %v1344_v28, %v1345_v39  ;;  %1602 = vst [vmem:[#allocation2 + $0x160] sm:$0xf] %v1570_v43  ;;  %v596_v56 = vmul.f32 %v5661_v45, %v554_v52  ;;  %v491_v57 = vpop.f32.mrf.mxu0  ;;  %v4344_v59 = vld [vmem:[#allocation2 + $0x24] sm:$0xf0]  ;;  %v734_v43 = vand.u32 15, %v5762_v60 }
  0xb2   : > { %v1506_v62 = vpack.c.bf16 %v1162_v54, %v1162_v54  ;;  %v1633_v63 = vpack.c.bf16 %v1355_v55, %v1355_v55  ;;  %v1187_v1 = vsel %vm1157_vm1, %v1126_v9, %v1127_v48  ;;  %v1380_v2 = vsel %vm1350_vm2, %v1319_v10, %v1320_v49  ;;  %1577 = vst [vmem:[#allocation2 + $0x34] sm:$0xf] %v1545_v50  ;;  %v383_v9 = vld [vmem:[%s5573_s18 + $0xa8] sm:$0xff]  ;;  %v5189_v10 = vld [vmem:[%s7428_s4 + $0xd8] sm:$0xff] }
  0xb3   : > { %v1256_v5 = vsel %vm5729_vm3, %v1187_v1, 0.0  ;;  %v1448_v6 = vsel %vm5733_vm4, %v1380_v2, 0.0  ;;  %v632_v7 = vadd.f32 %v5666_v46, %v596_v56  ;;  %v571_v11 = vmul.f32 %v5661_v45, %v491_v57  ;;  %2240 = vmatpush.bf16.msra.mxu1 %v5189_v10  ;;  %5297 = vmatpush.bf16.msrb.mxu3 %v5189_v10  ;;  %v5187_v1 = vld [vmem:[%s7428_s4 + $0xc8] sm:$0xff]  ;;  %v5186_v10 = vld [vmem:[%s7428_s4 + $0xc0] sm:$0xff] }
  0xb4   : > { %1538 = vst [vmem:[#allocation2 + $0x15c] sm:$0xf] %v1506_v62  ;;  %v1481_v13 = vpack.c.bf16 %v1256_v5, %v1256_v5  ;;  %v1608_v14 = vpack.c.bf16 %v1448_v6, %v1448_v6  ;;  %v5788_v15 = vor.u32 %v5114_v12, %v4344_v59  ;;  %v404_v22 = vpack.c.bf16 %v383_v9, %v5776_v3 }
  0xb5   : > { %1665 = vst [vmem:[#allocation2 + $0x158] sm:$0xf] %v1633_v63  ;;  %v5791_v17 = vmax.f32 %v632_v7, 0.0  ;;  %v607_v18 = vadd.f32 %v5666_v46, %v571_v11  ;;  %v5819_v50 = vadd.s32 240, %v5677_v58  ;;  %v5163_v7 = vld [vmem:[%s7428_s4 + $0x20] sm:$0xff]  ;;  %vm5873_vm8 = vcmp.lt.s32.totalorder %v734_v43, 15 }
  0xb6   : > { %1513 = vst [vmem:[#allocation2 + $0x30] sm:$0xf] %v1481_v13  ;;  %2333 = vmatmul.bf16.vlgmr.msra.gmra.mxu2 %v5788_v15  ;;  %v683_v11 = vadd.s32 48, %v5677_v58 }
  0xb7   : > { %1640 = vst [vmem:[#allocation2 + $0x2c] sm:$0xf] %v1608_v14  ;;  %v1153_v23 = vrot.slane %v5791_v17, 7  ;;  %v1346_v24 = vrot.slane %v5791_v17, 1  ;;  %v1571_v25 = vpack.c.bf16 %v5791_v17, %v5791_v17  ;;  %v5811_v26 = vmax.f32 %v607_v18, 0.0  ;;  %2241 = vmatpush.bf16.msra.mxu1 %v5188_v32  ;;  %5298 = vmatpush.bf16.msrb.mxu3 %v5188_v32 }
  0xb8   : > { %v556_v37 = vpop.f32.mrf.mxu3  ;;  %v923_v9 = vand.u32 15, %v5819_v50  ;;  %v5896_v32 = vadd.s32 40, %v5677_v58  ;;  %v5909_v50 = vld [vmem:[%s5573_s18 + $0xb0] sm:$0xff] }
  0xb9   : > { %v1161_v52 = vsel %vm1157_vm1, %v1152_v38, %v1153_v23  ;;  %v1354_v53 = vsel %vm1350_vm2, %v1345_v39, %v1346_v24  ;;  %1603 = vst [vmem:[#allocation2 + $0x16c] sm:$0xf] %v1571_v25  ;;  %v1128_v54 = vrot.slane %v5811_v26, 7  ;;  %v1321_v55 = vrot.slane %v5811_v26, 1  ;;  %v494_v56 = vpop.f32.mrf.mxu0  ;;  %v5164_v39 = vld [vmem:[%s7428_s4 + $0x28] sm:$0xff] }
  0xba   : > { %v1282_v57 = vsel %vm5797_vm5, %v1161_v52, 0.0  ;;  %v1474_v38 = vsel %vm5801_vm6, %v1354_v53, 0.0  ;;  %v1546_v59 = vpack.c.bf16 %v5811_v26, %v5811_v26  ;;  %v597_v30 = vmul.f32 %v5661_v45, %v556_v37  ;;  %2665 = vmatpush.bf16.msrb.mxu0 %v5164_v39  ;;  %v5912_v52 = vld [vmem:[%s5573_s18 + $0xb8] sm:$0xff] }
  0xbb   : > { %v1507_v60 = vpack.c.bf16 %v1282_v57, %v1282_v57  ;;  %v1634_v61 = vpack.c.bf16 %v1474_v38, %v1474_v38  ;;  %v1186_v62 = vsel %vm1157_vm1, %v1127_v48, %v1128_v54  ;;  %v1379_v63 = vsel %vm1350_vm2, %v1320_v49, %v1321_v55  ;;  %2242 = vmatpush.bf16.msra.mxu1 %v5187_v1  ;;  %v5117_v57 = vld [vmem:[#allocation2 + $0x34] sm:$0xf] }
  0xbc   : > { %v1482_v2 = vpack.c.bf16 %v1186_v62, %v1186_v62  ;;  %1578 = vst [vmem:[#allocation2 + $0x40] sm:$0xf] %v1546_v59  ;;  %v1609_v3 = vpack.c.bf16 %v1379_v63, %v1379_v63  ;;  %v633_v5 = vadd.f32 %v5666_v46, %v597_v30  ;;  %v572_v6 = vmul.f32 %v5661_v45, %v494_v56 }
  0xbd   : > { %1539 = vst [vmem:[#allocation2 + $0x168] sm:$0xf] %v1507_v60  ;;  %4286 = vmatmul.msk.bf16.gmra.mxu0 %vm426_vm0, %v404_v22  ;;  %v916_v48 = vand.u32 15, %v706_v47  ;;  %5299 = vmatpush.bf16.msrb.mxu3 %v5187_v1  ;;  %v5893_v25 = vadd.s32 248, %v5677_v58  ;;  %v405_v26 = vpack.c.bf16 %v5912_v52, %v5909_v50  ;;  %vm5940_vm10 = vcmp.ge.s32.totalorder %v923_v9, 1 }
  0xbe   : > { %1666 = vst [vmem:[#allocation2 + $0x164] sm:$0xf] %v1634_v61  ;;  %v5863_v31 = vmax.f32 %v633_v5, 0.0  ;;  %v608_v49 = vadd.f32 %v5666_v46, %v572_v6  ;;  %2666 = vmatpush.bf16.msrb.mxu0 %v5163_v7  ;;  %v713_v6 = vand.u32 15, %v5677_v58  ;;  %v748_v12 = vand.u32 15, %v5896_v32 }
  0xbf   : > { %1514 = vst [vmem:[#allocation2 + $0x3c] sm:$0xf] %v1482_v2  ;;  %vm5888_vm9 = vcmp.lt.s32.totalorder %v916_v48, 15  ;;  %2243 = vmatpush.bf16.msra.mxu1 %v5186_v10  ;;  %v5161_v48 = vld [vmem:[%s7428_s4 + $0x10] sm:$0xff]  ;;  %v930_v7 = vand.u32 15, %v5893_v25  ;;  %v755_v52 = vand.u32 15, %v683_v11 }
  0xc0   : > { %1641 = vst [vmem:[#allocation2 + $0x38] sm:$0xf] %v1609_v3  ;;  %v1154_v13 = vrot.slane %v5863_v31, 7  ;;  %v1347_v14 = vrot.slane %v5863_v31, 1  ;;  %v1572_v16 = vpack.c.bf16 %v5863_v31, %v5863_v31  ;;  %v5885_v18 = vmax.f32 %v608_v49, 0.0  ;;  %v559_v19 = vpop.f32.mrf.mxu3 }
  0xc1   : > { %v598_v20 = vmul.f32 %v5661_v45, %v559_v19  ;;  %v496_v22 = vpop.f32.mrf.mxu0  ;;  %5300 = vmatpush.bf16.msrb.mxu3 %v5186_v10  ;;  %vm5985_vm11 = vcmp.ge.s32.totalorder %v713_v6, 1  ;;  %vm5990_vm12 = vcmp.lt.s32.totalorder %v930_v7, 15  ;;  %vm5997_vm13 = vcmp.ge.s32.totalorder %v755_v52, 1 }
  0xc2   : > { %v1160_v37 = vsel %vm1157_vm1, %v1153_v23, %v1154_v13  ;;  %v1353_v43 = vsel %vm1350_vm2, %v1346_v24, %v1347_v14  ;;  %1604 = vst [vmem:[#allocation2 + $0x178] sm:$0xf] %v1572_v16  ;;  %v1129_v44 = vrot.slane %v5885_v18, 7  ;;  %v1322_v47 = vrot.slane %v5885_v18, 1  ;;  %v5162_v24 = vld [vmem:[%s7428_s4 + $0x18] sm:$0xff] }
  0xc3   : > { %v1508_v53 = vpack.c.bf16 %v1160_v37, %v1160_v37  ;;  %v1635_v56 = vpack.c.bf16 %v1353_v43, %v1353_v43  ;;  %v1547_v23 = vpack.c.bf16 %v5885_v18, %v5885_v18  ;;  %v634_v17 = vadd.f32 %v5666_v46, %v598_v20  ;;  %v4356_v38 = vld [vmem:[#allocation2 + $0x3c] sm:$0xf0]  ;;  %2667 = vmatpush.bf16.msrb.mxu0 %v5162_v24  ;;  %v5160_v37 = vld [vmem:[%s7428_s4 + $0x8] sm:$0xff] }
  0xc4   : > { %v1185_v59 = vsel %vm1157_vm1, %v1128_v54, %v1129_v44  ;;  %v1378_v30 = vsel %vm1350_vm2, %v1321_v55, %v1322_v47  ;;  %v573_v39 = vmul.f32 %v5661_v45, %v496_v22  ;;  %v5929_v60 = vor.u32 %v5117_v57, %v4356_v38 }
  0xc5   : > { %5301 = vmatpush.bf16.msra.mxu3 %v5605_v29  ;;  %1540 = vst [vmem:[#allocation2 + $0x174] sm:$0xf] %v1508_v53  ;;  %v1258_v61 = vsel %vm5869_vm7, %v1185_v59, 0.0  ;;  %v1450_v62 = vsel %vm5873_vm8, %v1378_v30, 0.0  ;;  %v5936_v63 = vmax.f32 %v634_v17, 0.0  ;;  %v5457_v53 = vmov 0  }
  0xc6   : > { %1667 = vst [vmem:[#allocation2 + $0x170] sm:$0xf] %v1635_v56  ;;  %v1483_v54 = vpack.c.bf16 %v1258_v61, %v1258_v61  ;;  %v1610_v55 = vpack.c.bf16 %v1450_v62, %v1450_v62  ;;  %v609_v29 = vadd.f32 %v5666_v46, %v573_v39  ;;  %2338 = vmatmul.bf16.gmra.mxu2 %v5929_v60  ;;  %v5159_v59 = vld [vmem:[%s7428_s4] sm:$0xff]  ;;  %vm6001_vm14 = vcmp.lt.s32.totalorder %v748_v12, 15 }
  0xc7   : > { %1579 = vst [vmem:[#allocation2 + $0x4c] sm:$0xf] %v1547_v23  ;;  %v1155_v2 = vrot.slane %v5936_v63, 7  ;;  %v1348_v3 = vrot.slane %v5936_v63, 1  ;;  %v1573_v5 = vpack.c.bf16 %v5936_v63, %v5936_v63  ;;  %2668 = vmatpush.bf16.msrb.mxu0 %v5161_v48 }
  0xc8   : > { %1515 = vst [vmem:[#allocation2 + $0x48] sm:$0xf] %v1483_v54  ;;  %v5954_v31 = vmax.f32 %v609_v29, 0.0  ;;  %v561_v49 = vpop.f32.mrf.mxu3 }
  0xc9   : > { %5302 = vmatpush.bf16.msra.mxu3 %v5613_v33  ;;  %1642 = vst [vmem:[#allocation2 + $0x44] sm:$0xf] %v1610_v55  ;;  %v1159_v9 = vsel %vm1157_vm1, %v1154_v13, %v1155_v2  ;;  %v1352_v10 = vsel %vm1350_vm2, %v1347_v14, %v1348_v3  ;;  %v599_v16 = vmul.f32 %v5661_v45, %v561_v49  ;;  %v499_v18 = vpop.f32.mrf.mxu0  ;;  %v386_v49 = vld [vmem:[%s5573_s18 + $0xc0] sm:$0xff] }
  0xca   : > { %v1284_v19 = vsel %vm5940_vm10, %v1159_v9, 0.0  ;;  %v1476_v20 = vsel %vm5888_vm9, %v1352_v10, 0.0  ;;  %1605 = vst [vmem:[#allocation2 + $0x184] sm:$0xf] %v1573_v5  ;;  %v1130_v22 = vrot.slane %v5954_v31, 7  ;;  %v1323_v33 = vrot.slane %v5954_v31, 1 }
  0xcb   : > { %v1509_v25 = vpack.c.bf16 %v1284_v19, %v1284_v19  ;;  %v1636_v32 = vpack.c.bf16 %v1476_v20, %v1476_v20  ;;  %v1548_v13 = vpack.c.bf16 %v5954_v31, %v5954_v31  ;;  %v635_v14 = vadd.f32 %v5666_v46, %v599_v16  ;;  %668 = vst [vmem:[#allocation2] sm:$0xff] %v5457_v53 }
  0xcc   : > { %v1184_v21 = vsel %vm1157_vm1, %v1129_v44, %v1130_v22  ;;  %v1377_v43 = vsel %vm1350_vm2, %v1322_v47, %v1323_v33  ;;  %v574_v50 = vmul.f32 %v5661_v45, %v499_v18  ;;  %2669 = vmatpush.bf16.msrb.mxu0 %v5160_v37  ;;  %670 = vst [vmem:[#allocation2 + $0xc] sm:$0xff] %v5457_v53  ;;  %v684_v9 = vadd.s32 56, %v5677_v58 }
  0xcd   : > { %5303 = vmatpush.bf16.msra.mxu3 %v5620_v34  ;;  %1541 = vst [vmem:[#allocation2 + $0x180] sm:$0xf] %v1509_v25  ;;  %v1484_v56 = vpack.c.bf16 %v1184_v21, %v1184_v21  ;;  %v1611_v23 = vpack.c.bf16 %v1377_v43, %v1377_v43  ;;  %v667_v17 = vmax.f32 %v635_v14, 0.0  ;;  %4287 = vmatmul.msk.bf16.gmra.mxu0 %vm426_vm0, %v405_v26 }
  0xce   : > { %1668 = vst [vmem:[#allocation2 + $0x17c] sm:$0xf] %v1636_v32  ;;  %v610_v47 = vadd.f32 %v5666_v46, %v574_v50  ;;  %v5120_v18 = vld [vmem:[#allocation2 + $0x4c] sm:$0xf]  ;;  %v762_v43 = vand.u32 15, %v684_v9 }
  0xcf   : > { %1516 = vst [vmem:[#allocation2 + $0x54] sm:$0xf] %v1484_v56  ;;  %v1156_v57 = vrot.slane %v667_v17, 7  ;;  %v1349_v34 = vrot.slane %v667_v17, 1  ;;  %v1574_v24 = vpack.c.bf16 %v667_v17, %v667_v17  ;;  %v5115_v50 = vld [vmem:[#allocation2 + $0x20] sm:$0xf0] }
  0xd0   : > { %1580 = vst [vmem:[#allocation2 + $0x58] sm:$0xf] %v1548_v13  ;;  %v642_v30 = vmax.f32 %v610_v47, 0.0  ;;  %2670 = vmatpush.bf16.msrb.mxu0 %v5159_v59  ;;  %vm1293_vm15 = vcmp.lt.s32.totalorder %v762_v43, 15 }
  0xd1   : > { %5304 = vmatpush.bf16.msra.mxu3 %v5626_v35  ;;  %1643 = vst [vmem:[#allocation2 + $0x50] sm:$0xf] %v1611_v23  ;;  %v1158_v62 = vsel %vm1157_vm1, %v1155_v2, %v1156_v57  ;;  %v1189_v63 = vsel %vm1157_vm1, %v1156_v57, %v1125_v4  ;;  %v1351_v26 = vsel %vm1350_vm2, %v1348_v3, %v1349_v34  ;;  %v501_v55 = vpop.f32.mrf.mxu0 }
  0xd2   : > { %v1382_v54 = vsel %vm1350_vm2, %v1349_v34, %v1318_v8  ;;  %v1254_v35 = vsel %vm5985_vm11, %v1189_v63, 0.0  ;;  %v1510_v29 = vpack.c.bf16 %v1158_v62, %v1158_v62  ;;  %1606 = vst [vmem:[#allocation2 + $0x190] sm:$0xf] %v1574_v24  ;;  %v1637_v2 = vpack.c.bf16 %v1351_v26, %v1351_v26 }
  0xd3   : > { %v1478_v1 = vsel %vm5990_vm12, %v1382_v54, 0.0  ;;  %v1479_v4 = vpack.c.bf16 %v1254_v35, %v1254_v35  ;;  %v1131_v6 = vrot.slane %v642_v30, 7  ;;  %v1324_v3 = vrot.slane %v642_v30, 1  ;;  %669 = vst [vmem:[#allocation2 + $0x8] sm:$0xf] %v5457_v53 }
  0xd4   : > { %v1638_v5 = vpack.c.bf16 %v1478_v1, %v1478_v1  ;;  %1542 = vst [vmem:[#allocation2 + $0x18c] sm:$0xf] %v1510_v29  ;;  %v1549_v51 = vpack.c.bf16 %v642_v30, %v642_v30  ;;  %v575_v8 = vmul.f32 %v5661_v45, %v501_v55  ;;  %v4630_v1 = vld [vmem:[#allocation2] sm:$0xf] }
  0xd5   : > { %5305 = vmatpush.bf16.msra.mxu3 %v5632_v36  ;;  %1511 = vst [vmem:[#allocation2 + $0x18] sm:$0xf] %v1479_v4  ;;  %v1183_v48 = vsel %vm1157_vm1, %v1130_v22, %v1131_v6  ;;  %v1376_v31 = vsel %vm1350_vm2, %v1323_v33, %v1324_v3  ;;  %v387_v36 = vld [vmem:[%s5573_s18 + $0xc8] sm:$0xff]  ;;  %v685_v33 = vadd.s32 64, %v5677_v58 }
  0xd6   : > { %1669 = vst [vmem:[#allocation2 + $0x188] sm:$0xf] %v1637_v2  ;;  %v1260_v7 = vsel %vm5997_vm13, %v1183_v48, 0.0  ;;  %v1452_v11 = vsel %vm6001_vm14, %v1376_v31, 0.0  ;;  %v611_v12 = vadd.f32 %v5666_v46, %v575_v8  ;;  %v406_v32 = vpack.c.bf16 %v387_v36, %v386_v49  ;;  %v5112_v4 = vld [vmem:[#allocation2 + $0x8] sm:$0xf0] }
  0xd7   : > { %1670 = vst [vmem:[#allocation2 + $0x194] sm:$0xf] %v1638_v5  ;;  %v1485_v10 = vpack.c.bf16 %v1260_v7, %v1260_v7  ;;  %v1612_v16 = vpack.c.bf16 %v1452_v11, %v1452_v11  ;;  %v4368_v19 = vld [vmem:[#allocation2 + $0x54] sm:$0xf0]  ;;  %v769_v23 = vand.u32 15, %v685_v33  ;;  %v687_v5 = vadd.s32 80, %v5677_v58 }
  0xd8   : > { %1581 = vst [vmem:[#allocation2 + $0x64] sm:$0xf] %v1549_v51  ;;  %v643_v20 = vmax.f32 %v611_v12, 0.0  ;;  %v6037_v22 = vor.u32 %v5120_v18, %v4368_v19  ;;  %v686_v8 = vadd.s32 72, %v5677_v58  ;;  %v4631_v31 = vor.u32 %v5112_v4, %v4630_v1  ;;  %v5118_v11 = vld [vmem:[#allocation2 + $0x38] sm:$0xf0] }
  0xd9   : > { %5306 = vmatpush.bf16.msra.mxu3 %v5640_v40  ;;  %1517 = vst [vmem:[#allocation2 + $0x60] sm:$0xf] %v1485_v10  ;;  %v504_v25 = vpop.f32.mrf.mxu0  ;;  %vm1101_vm3 = vcmp.ge.s32.totalorder %v769_v23, 1  ;;  %v783_v36 = vand.u32 15, %v687_v5  ;;  %v4354_v18 = vld [vmem:[#allocation2 + $0x30] sm:$0xf] }
  0xda   : > { %1644 = vst [vmem:[#allocation2 + $0x5c] sm:$0xf] %v1612_v16  ;;  %v1132_v13 = vrot.slane %v643_v20, 7  ;;  %v1325_v14 = vrot.slane %v643_v20, 1  ;;  %v1550_v37 = vpack.c.bf16 %v643_v20, %v643_v20  ;;  %2343 = vmatmul.bf16.gmra.mxu2 %v6037_v22  ;;  %v576_v21 = vmul.f32 %v5661_v45, %v504_v25  ;;  %v4366_v1 = vld [vmem:[#allocation2 + $0x48] sm:$0xf] }
  0xdb   : > { %671 = vst [vmem:[#allocation2 + $0x14] sm:$0xf] %v5457_v53  ;;  %v776_v16 = vand.u32 15, %v686_v8  ;;  %v6077_v19 = vor.u32 %v5118_v11, %v4354_v18  ;;  %vm1103_vm4 = vcmp.ge.s32.totalorder %v783_v36, 1 }
  0xdc   : > { %v1182_v52 = vsel %vm1157_vm1, %v1131_v6, %v1132_v13  ;;  %v1375_v40 = vsel %vm1350_vm2, %v1324_v3, %v1325_v14  ;;  %1582 = vst [vmem:[#allocation2 + $0x70] sm:$0xf] %v1550_v37  ;;  %v612_v56 = vadd.f32 %v5666_v46, %v576_v21  ;;  %v4342_v17 = vld [vmem:[#allocation2 + $0x18] sm:$0xf] }
  0xdd   : > { %5307 = vmatpush.bf16.msra.mxu3 %v5647_v41  ;;  %v1486_v44 = vpack.c.bf16 %v1182_v52, %v1182_v52  ;;  %v1613_v47 = vpack.c.bf16 %v1375_v40, %v1375_v40  ;;  %4288 = vmatmul.msk.bf16.gmra.mxu0 %vm426_vm0, %v406_v32  ;;  %v6051_v57 = vor.u32 %v5115_v50, %v4342_v17  ;;  %vm1295_vm5 = vcmp.lt.s32.totalorder %v776_v16, 15 }
  0xde   : > { %v644_v38 = vmax.f32 %v612_v56, 0.0  ;;  %672 = vst [vmem:[#allocation2 + $0x198] sm:$0xff] %v5457_v53  ;;  %v691_v16 = vadd.s32 112, %v5677_v58 }
  0xdf   : > { %1518 = vst [vmem:[#allocation2 + $0x6c] sm:$0xf] %v1486_v44  ;;  %2244 = vmatmul.bf16.vlgmr.msra.gmra.mxu1 %v6051_v57  ;;  %v5123_v35 = vld [vmem:[#allocation2 + $0x64] sm:$0xf] }
  0xe0   : > { %1645 = vst [vmem:[#allocation2 + $0x68] sm:$0xf] %v1613_v47  ;;  %v1133_v34 = vrot.slane %v644_v38, 7  ;;  %v1326_v24 = vrot.slane %v644_v38, 1  ;;  %v1551_v41 = vpack.c.bf16 %v644_v38, %v644_v38  ;;  %v689_v38 = vadd.s32 96, %v5677_v58 }
  0xe1   : > { %5308 = vmatpush.bf16.msra.mxu3 %v5653_v42  ;;  %v506_v59 = vpop.f32.mrf.mxu0  ;;  %673 = vst [vmem:[#allocation2 + $0x1a0] sm:$0xf] %v5457_v53 }
  0xe2   : > { %v1181_v30 = vsel %vm1157_vm1, %v1132_v13, %v1133_v34  ;;  %v1374_v39 = vsel %vm1350_vm2, %v1325_v14, %v1326_v24  ;;  %1583 = vst [vmem:[#allocation2 + $0x7c] sm:$0xf] %v1551_v41  ;;  %v577_v61 = vmul.f32 %v5661_v45, %v506_v59  ;;  %v688_v59 = vadd.s32 88, %v5677_v58 }
  0xe3   : > { %v1262_v62 = vsel %vm1101_vm3, %v1181_v30, 0.0  ;;  %v1454_v63 = vsel %vm1293_vm15, %v1374_v39, 0.0  ;;  %v4380_v26 = vld [vmem:[#allocation2 + $0x6c] sm:$0xf0]  ;;  %674 = vst [vmem:[#allocation2 + $0x1a4] sm:$0xff] %v5457_v53 }
  0xe4   : > { %v1487_v54 = vpack.c.bf16 %v1262_v62, %v1262_v62  ;;  %v1614_v55 = vpack.c.bf16 %v1454_v63, %v1454_v63  ;;  %v613_v42 = vadd.f32 %v5666_v46, %v577_v61  ;;  %675 = vst [vmem:[#allocation2 + $0x1ac] sm:$0xf] %v5457_v53  ;;  %v6066_v2 = vor.u32 %v5123_v35, %v4380_v26  ;;  %v5121_v63 = vld [vmem:[#allocation2 + $0x50] sm:$0xf0] }
  0xe5   : > { %v790_v35 = vand.u32 15, %v688_v59 }
  0xe6   : > { %1519 = vst [vmem:[#allocation2 + $0x78] sm:$0xf] %v1487_v54  ;;  %v645_v29 = vmax.f32 %v613_v42, 0.0 }
  0xe7   : > { %1646 = vst [vmem:[#allocation2 + $0x74] sm:$0xf] %v1614_v55  ;;  %v797_v55 = vand.u32 15, %v689_v38  ;;  %vm1297_vm7 = vcmp.lt.s32.totalorder %v790_v35, 15 }
  0xe8   : > { %v1134_v6 = vrot.slane %v645_v29, 7  ;;  %v1327_v3 = vrot.slane %v645_v29, 1  ;;  %v1552_v51 = vpack.c.bf16 %v645_v29, %v645_v29  ;;  %v6098_v29 = vor.u32 %v5121_v63, %v4366_v1 }
  0xe9   : > { %v509_v48 = vpop.f32.mrf.mxu0  ;;  %v5126_v17 = vld [vmem:[#allocation2 + $0x7c] sm:$0xf]  ;;  %vm1105_vm6 = vcmp.ge.s32.totalorder %v797_v55, 1  ;;  %v693_v1 = vadd.s32 128, %v5677_v58 }
  0xea   : > { %v1180_v53 = vsel %vm1157_vm1, %v1133_v34, %v1134_v6  ;;  %v1373_v49 = vsel %vm1350_vm2, %v1326_v24, %v1327_v3  ;;  %1584 = vst [vmem:[#allocation2 + $0x88] sm:$0xf] %v1552_v51  ;;  %2348 = vmatmul.bf16.gmra.mxu2 %v6066_v2  ;;  %v578_v7 = vmul.f32 %v5661_v45, %v509_v48 }
  0xeb   : > { %v1488_v12 = vpack.c.bf16 %v1180_v53, %v1180_v53  ;;  %v1615_v9 = vpack.c.bf16 %v1373_v49, %v1373_v49 }
  0xec   : > { %v614_v10 = vadd.f32 %v5666_v46, %v578_v7 }
  0xed   : > { %1520 = vst [vmem:[#allocation2 + $0x84] sm:$0xf] %v1488_v12  ;;  %2671 = vmatmul.bf16.vlgmr.msrb.gmra.mxu0 %v4631_v31 }
  0xee   : > { %1647 = vst [vmem:[#allocation2 + $0x80] sm:$0xf] %v1615_v9  ;;  %v646_v20 = vmax.f32 %v614_v10, 0.0 }
  0xef   : > { %2249 = vmatmul.bf16.gmra.mxu1 %v6077_v19 }
  0xf0   : > { %v1135_v33 = vrot.slane %v646_v20, 7  ;;  %v1328_v25 = vrot.slane %v646_v20, 1  ;;  %v1553_v32 = vpack.c.bf16 %v646_v20, %v646_v20 }
  0xf1   : > { %v511_v13 = vpop.f32.mrf.mxu0  ;;  %v4392_v52 = vld [vmem:[#allocation2 + $0x84] sm:$0xf0] }
  0xf2   : > { %v1179_v14 = vsel %vm1157_vm1, %v1134_v6, %v1135_v33  ;;  %v1372_v37 = vsel %vm1350_vm2, %v1327_v3, %v1328_v25  ;;  %1585 = vst [vmem:[#allocation2 + $0x94] sm:$0xf] %v1553_v32  ;;  %v579_v21 = vmul.f32 %v5661_v45, %v511_v13  ;;  %v6086_v47 = vor.u32 %v5126_v17, %v4392_v52 }
  0xf3   : > { %v1264_v43 = vsel %vm1103_vm4, %v1179_v14, 0.0  ;;  %v1456_v50 = vsel %vm1295_vm5, %v1372_v37, 0.0  ;;  %v811_v52 = vand.u32 15, %v691_v16 }
  0xf4   : > { %v1489_v40 = vpack.c.bf16 %v1264_v43, %v1264_v43  ;;  %v1616_v56 = vpack.c.bf16 %v1456_v50, %v1456_v50  ;;  %v615_v23 = vadd.f32 %v5666_v46, %v579_v21  ;;  %v5124_v21 = vld [vmem:[#allocation2 + $0x68] sm:$0xf0] }
  0xf5   : > { %vm1107_vm8 = vcmp.ge.s32.totalorder %v811_v52, 1 }
  0xf6   : > { %1521 = vst [vmem:[#allocation2 + $0x90] sm:$0xf] %v1489_v40  ;;  %v647_v44 = vmax.f32 %v615_v23, 0.0  ;;  %v4378_v23 = vld [vmem:[#allocation2 + $0x60] sm:$0xf] }
  0xf7   : > { %1648 = vst [vmem:[#allocation2 + $0x8c] sm:$0xf] %v1616_v56  ;;  %v6119_v17 = vor.u32 %v5124_v21, %v4378_v23 }
  0xf8   : > { %v1136_v34 = vrot.slane %v647_v44, 7  ;;  %v1329_v24 = vrot.slane %v647_v44, 1  ;;  %v1554_v41 = vpack.c.bf16 %v647_v44, %v647_v44 }
  0xf9   : > { %v514_v30 = vpop.f32.mrf.mxu0  ;;  %v5129_v9 = vld [vmem:[#allocation2 + $0x94] sm:$0xf] }
  0xfa   : > { %v1178_v39 = vsel %vm1157_vm1, %v1135_v33, %v1136_v34  ;;  %v1371_v61 = vsel %vm1350_vm2, %v1328_v25, %v1329_v24  ;;  %1586 = vst [vmem:[#allocation2 + $0xa0] sm:$0xf] %v1554_v41  ;;  %2353 = vmatmul.bf16.gmra.mxu2 %v6086_v47  ;;  %v580_v62 = vmul.f32 %v5661_v45, %v514_v30  ;;  %v690_v25 = vadd.s32 104, %v5677_v58 }
  0xfb   : > { %v1490_v26 = vpack.c.bf16 %v1178_v39, %v1178_v39  ;;  %v1617_v54 = vpack.c.bf16 %v1371_v61, %v1371_v61 }
  0xfc   : > { %v616_v42 = vadd.f32 %v5666_v46, %v580_v62  ;;  %v804_v56 = vand.u32 15, %v690_v25 }
  0xfd   : > { %1522 = vst [vmem:[#allocation2 + $0x9c] sm:$0xf] %v1490_v26  ;;  %2676 = vmatmul.bf16.gmra.mxu0 %v6051_v57 }
  0xfe   : > { %1649 = vst [vmem:[#allocation2 + $0x98] sm:$0xf] %v1617_v54  ;;  %v648_v4 = vmax.f32 %v616_v42, 0.0  ;;  %vm1299_vm9 = vcmp.lt.s32.totalorder %v804_v56, 15 }
  0xff   : > { %2254 = vmatmul.bf16.gmra.mxu1 %v6098_v29 }
 0x100   : > { %v1137_v5 = vrot.slane %v648_v4, 7  ;;  %v1330_v6 = vrot.slane %v648_v4, 1  ;;  %v1555_v3 = vpack.c.bf16 %v648_v4, %v648_v4 }
 0x101   : > { %v516_v51 = vpop.f32.mrf.mxu0  ;;  %v4404_v49 = vld [vmem:[#allocation2 + $0x9c] sm:$0xf0] }
 0x102   : > { %v1177_v8 = vsel %vm1157_vm1, %v1136_v34, %v1137_v5  ;;  %v1370_v48 = vsel %vm1350_vm2, %v1329_v24, %v1330_v6  ;;  %1587 = vst [vmem:[#allocation2 + $0xac] sm:$0xf] %v1555_v3  ;;  %v581_v57 = vmul.f32 %v5661_v45, %v516_v51  ;;  %v6107_v10 = vor.u32 %v5129_v9, %v4404_v49  ;;  %v4390_v9 = vld [vmem:[#allocation2 + $0x78] sm:$0xf] }
 0x103   : > { %v1266_v31 = vsel %vm1105_vm6, %v1177_v8, 0.0  ;;  %v1458_v53 = vsel %vm1297_vm7, %v1370_v48, 0.0  ;;  %v692_v3 = vadd.s32 120, %v5677_v58  ;;  %v825_v49 = vand.u32 15, %v693_v1  ;;  %v4402_v1 = vld [vmem:[#allocation2 + $0x90] sm:$0xf] }
 0x104   : > { %v1491_v7 = vpack.c.bf16 %v1266_v31, %v1266_v31  ;;  %v1618_v11 = vpack.c.bf16 %v1458_v53, %v1458_v53  ;;  %v617_v12 = vadd.f32 %v5666_v46, %v581_v57  ;;  %v5127_v57 = vld [vmem:[#allocation2 + $0x80] sm:$0xf0] }
 0x105   : > { %vm1109_vm10 = vcmp.ge.s32.totalorder %v825_v49, 1 }
 0x106   : > { %1523 = vst [vmem:[#allocation2 + $0xa8] sm:$0xf] %v1491_v7  ;;  %v649_v36 = vmax.f32 %v617_v12, 0.0  ;;  %v6141_v7 = vld [vmem:[%s7427_s3] ss:$0 sm:$0xff]  ;;  %v818_v12 = vand.u32 15, %v692_v3 }
 0x107   : > { %1650 = vst [vmem:[#allocation2 + $0xa4] sm:$0xf] %v1618_v11 }
 0x108   : > { %v1138_v18 = vrot.slane %v649_v36, 7  ;;  %v1331_v20 = vrot.slane %v649_v36, 1  ;;  %v1556_v33 = vpack.c.bf16 %v649_v36, %v649_v36  ;;  %v6145_v36 = vor.u32 %v5127_v57, %v4390_v9 }
 0x109   : > { %v519_v32 = vpop.f32.mrf.mxu0  ;;  %v5132_v55 = vld [vmem:[#allocation2 + $0xac] sm:$0xf]  ;;  %vm1301_vm11 = vcmp.lt.s32.totalorder %v818_v12, 15 }
 0x10a   : > { %v1176_v13 = vsel %vm1157_vm1, %v1137_v5, %v1138_v18  ;;  %v1369_v14 = vsel %vm1350_vm2, %v1330_v6, %v1331_v20  ;;  %1588 = vst [vmem:[#allocation2 + $0xb8] sm:$0xf] %v1556_v33  ;;  %2358 = vmatmul.bf16.gmra.mxu2 %v6107_v10  ;;  %v582_v37 = vmul.f32 %v5661_v45, %v519_v32 }
 0x10b   : > { %v1492_v43 = vpack.c.bf16 %v1176_v13, %v1176_v13  ;;  %v1619_v50 = vpack.c.bf16 %v1369_v14, %v1369_v14 }
 0x10c   : > { %v618_v40 = vadd.f32 %v5666_v46, %v582_v37 }
 0x10d   : > { %1524 = vst [vmem:[#allocation2 + $0xb4] sm:$0xf] %v1492_v43  ;;  %2681 = vmatmul.bf16.gmra.mxu0 %v6077_v19 }
 0x10e   : > { %1651 = vst [vmem:[#allocation2 + $0xb0] sm:$0xf] %v1619_v50  ;;  %v650_v44 = vmax.f32 %v618_v40, 0.0 }
 0x10f   : > { %2259 = vmatmul.bf16.gmra.mxu1 %v6119_v17 }
 0x110   : > { %v1139_v38 = vrot.slane %v650_v44, 7  ;;  %v1332_v34 = vrot.slane %v650_v44, 1  ;;  %v1557_v24 = vpack.c.bf16 %v650_v44, %v650_v44  ;;  %v695_v44 = vadd.s32 144, %v5677_v58 }
 0x111   : > { %v521_v41 = vpop.f32.mrf.mxu0  ;;  %v4416_v62 = vld [vmem:[#allocation2 + $0xb4] sm:$0xf0] }
 0x112   : > { %v1175_v59 = vsel %vm1157_vm1, %v1138_v18, %v1139_v38  ;;  %v1368_v30 = vsel %vm1350_vm2, %v1331_v20, %v1332_v34  ;;  %1589 = vst [vmem:[#allocation2 + $0xc4] sm:$0xf] %v1557_v24  ;;  %v583_v19 = vmul.f32 %v5661_v45, %v521_v41  ;;  %v6128_v35 = vor.u32 %v5132_v55, %v4416_v62  ;;  %v5130_v62 = vld [vmem:[#allocation2 + $0x98] sm:$0xf0] }
 0x113   : > { %v1268_v39 = vsel %vm1107_vm8, %v1175_v59, 0.0  ;;  %v1460_v61 = vsel %vm1299_vm9, %v1368_v30, 0.0  ;;  %v694_v41 = vadd.s32 136, %v5677_v58  ;;  %v5174_v59 = vld [vmem:[%s7428_s4 + $0x78] sm:$0xff] }
 0x114   : > { %v1493_v63 = vpack.c.bf16 %v1268_v39, %v1268_v39  ;;  %v1620_v26 = vpack.c.bf16 %v1460_v61, %v1460_v61  ;;  %v619_v54 = vadd.f32 %v5666_v46, %v583_v19  ;;  %2752 = vmatpush.bf16.msrb.mxu1 %v5174_v59  ;;  %v5181_v59 = vld [vmem:[%s7428_s4 + $0xb0] sm:$0xff] }
 0x116   : > { %1525 = vst [vmem:[#allocation2 + $0xc0] sm:$0xf] %v1493_v63  ;;  %v651_v42 = vmax.f32 %v619_v54, 0.0  ;;  %v839_v54 = vand.u32 15, %v695_v44 }
 0x117   : > { %1652 = vst [vmem:[#allocation2 + $0xbc] sm:$0xf] %v1620_v26 }
 0x118   : > { %v1140_v4 = vrot.slane %v651_v42, 7  ;;  %v1333_v5 = vrot.slane %v651_v42, 1  ;;  %v1558_v6 = vpack.c.bf16 %v651_v42, %v651_v42  ;;  %v832_v42 = vand.u32 15, %v694_v41 }
 0x119   : > { %v524_v51 = vpop.f32.mrf.mxu0  ;;  %v5135_v40 = vld [vmem:[#allocation2 + $0xc4] sm:$0xf]  ;;  %vm1111_vm12 = vcmp.ge.s32.totalorder %v839_v54, 1 }
 0x11a   : > { %v1174_v8 = vsel %vm1157_vm1, %v1139_v38, %v1140_v4  ;;  %v1367_v46 = vsel %vm1350_vm2, %v1332_v34, %v1333_v5  ;;  %1590 = vst [vmem:[#allocation2 + $0xd0] sm:$0xf] %v1558_v6  ;;  %2363 = vmatmul.bf16.gmra.mxu2 %v6128_v35  ;;  %v584_v48 = vmul.f32 %v5661_v45, %v524_v51  ;;  %vm1303_vm13 = vcmp.lt.s32.totalorder %v832_v42, 15 }
 0x11b   : > { %v1494_v31 = vpack.c.bf16 %v1174_v8, %v1174_v8  ;;  %v1621_v53 = vpack.c.bf16 %v1367_v46, %v1367_v46 }
 0x11c   : > { %v620_v11 = vadd.f32 %v6141_v7, %v584_v48 }
 0x11d   : > { %1526 = vst [vmem:[#allocation2 + $0xcc] sm:$0xf] %v1494_v31  ;;  %2686 = vmatmul.bf16.gmra.mxu0 %v6098_v29  ;;  %v6155_v29 = vld [vmem:[%s7426_s2] ss:$0 sm:$0xff] }
 0x11e   : > { %1653 = vst [vmem:[#allocation2 + $0xc8] sm:$0xf] %v1621_v53  ;;  %v652_v45 = vmax.f32 %v620_v11, 0.0 }
 0x11f   : > { %2264 = vmatmul.bf16.gmra.mxu1 %v6145_v36 }
 0x120   : > { %v1141_v16 = vrot.slane %v652_v45, 7  ;;  %v1334_v18 = vrot.slane %v652_v45, 1  ;;  %v1559_v20 = vpack.c.bf16 %v652_v45, %v652_v45 }
 0x121   : > { %v526_v33 = vpop.f32.mrf.mxu0  ;;  %v4428_v21 = vld [vmem:[#allocation2 + $0xcc] sm:$0xf0] }
 0x122   : > { %v1173_v25 = vsel %vm1157_vm1, %v1140_v4, %v1141_v16  ;;  %v1366_v32 = vsel %vm1350_vm2, %v1333_v5, %v1334_v18  ;;  %1591 = vst [vmem:[#allocation2 + $0xdc] sm:$0xf] %v1559_v20  ;;  %v585_v13 = vmul.f32 %v6155_v29, %v526_v33  ;;  %v6159_v23 = vor.u32 %v5135_v40, %v4428_v21 }
 0x123   : > { %v1270_v14 = vsel %vm1109_vm10, %v1173_v25, 0.0  ;;  %v1462_v37 = vsel %vm1301_vm11, %v1366_v32, 0.0  ;;  %v6174_v4 = vor.u32 %v5130_v62, %v4402_v1  ;;  %v697_v25 = vadd.s32 160, %v5677_v58 }
 0x124   : > { %v1495_v43 = vpack.c.bf16 %v1270_v14, %v1270_v14  ;;  %v1622_v50 = vpack.c.bf16 %v1462_v37, %v1462_v37  ;;  %v621_v52 = vadd.f32 %v6141_v7, %v585_v13  ;;  %v696_v13 = vadd.s32 152, %v5677_v58  ;;  %v5182_v14 = vld [vmem:[%s7428_s4 + $0xb8] sm:$0xff] }
 0x125   : > { %2841 = vmatpush.bf16.msrb.mxu2 %v5182_v14  ;;  %v853_v44 = vand.u32 15, %v697_v25 }
 0x126   : > { %1527 = vst [vmem:[#allocation2 + $0xd8] sm:$0xf] %v1495_v43  ;;  %v653_v56 = vmax.f32 %v621_v52, 0.0 }
 0x127   : > { %1654 = vst [vmem:[#allocation2 + $0xd4] sm:$0xf] %v1622_v50  ;;  %v5133_v50 = vld [vmem:[#allocation2 + $0xb0] sm:$0xf0]  ;;  %vm1113_vm14 = vcmp.ge.s32.totalorder %v853_v44, 1 }
 0x128   : > { %v1142_v38 = vrot.slane %v653_v56, 7  ;;  %v1335_v34 = vrot.slane %v653_v56, 1  ;;  %v1560_v24 = vpack.c.bf16 %v653_v56, %v653_v56 }
 0x129   : > { %v529_v30 = vpop.f32.mrf.mxu0  ;;  %v5138_v9 = vld [vmem:[#allocation2 + $0xdc] sm:$0xf]  ;;  %2842 = vmatpush.bf16.msrb.mxu2 %v5181_v59 }
 0x12a   : > { %v1172_v19 = vsel %vm1157_vm1, %v1141_v16, %v1142_v38  ;;  %v1365_v39 = vsel %vm1350_vm2, %v1334_v18, %v1335_v34  ;;  %1592 = vst [vmem:[#allocation2 + $0xe8] sm:$0xf] %v1560_v24  ;;  %2368 = vmatmul.bf16.gmra.mxu2 %v6159_v23  ;;  %v586_v61 = vmul.f32 %v6155_v29, %v529_v30  ;;  %v846_v24 = vand.u32 15, %v696_v13 }
 0x12b   : > { %v1496_v63 = vpack.c.bf16 %v1172_v19, %v1172_v19  ;;  %v1623_v26 = vpack.c.bf16 %v1365_v39, %v1365_v39  ;;  %v5173_v19 = vld [vmem:[%s7428_s4 + $0x70] sm:$0xff] }
 0x12c   : > { %v622_v55 = vadd.f32 %v6141_v7, %v586_v61  ;;  %vm1305_vm15 = vcmp.lt.s32.totalorder %v846_v24, 15  ;;  %2753 = vmatpush.bf16.msrb.mxu1 %v5173_v19 }
 0x12d   : > { %1528 = vst [vmem:[#allocation2 + $0xe4] sm:$0xf] %v1496_v63  ;;  %2691 = vmatmul.bf16.gmra.mxu0 %v6119_v17  ;;  %v5180_v63 = vld [vmem:[%s7428_s4 + $0xa8] sm:$0xff] }
 0x12e   : > { %1655 = vst [vmem:[#allocation2 + $0xe0] sm:$0xf] %v1623_v26  ;;  %v654_v5 = vmax.f32 %v622_v55, 0.0  ;;  %2843 = vmatpush.bf16.msrb.mxu2 %v5180_v63 }
 0x12f   : > { %2269 = vmatmul.bf16.gmra.mxu1 %v6174_v4 }
 0x130   : > { %v1143_v6 = vrot.slane %v654_v5, 7  ;;  %v1336_v3 = vrot.slane %v654_v5, 1  ;;  %v1561_v51 = vpack.c.bf16 %v654_v5, %v654_v5 }
 0x131   : > { %v531_v8 = vpop.f32.mrf.mxu0  ;;  %v4440_v53 = vld [vmem:[#allocation2 + $0xe4] sm:$0xf0] }
 0x132   : > { %v1171_v46 = vsel %vm1157_vm1, %v1142_v38, %v1143_v6  ;;  %v1364_v48 = vsel %vm1350_vm2, %v1335_v34, %v1336_v3  ;;  %1593 = vst [vmem:[#allocation2 + $0xf4] sm:$0xf] %v1561_v51  ;;  %v587_v17 = vmul.f32 %v6155_v29, %v531_v8  ;;  %v6183_v16 = vor.u32 %v5138_v9, %v4440_v53  ;;  %v4414_v38 = vld [vmem:[#allocation2 + $0xa8] sm:$0xf] }
 0x133   : > { %v1272_v57 = vsel %vm1111_vm12, %v1171_v46, 0.0  ;;  %v1464_v31 = vsel %vm1303_vm13, %v1364_v48, 0.0  ;;  %v6200_v41 = vor.u32 %v5133_v50, %v4414_v38  ;;  %v5179_v48 = vld [vmem:[%s7428_s4 + $0xa0] sm:$0xff]  ;;  %v698_v9 = vadd.s32 168, %v5677_v58 }
 0x134   : > { %v1497_v49 = vpack.c.bf16 %v1272_v57, %v1272_v57  ;;  %v1624_v11 = vpack.c.bf16 %v1464_v31, %v1464_v31  ;;  %v623_v12 = vadd.f32 %v6141_v7, %v587_v17  ;;  %2844 = vmatpush.bf16.msrb.mxu2 %v5179_v48  ;;  %v699_v31 = vadd.s32 176, %v5677_v58 }
 0x136   : > { %1529 = vst [vmem:[#allocation2 + $0xf0] sm:$0xf] %v1497_v49  ;;  %v655_v45 = vmax.f32 %v623_v12, 0.0 }
 0x137   : > { %1656 = vst [vmem:[#allocation2 + $0xec] sm:$0xf] %v1624_v11 }
 0x138   : > { %v1144_v18 = vrot.slane %v655_v45, 7  ;;  %v1337_v20 = vrot.slane %v655_v45, 1  ;;  %v1562_v33 = vpack.c.bf16 %v655_v45, %v655_v45  ;;  %v5178_v45 = vld [vmem:[%s7428_s4 + $0x98] sm:$0xff] }
 0x139   : > { %v6186_v32 = vpop.f32.mrf.mxu2  ;;  %v5141_v46 = vld [vmem:[#allocation2 + $0xf4] sm:$0xf]  ;;  %2845 = vmatpush.bf16.msrb.mxu2 %v5178_v45 }
 0x13a   : > { %v1170_v37 = vsel %vm1157_vm1, %v1143_v6, %v1144_v18  ;;  %v1363_v21 = vsel %vm1350_vm2, %v1336_v3, %v1337_v20  ;;  %1594 = vst [vmem:[#allocation2 + $0x100] sm:$0xf] %v1562_v33  ;;  %2373 = vmatmul.bf16.gmra.mxu2 %v6183_v16  ;;  %v534_v43 = vpop.f32.mrf.mxu0 }
 0x13b   : > { %v1498_v52 = vpack.c.bf16 %v1170_v37, %v1170_v37  ;;  %v1625_v40 = vpack.c.bf16 %v1363_v21, %v1363_v21  ;;  %v588_v56 = vmul.f32 %v6155_v29, %v534_v43  ;;  %v867_v21 = vand.u32 15, %v699_v31  ;;  %v4426_v43 = vld [vmem:[#allocation2 + $0xc0] sm:$0xf] }
 0x13c   : > { %v700_v31 = vadd.s32 184, %v5677_v58 }
 0x13d   : > { %1530 = vst [vmem:[#allocation2 + $0xfc] sm:$0xf] %v1498_v52  ;;  %v624_v34 = vadd.f32 %v6141_v7, %v588_v56  ;;  %2696 = vmatmul.bf16.gmra.mxu0 %v6145_v36  ;;  %v860_v52 = vand.u32 15, %v698_v9  ;;  %v5177_v56 = vld [vmem:[%s7428_s4 + $0x90] sm:$0xff]  ;;  %vm1115_vm3 = vcmp.ge.s32.totalorder %v867_v21, 1 }
 0x13e   : > { %1657 = vst [vmem:[#allocation2 + $0xf8] sm:$0xf] %v1625_v40  ;;  %2846 = vmatpush.bf16.msrb.mxu2 %v5177_v56  ;;  %v874_v21 = vand.u32 15, %v700_v31  ;;  %v702_v56 = vadd.s32 200, %v5677_v58 }
 0x13f   : > { %v656_v30 = vmax.f32 %v624_v34, 0.0  ;;  %2274 = vmatmul.bf16.gmra.mxu1 %v6200_v41  ;;  %vm1307_vm4 = vcmp.lt.s32.totalorder %v860_v52, 15 }
 0x140   : > { %vm1309_vm6 = vcmp.lt.s32.totalorder %v874_v21, 15  ;;  %v4638_v21 = vld [vmem:[#allocation2 + $0x8] sm:$0xf] }
 0x141   : > { %v1145_v39 = vrot.slane %v656_v30, 7  ;;  %v1338_v61 = vrot.slane %v656_v30, 1  ;;  %v1563_v36 = vpack.c.bf16 %v656_v30, %v656_v30  ;;  %v6209_v62 = vpop.f32.mrf.mxu2  ;;  %v4452_v1 = vld [vmem:[#allocation2 + $0xfc] sm:$0xf0] }
 0x142   : > { %v536_v26 = vpop.f32.mrf.mxu0  ;;  %v6223_v17 = vor.u32 %v5141_v46, %v4452_v1 }
 0x143   : > { %v1169_v54 = vsel %vm1157_vm1, %v1144_v18, %v1145_v39  ;;  %v1362_v55 = vsel %vm1350_vm2, %v1337_v20, %v1338_v61  ;;  %1595 = vst [vmem:[#allocation2 + $0x10c] sm:$0xf] %v1563_v36  ;;  %v589_v42 = vmul.f32 %v6155_v29, %v536_v26  ;;  %v5136_v20 = vld [vmem:[#allocation2 + $0xc8] sm:$0xf0] }
 0x144   : > { %v1274_v5 = vsel %vm1113_vm14, %v1169_v54, 0.0  ;;  %v1466_v6 = vsel %vm1305_vm15, %v1362_v55, 0.0  ;;  %v6240_v40 = vor.u32 %v5136_v20, %v4426_v43  ;;  %v5142_v31 = vld [vmem:[#allocation2 + $0xf8] sm:$0xf0] }
 0x145   : > { %v1499_v3 = vpack.c.bf16 %v1274_v5, %v1274_v5  ;;  %v1626_v51 = vpack.c.bf16 %v1466_v6, %v1466_v6  ;;  %v625_v8 = vadd.f32 %v6141_v7, %v589_v42  ;;  %v5172_v5 = vld [vmem:[%s7428_s4 + $0x68] sm:$0xff]  ;;  %v5175_v6 = vld [vmem:[%s7428_s4 + $0x80] sm:$0xff] }
 0x146   : > { %2754 = vmatpush.bf16.msrb.mxu1 %v5172_v5 }
 0x147   : > { %1531 = vst [vmem:[#allocation2 + $0x108] sm:$0xf] %v1499_v3  ;;  %v657_v57 = vmax.f32 %v625_v8, 0.0  ;;  %v701_v8 = vadd.s32 192, %v5677_v58 }
 0x148   : > { %1658 = vst [vmem:[#allocation2 + $0x104] sm:$0xf] %v1626_v51 }
 0x149   : > { %v1146_v53 = vrot.slane %v657_v57, 7  ;;  %v1339_v49 = vrot.slane %v657_v57, 1  ;;  %v1564_v11 = vpack.c.bf16 %v657_v57, %v657_v57  ;;  %v6226_v12 = vpop.f32.mrf.mxu2 }
 0x14a   : > { %2378 = vmatmul.bf16.gmra.mxu2 %v6223_v17  ;;  %v539_v18 = vpop.f32.mrf.mxu0  ;;  %v5144_v1 = vld [vmem:[#allocation2 + $0x10c] sm:$0xf] }
 0x14b   : > { %v1168_v33 = vsel %vm1157_vm1, %v1145_v39, %v1146_v53  ;;  %v1361_v25 = vsel %vm1350_vm2, %v1338_v61, %v1339_v49  ;;  %1596 = vst [vmem:[#allocation2 + $0x118] sm:$0xf] %v1564_v11  ;;  %v590_v13 = vmul.f32 %v6155_v29, %v539_v18 }
 0x14c   : > { %v1500_v14 = vpack.c.bf16 %v1168_v33, %v1168_v33  ;;  %v1627_v37 = vpack.c.bf16 %v1361_v25, %v1361_v25  ;;  %v881_v33 = vand.u32 15, %v701_v8 }
 0x14d   : > { %v626_v50 = vadd.f32 %v6141_v7, %v590_v13  ;;  %2701 = vmatmul.bf16.gmra.mxu0 %v6174_v4  ;;  %v5176_v4 = vld [vmem:[%s7428_s4 + $0x88] sm:$0xff]  ;;  %v4438_v13 = vld [vmem:[#allocation2 + $0xd8] sm:$0xf] }
 0x14e   : > { %1532 = vst [vmem:[#allocation2 + $0x114] sm:$0xf] %v1500_v14  ;;  %2847 = vmatpush.bf16.msrb.mxu2 %v5176_v4  ;;  %vm1117_vm5 = vcmp.ge.s32.totalorder %v881_v33, 1  ;;  %v4450_v33 = vld [vmem:[#allocation2 + $0xf0] sm:$0xf] }
 0x14f   : > { %1659 = vst [vmem:[#allocation2 + $0x110] sm:$0xf] %v1627_v37  ;;  %v658_v44 = vmax.f32 %v626_v50, 0.0  ;;  %2279 = vmatmul.bf16.gmra.mxu1 %v6240_v40  ;;  %v4451_v0 = vor.u32 %v5142_v31, %v4450_v33 }
 0x151   : > { %v1147_v38 = vrot.slane %v658_v44, 7  ;;  %v1340_v34 = vrot.slane %v658_v44, 1  ;;  %v1565_v24 = vpack.c.bf16 %v658_v44, %v658_v44  ;;  %v6253_v39 = vpop.f32.mrf.mxu2  ;;  %v703_v44 = vadd.s32 208, %v5677_v58  ;;  %v5171_v58 = vld [vmem:[%s7428_s4 + $0x60] sm:$0xff] }
 0x152   : > { %v541_v59 = vpop.f32.mrf.mxu0  ;;  %v4464_v36 = vld [vmem:[#allocation2 + $0x114] sm:$0xf0]  ;;  %2848 = vmatpush.bf16.msrb.mxu2 %v5175_v6  ;;  %2755 = vmatpush.bf16.msrb.mxu1 %v5171_v58 }
 0x153   : > { %v1167_v30 = vsel %vm1157_vm1, %v1146_v53, %v1147_v38  ;;  %v1360_v19 = vsel %vm1350_vm2, %v1339_v49, %v1340_v34  ;;  %1597 = vst [vmem:[#allocation2 + $0x124] sm:$0xf] %v1565_v24  ;;  %v591_v61 = vmul.f32 %v6155_v29, %v541_v59  ;;  %v6263_v3 = vor.u32 %v5144_v1, %v4464_v36  ;;  %v5139_v49 = vld [vmem:[#allocation2 + $0xe0] sm:$0xf0]  ;;  %v4362_v58 = vld [vmem:[#allocation2 + $0x38] sm:$0xf] }
 0x154   : > { %v1276_v63 = vsel %vm1115_vm3, %v1167_v30, 0.0  ;;  %v1468_v26 = vsel %vm1307_vm4, %v1360_v19, 0.0  ;;  %v6280_v50 = vor.u32 %v5139_v49, %v4438_v13  ;;  %v888_v36 = vand.u32 15, %v702_v56 }
 0x155   : > { %v1501_v54 = vpack.c.bf16 %v1276_v63, %v1276_v63  ;;  %v1628_v55 = vpack.c.bf16 %v1468_v26, %v1468_v26  ;;  %v627_v42 = vadd.f32 %v6141_v7, %v591_v61  ;;  %v895_v63 = vand.u32 15, %v703_v44 }
 0x156   : > { %vm1311_vm8 = vcmp.lt.s32.totalorder %v888_v36, 15  ;;  %v5168_v36 = vld [vmem:[%s7428_s4 + $0x48] sm:$0xff] }
 0x157   : > { %1533 = vst [vmem:[#allocation2 + $0x120] sm:$0xf] %v1501_v54  ;;  %v659_v51 = vmax.f32 %v627_v42, 0.0  ;;  %vm1119_vm7 = vcmp.ge.s32.totalorder %v895_v63, 1 }
 0x158   : > { %1660 = vst [vmem:[#allocation2 + $0x11c] sm:$0xf] %v1628_v55 }
 0x159   : > { %v1148_v46 = vrot.slane %v659_v51, 7  ;;  %v1341_v48 = vrot.slane %v659_v51, 1  ;;  %v1566_v57 = vpack.c.bf16 %v659_v51, %v659_v51 }
 0x15a   : > { %2383 = vmatmul.bf16.gmra.mxu2 %v6263_v3  ;;  %v544_v53 = vpop.f32.mrf.mxu0  ;;  %v5147_v6 = vld [vmem:[#allocation2 + $0x124] sm:$0xf] }
 0x15b   : > { %v1166_v11 = vsel %vm1157_vm1, %v1147_v38, %v1148_v46  ;;  %v1359_v9 = vsel %vm1350_vm2, %v1340_v34, %v1341_v48  ;;  %1598 = vst [vmem:[#allocation2 + $0x130] sm:$0xf] %v1566_v57  ;;  %v592_v45 = vmul.f32 %v6155_v29, %v544_v53 }
 0x15c   : > { %v1502_v18 = vpack.c.bf16 %v1166_v11, %v1166_v11  ;;  %v1629_v20 = vpack.c.bf16 %v1359_v9, %v1359_v9  ;;  %v2245_v25 = vpop.f32.mrf.mxu1 }
 0x15d   : > { %v6273_v14 = vpop.f32.mrf.mxu2  ;;  %v628_v37 = vadd.f32 %v6141_v7, %v592_v45  ;;  %v6277_v43 = vadd.f32 %v6186_v32, %v2245_v25  ;;  %2706 = vmatmul.bf16.gmra.mxu0 %v6200_v41 }
 0x15e   : > { %1534 = vst [vmem:[#allocation2 + $0x12c] sm:$0xf] %v1502_v18 }
 0x15f   : > { %1661 = vst [vmem:[#allocation2 + $0x128] sm:$0xf] %v1629_v20  ;;  %v660_v52 = vmax.f32 %v628_v37, 0.0  ;;  %2284 = vmatmul.bf16.gmra.mxu1 %v6280_v50 }
 0x161   : > { %v1149_v38 = vrot.slane %v660_v52, 7  ;;  %v1342_v34 = vrot.slane %v660_v52, 1  ;;  %v1567_v24 = vpack.c.bf16 %v660_v52, %v660_v52  ;;  %v5113_v52 = vld [vmem:[#allocation2 + $0x10] sm:$0xf0] }
 0x162   : > { %v546_v32 = vpop.f32.mrf.mxu0  ;;  %v4476_v30 = vld [vmem:[#allocation2 + $0x12c] sm:$0xf0] }
 0x163   : > { %v1165_v41 = vsel %vm1157_vm1, %v1148_v46, %v1149_v38  ;;  %v1358_v4 = vsel %vm1350_vm2, %v1341_v48, %v1342_v34  ;;  %1599 = vst [vmem:[#allocation2 + $0x13c] sm:$0xf] %v1567_v24  ;;  %v593_v59 = vmul.f32 %v6155_v29, %v546_v32  ;;  %v6296_v51 = vor.u32 %v5147_v6, %v4476_v30  ;;  %v4462_v30 = vld [vmem:[#allocation2 + $0x108] sm:$0xf]  ;;  %v5154_v6 = vld [vmem:[#allocation2 + $0x158] sm:$0xf0] }
 0x164   : > { %v1278_v19 = vsel %vm1117_vm5, %v1165_v41, 0.0  ;;  %v1470_v61 = vsel %vm1309_vm6, %v1358_v4, 0.0  ;;  %v2247_v26 = vpop.f32.mrf.mxu1  ;;  %v4639_v24 = vor.u32 %v5113_v52, %v4638_v21  ;;  %v5169_v41 = vld [vmem:[%s7428_s4 + $0x50] sm:$0xff] }
 0x165   : > { %v1503_v54 = vpack.c.bf16 %v1278_v19, %v1278_v19  ;;  %v1630_v55 = vpack.c.bf16 %v1470_v61, %v1470_v61  ;;  %v6290_v42 = vpop.f32.mrf.mxu2  ;;  %v629_v1 = vadd.f32 %v6141_v7, %v593_v59  ;;  %v6294_v5 = vadd.f32 %v6209_v62, %v2247_v26  ;;  %v5167_v26 = vld [vmem:[%s7428_s4 + $0x40] sm:$0xff] }
 0x167   : > { %1535 = vst [vmem:[#allocation2 + $0x138] sm:$0xf] %v1503_v54  ;;  %v661_v29 = vmax.f32 %v629_v1, 0.0 }
 0x168   : > { %1662 = vst [vmem:[#allocation2 + $0x134] sm:$0xf] %v1630_v55 }
 0x169   : > { %v1150_v8 = vrot.slane %v661_v29, 7  ;;  %v1343_v46 = vrot.slane %v661_v29, 1  ;;  %v1568_v48 = vpack.c.bf16 %v661_v29, %v661_v29 }
 0x16a   : > { %2388 = vmatmul.bf16.gmra.mxu2 %v6296_v51  ;;  %v6299_v57 = vpop.f32.mrf.mxu0 }
 0x16b   : > { %v1163_v7 = vsel %vm1157_vm1, %v1150_v8, %v1151_v27  ;;  %v1164_v62 = vsel %vm1157_vm1, %v1149_v38, %v1150_v8  ;;  %v1356_v53 = vsel %vm1350_vm2, %v1343_v46, %v1344_v28  ;;  %v1357_v49 = vsel %vm1350_vm2, %v1342_v34, %v1343_v46  ;;  %1600 = vst [vmem:[#allocation2 + $0x148] sm:$0xf] %v1568_v48  ;;  %v5170_v34 = vld [vmem:[%s7428_s4 + $0x58] sm:$0xff]  ;;  %v4350_v8 = vld [vmem:[#allocation2 + $0x20] sm:$0xf] }
 0x16c   : > { %v1280_v11 = vsel %vm1119_vm7, %v1163_v7, 0.0  ;;  %v1472_v9 = vsel %vm1311_vm8, %v1356_v53, 0.0  ;;  %v1504_v45 = vpack.c.bf16 %v1164_v62, %v1164_v62  ;;  %v1631_v18 = vpack.c.bf16 %v1357_v49, %v1357_v49  ;;  %v2250_v20 = vpop.f32.mrf.mxu1  ;;  %2756 = vmatpush.bf16.msrb.mxu1 %v5170_v34  ;;  %v5148_v7 = vld [vmem:[#allocation2 + $0x128] sm:$0xf0]  ;;  %v4474_v53 = vld [vmem:[#allocation2 + $0x120] sm:$0xf] }
 0x16d   : > { %v1505_v25 = vpack.c.bf16 %v1280_v11, %v1280_v11  ;;  %v1632_v27 = vpack.c.bf16 %v1472_v9, %v1472_v9  ;;  %v2349_v13 = vpop.f32.mrf.mxu2  ;;  %v6314_v37 = vadd.f32 %v6226_v12, %v2250_v20  ;;  %2711 = vmatmul.bf16.gmra.mxu0 %v6240_v40 }
 0x16e   : > { %1536 = vst [vmem:[#allocation2 + $0x144] sm:$0xf] %v1504_v45  ;;  %v4486_v40 = vld [vmem:[#allocation2 + $0x138] sm:$0xf]  ;;  %v4510_v45 = vld [vmem:[#allocation2 + $0x168] sm:$0xf] }
 0x16f   : > { %1537 = vst [vmem:[#allocation2 + $0x150] sm:$0xf] %v1505_v25  ;;  %2289 = vmatmul.bf16.gmra.mxu1 %v4451_v0  ;;  %v5119_v25 = vld [vmem:[#allocation2 + $0x40] sm:$0xf0] }
 0x170   : > { %1663 = vst [vmem:[#allocation2 + $0x140] sm:$0xf] %v1631_v18  ;;  %2757 = vmatpush.bf16.msrb.mxu1 %v5169_v41  ;;  %v5157_v18 = vld [vmem:[#allocation2 + $0x170] sm:$0xf0]  ;;  %v6367_v21 = vor.u32 %v5119_v25, %v4362_v58  ;;  %v4522_v41 = vld [vmem:[#allocation2 + $0x180] sm:$0xf] }
 0x171   : > { %1664 = vst [vmem:[#allocation2 + $0x14c] sm:$0xf] %v1632_v27  ;;  %v6365_v27 = vor.u32 %v5157_v18, %v4510_v45  ;;  %v5125_v18 = vld [vmem:[#allocation2 + $0x70] sm:$0xf0]  ;;  %v5206_v25 = vld [vmem:[%s7428_s4 + $0x160] sm:$0xff] }
 0x172   : > { %v6320_v28 = vpop.f32.mrf.mxu0  ;;  %v5272_v58 = vld [vmem:[%s7428_s4 + $0x1f0] sm:$0xff] }
 0x174   : > { %v2252_v56 = vpop.f32.mrf.mxu1  ;;  %2758 = vmatpush.bf16.msrb.mxu1 %v5168_v36  ;;  %v5122_v36 = vld [vmem:[#allocation2 + $0x58] sm:$0xf0] }
 0x175   : > { %v2351_v12 = vpop.f32.mrf.mxu2  ;;  %v6323_v44 = vadd.f32 %v6253_v39, %v2252_v56  ;;  %v5151_v38 = vld [vmem:[#allocation2 + $0x140] sm:$0xf0]  ;;  %v5145_v39 = vld [vmem:[#allocation2 + $0x110] sm:$0xf0] }
 0x176   : > { %v6328_v32 = vor.u32 %v5151_v38, %v4486_v40  ;;  %v4463_v61 = vor.u32 %v5145_v39, %v4462_v30  ;;  %v4498_v55 = vld [vmem:[#allocation2 + $0x150] sm:$0xf]  ;;  %v5184_v39 = vld [vmem:[#allocation2 + $0x188] sm:$0xf0] }
 0x177   : > { %v6351_v29 = vor.u32 %v5154_v6, %v4498_v55  ;;  %v4374_v55 = vld [vmem:[#allocation2 + $0x50] sm:$0xf] }
 0x178   : > { %2304 = vmatmul.bf16.vlgmr.msrb.gmra.mxu3 %v6328_v32  ;;  %2759 = vmatpush.bf16.msrb.mxu1 %v5167_v26 }
 0x17a   : > { %2849 = vmatmul.bf16.vlgmr.msrb.gmra.mxu2 %v4639_v24  ;;  %v6334_v4 = vpop.f32.mrf.mxu0 }
 0x17c   : > { %v2255_v59 = vpop.f32.mrf.mxu1 }
 0x17d   : > { %v6337_v19 = vadd.f32 %v6273_v14, %v2255_v59  ;;  %2716 = vmatmul.bf16.gmra.mxu0 %v6280_v50  ;;  %v2354_v63 = vpop.f32.mrf.mxu2  ;;  %v5116_v50 = vld [vmem:[#allocation2 + $0x28] sm:$0xf0] }
 0x17e   : > { %v6353_v48 = vor.u32 %v5116_v50, %v4350_v8 }
 0x17f   : > { %2294 = vmatmul.bf16.gmra.mxu1 %v4463_v61 }
 0x182   : > { %v6346_v54 = vpop.f32.mrf.mxu0 }
 0x183   : > { %7461 = vst [vmem:[#allocation6_spill] sm:$0xff] %v6346_v54 }
 0x184   : > { %v2257_v1 = vpop.f32.mrf.mxu1 }
 0x185   : > { %v6349_v14 = vadd.f32 %v6290_v42, %v2257_v1  ;;  %v2356_v46 = vpop.f32.mrf.mxu2  ;;  %v4475_v42 = vor.u32 %v5148_v7, %v4474_v53  ;;  %v6385_v1 = vor.u32 %v5122_v36, %v4374_v55  ;;  %v5273_v7 = vld [vmem:[%s7428_s4 + $0x1f8] sm:$0xff]  ;;  %v4488_v53 = vld [vmem:[#allocation2 + $0x144] sm:$0xf0] }
 0x186   : > { %3532 = vmatpush.bf16.msra.mxu0 %v5273_v7  ;;  %v5269_v36 = vld [vmem:[%s7428_s4 + $0x1d8] sm:$0xff] }
 0x188   : > { %2309 = vmatmul.bf16.gmra.mxu3 %v6351_v29 }
 0x18a   : > { %2854 = vmatmul.bf16.gmra.mxu2 %v6353_v48  ;;  %v6357_v31 = vpop.f32.mrf.mxu0  ;;  %3533 = vmatpush.bf16.msra.mxu0 %v5272_v58  ;;  %v5203_v58 = vld [vmem:[%s7428_s4 + $0x148] sm:$0xff] }
 0x18b   : > { %7462 = vst [vmem:[#allocation7_spill] sm:$0xff] %v6357_v31 }
 0x18c   : > { %v2260_v62 = vpop.f32.mrf.mxu1 }
 0x18d   : > { %v6359_v49 = vadd.f32 %v2349_v13, %v2260_v62  ;;  %2721 = vmatmul.bf16.gmra.mxu0 %v4451_v0  ;;  %v2359_v11 = vpop.f32.mrf.mxu2  ;;  %v5111_v13 = vld [vmem:[#allocation2 + $0x4] sm:$0xf]  ;;  %v4632_v0 = vld [vmem:[#allocation2 + $0xc] sm:$0xf0] }
 0x18e   : > { %v4635_v56 = vor.u32 %v5111_v13, %v4632_v0  ;;  %v4386_v13 = vld [vmem:[#allocation2 + $0x68] sm:$0xf] }
 0x18f   : > { %2299 = vmatmul.bf16.gmra.mxu1 %v4475_v42  ;;  %v6411_v0 = vor.u32 %v5125_v18, %v4386_v13  ;;  %v5267_v18 = vld [vmem:[%s7428_s4 + $0x1c8] sm:$0xff]  ;;  %v5266_v13 = vld [vmem:[%s7428_s4 + $0x1c0] sm:$0xff] }
 0x192   : > { %v6361_v9 = vpop.f32.mrf.mxu0 }
 0x193   : > { %7463 = vst [vmem:[#allocation8_spill] sm:$0xff] %v6361_v9  ;;  %v4482_v9 = vld [vmem:[#allocation2 + $0x128] sm:$0xf] }
 0x194   : > { %v2262_v20 = vpop.f32.mrf.mxu1 }
 0x195   : > { %v6363_v33 = vadd.f32 %v2351_v12, %v2262_v20  ;;  %v2361_v40 = vpop.f32.mrf.mxu2  ;;  %v5209_v12 = vld [vmem:[%s7428_s4 + $0x178] sm:$0xff] }
 0x196   : > { %2414 = vmatpush.bf16.msrb.mxu3 %v5209_v12 }
 0x198   : > { %2314 = vmatmul.bf16.gmra.mxu3 %v6365_v27 }
 0x19a   : > { %2859 = vmatmul.bf16.gmra.mxu2 %v6367_v21  ;;  %v6371_v52 = vpop.f32.mrf.mxu0 }
 0x19b   : > { %7464 = vst [vmem:[#allocation9_spill] sm:$0xff] %v6371_v52 }
 0x19c   : > { %v2265_v38 = vpop.f32.mrf.mxu1 }
 0x19d   : > { %v6373_v34 = vadd.f32 %v2354_v63, %v2265_v38  ;;  %2726 = vmatmul.bf16.gmra.mxu0 %v4463_v61  ;;  %v5208_v63 = vld [vmem:[%s7428_s4 + $0x170] sm:$0xff]  ;;  %v2364_v26 = vpop.f32.mrf.mxu2  ;;  %v4523_v61 = vor.u32 %v5184_v39, %v4522_v41  ;;  %v5205_v41 = vld [vmem:[%s7428_s4 + $0x158] sm:$0xff]  ;;  %v5270_v39 = vld [vmem:[%s7428_s4 + $0x1e0] sm:$0xff] }
 0x19e   : > { %2415 = vmatpush.bf16.msrb.mxu3 %v5208_v63  ;;  %v5153_v63 = vld [vmem:[#allocation2 + $0x154] sm:$0xf] }
 0x19f   : > { %2760 = vmatmul.bf16.vlgmr.msrb.gmra.mxu1 %v4635_v56 }
 0x1a2   : > { %v6378_v24 = vpop.f32.mrf.mxu0 }
 0x1a3   : > { %7465 = vst [vmem:[#allocation10_spill] sm:$0xff] %v6378_v24 }
 0x1a4   : > { %v2267_v59 = vpop.f32.mrf.mxu1 }
 0x1a5   : > { %v6380_v30 = vadd.f32 %v2356_v46, %v2267_v59  ;;  %v5207_v46 = vld [vmem:[%s7428_s4 + $0x168] sm:$0xff]  ;;  %v2366_v62 = vpop.f32.mrf.mxu2 }
 0x1a6   : > { %2416 = vmatpush.bf16.msrb.mxu3 %v5207_v46  ;;  %v5204_v46 = vld [vmem:[%s7428_s4 + $0x150] sm:$0xff] }
 0x1a8   : > { %2319 = vmatmul.bf16.gmra.mxu3 %v4523_v61 }
 0x1aa   : > { %2864 = vmatmul.bf16.gmra.mxu2 %v6385_v1  ;;  %v6388_v50 = vpop.f32.mrf.mxu0  ;;  %2417 = vmatpush.bf16.msrb.mxu3 %v5206_v25 }
 0x1ab   : > { %7466 = vst [vmem:[#allocation11_spill] sm:$0xff] %v6388_v50 }
 0x1ac   : > { %v2270_v6 = vpop.f32.mrf.mxu1 }
 0x1ad   : > { %v6390_v8 = vadd.f32 %v2359_v11, %v2270_v6  ;;  %2731 = vmatmul.bf16.gmra.mxu0 %v4475_v42  ;;  %v5150_v42 = vld [vmem:[#allocation2 + $0x13c] sm:$0xf]  ;;  %v2369_v56 = vpop.f32.mrf.mxu2  ;;  %v5128_v6 = vld [vmem:[#allocation2 + $0x88] sm:$0xf0] }
 0x1ae   : > { %2418 = vmatpush.bf16.msrb.mxu3 %v5205_v41  ;;  %v5156_v41 = vld [vmem:[#allocation2 + $0x16c] sm:$0xf] }
 0x1af   : > { %2765 = vmatmul.bf16.gmra.mxu1 %v5788_v15  ;;  %v6409_v15 = vor.u32 %v5150_v42, %v4488_v53  ;;  %v4398_v53 = vld [vmem:[#allocation2 + $0x80] sm:$0xf] }
 0x1b2   : > { %v6399_v20 = vpop.f32.mrf.mxu0  ;;  %2419 = vmatpush.bf16.msrb.mxu3 %v5204_v46 }
 0x1b3   : > { %7467 = vst [vmem:[#allocation12_spill] sm:$0xff] %v6399_v20 }
 0x1b4   : > { %v2272_v45 = vpop.f32.mrf.mxu1 }
 0x1b5   : > { %v6401_v11 = vadd.f32 %v2361_v40, %v2272_v45  ;;  %v5271_v40 = vld [vmem:[%s7428_s4 + $0x1e8] sm:$0xff]  ;;  %v6443_v45 = vor.u32 %v5128_v6, %v4398_v53  ;;  %v5265_v53 = vld [vmem:[%s7428_s4 + $0x1b8] sm:$0xff] }
 0x1b6   : > { %3534 = vmatpush.bf16.msra.mxu0 %v5271_v40  ;;  %2420 = vmatpush.bf16.msrb.mxu3 %v5203_v58  ;;  %v4524_v58 = vld [vmem:[#allocation2 + $0x18c] sm:$0xf0] }
 0x1b8   : > { %2393 = vmatmul.bf16.vlgmr.msra.gmra.mxu3 %v6409_v15 }
 0x1ba   : > { %2869 = vmatmul.bf16.gmra.mxu2 %v6411_v0  ;;  %v6427_v59 = vpop.f32.mrf.mxu0  ;;  %3535 = vmatpush.bf16.msra.mxu0 %v5270_v39 }
 0x1bb   : > { %7468 = vst [vmem:[#allocation13_spill] sm:$0xff] %v6427_v59  ;;  %v4458_v59 = vld [vmem:[#allocation2 + $0xf8] sm:$0xf] }
 0x1bc   : > { %v2275_v38 = vpop.f32.mrf.mxu1 }
 0x1bd   : > { %v6418_v12 = vadd.f32 %v2364_v26, %v2275_v38  ;;  %2736 = vmatmul.bf16.gmra.mxu0 %v6328_v32  ;;  %v4500_v32 = vld [vmem:[#allocation2 + $0x15c] sm:$0xf0]  ;;  %v2371_v26 = vpop.f32.mrf.mxu2 }
 0x1be   : > { %3536 = vmatpush.bf16.msra.mxu0 %v5269_v36  ;;  %v6441_v7 = vor.u32 %v5153_v63, %v4500_v32  ;;  %v5202_v63 = vld [vmem:[%s7428_s4 + $0x140] sm:$0xff] }
 0x1bf   : > { %2770 = vmatmul.bf16.gmra.mxu1 %v5929_v60  ;;  %v5268_v60 = vld [vmem:[%s7428_s4 + $0x1d0] sm:$0xff]  ;;  %2421 = vmatpush.bf16.msrb.mxu3 %v5202_v63 }
 0x1c2   : > { %3537 = vmatpush.bf16.msra.mxu0 %v5268_v60 }
 0x1c3   : > { %3443 = vmatpush.bf16.msra.mxu3 %v5265_v53 }
 0x1c4   : > { %v2277_v61 = vpop.f32.mrf.mxu1 }
 0x1c5   : > { %v6433_v55 = vadd.f32 %v2366_v62, %v2277_v61  ;;  %v6446_v62 = vpop.f32.mrf.mxu0  ;;  %v2374_v40 = vpop.f32.mrf.mxu2  ;;  %v4410_v61 = vld [vmem:[#allocation2 + $0x98] sm:$0xf] }
 0x1c6   : > { %7469 = vst [vmem:[#allocation14_spill] sm:$0xff] %v6446_v62  ;;  %3538 = vmatpush.bf16.msra.mxu0 %v5267_v18  ;;  %v5143_v62 = vld [vmem:[#allocation2 + $0x100] sm:$0xf0] }
 0x1c7   : > { %v6539_v20 = vor.u32 %v5143_v62, %v4458_v59 }
 0x1c8   : > { %2398 = vmatmul.bf16.gmra.mxu3 %v6441_v7 }
 0x1ca   : > { %2874 = vmatmul.bf16.gmra.mxu2 %v6443_v45  ;;  %3539 = vmatpush.bf16.msra.mxu0 %v5266_v13 }
 0x1cc   : > { %v2280_v42 = vpop.f32.mrf.mxu1 }
 0x1cd   : > { %v6452_v25 = vadd.f32 %v2369_v56, %v2280_v42  ;;  %2741 = vmatmul.bf16.gmra.mxu0 %v6351_v29  ;;  %v6462_v38 = vpop.f32.mrf.mxu0  ;;  %v4512_v56 = vld [vmem:[#allocation2 + $0x174] sm:$0xf0]  ;;  %v5131_v29 = vld [vmem:[#allocation2 + $0xa0] sm:$0xf0]  ;;  %v2376_v6 = vpop.f32.mrf.mxu2 }
 0x1ce   : > { %7470 = vst [vmem:[#allocation15_spill] sm:$0xff] %v6462_v38  ;;  %v6469_v32 = vor.u32 %v5156_v41, %v4512_v56  ;;  %v5183_v42 = vld [vmem:[#allocation2 + $0x184] sm:$0xf]  ;;  %v5134_v56 = vld [vmem:[#allocation2 + $0xb8] sm:$0xf0] }
 0x1cf   : > { %2775 = vmatmul.bf16.gmra.mxu1 %v6037_v22  ;;  %v6471_v22 = vor.u32 %v5131_v29, %v4410_v61  ;;  %v4422_v29 = vld [vmem:[#allocation2 + $0xb0] sm:$0xf]  ;;  %v5210_v61 = vld [vmem:[#allocation2 + $0x34] sm:$0xf] }
 0x1d0   : > { %v6491_v63 = vor.u32 %v5134_v56, %v4422_v29  ;;  %v5137_v56 = vld [vmem:[#allocation2 + $0xd0] sm:$0xf0] }
 0x1d4   : > { %v2282_v39 = vpop.f32.mrf.mxu1 }
 0x1d5   : > { %v6464_v36 = vadd.f32 %v2371_v26, %v2282_v39  ;;  %v6475_v60 = vpop.f32.mrf.mxu0  ;;  %v2379_v18 = vpop.f32.mrf.mxu2  ;;  %v4527_v39 = vor.u32 %v5183_v42, %v4524_v58 }
 0x1d6   : > { %7471 = vst [vmem:[#allocation16_spill] sm:$0xff] %v6475_v60 }
 0x1d8   : > { %2403 = vmatmul.bf16.gmra.mxu3 %v6469_v32 }
 0x1da   : > { %2879 = vmatmul.bf16.gmra.mxu2 %v6471_v22 }
 0x1dc   : > { %v2285_v46 = vpop.f32.mrf.mxu1 }
 0x1dd   : > { %v6477_v26 = vadd.f32 %v2374_v40, %v2285_v46  ;;  %2746 = vmatmul.bf16.gmra.mxu0 %v6365_v27  ;;  %v5281_v40 = vld [vmem:[%s7428_s4 + $0x238] sm:$0xff]  ;;  %v6489_v27 = vpop.f32.mrf.mxu0 }
 0x1de   : > { %7472 = vst [vmem:[#allocation17_spill] sm:$0xff] %v6489_v27  ;;  %3621 = vmatpush.bf16.msra.mxu1 %v5281_v40 }
 0x1df   : > { %2780 = vmatmul.bf16.gmra.mxu1 %v6066_v2  ;;  %v4788_v2 = vld [vmem:[#allocation2 + $0x3c] sm:$0xf0] }
 0x1e0   : > { %v4791_v46 = vor.u32 %v5210_v61, %v4788_v2  ;;  %v4800_v2 = vld [vmem:[#allocation2 + $0x54] sm:$0xf0] }
 0x1e4   : > { %v2287_v13 = vpop.f32.mrf.mxu1 }
 0x1e5   : > { %v6484_v41 = vadd.f32 %v2376_v6, %v2287_v13  ;;  %v2381_v6 = vpop.f32.mrf.mxu2  ;;  %v6497_v42 = vpop.f32.mrf.mxu0 }
 0x1e6   : > { %7473 = vst [vmem:[#allocation18_spill] sm:$0xff] %v6497_v42 }
 0x1e8   : > { %2408 = vmatmul.bf16.gmra.mxu3 %v4527_v39  ;;  %v4434_v39 = vld [vmem:[#allocation2 + $0xc8] sm:$0xf] }
 0x1e9   : > { %v6501_v29 = vor.u32 %v5137_v56, %v4434_v39 }
 0x1ea   : > { %2884 = vmatmul.bf16.gmra.mxu2 %v6491_v63 }
 0x1ec   : > { %v2290_v53 = vpop.f32.mrf.mxu1 }
 0x1ed   : > { %v6494_v13 = vadd.f32 %v2379_v18, %v2290_v53  ;;  %3540 = vmatmul.bf16.vlgmr.msra.gmra.mxu0 %v4791_v46  ;;  %v2384_v40 = vpop.f32.mrf.mxu2  ;;  %v5213_v18 = vld [vmem:[#allocation2 + $0x4c] sm:$0xf]  ;;  %v6505_v61 = vpop.f32.mrf.mxu0 }
 0x1ee   : > { %7474 = vst [vmem:[#allocation19_spill] sm:$0xff] %v6505_v61 }
 0x1ef   : > { %2785 = vmatmul.bf16.gmra.mxu1 %v6086_v47  ;;  %v4803_v47 = vor.u32 %v5213_v18, %v4800_v2  ;;  %v5140_v2 = vld [vmem:[#allocation2 + $0xe8] sm:$0xf0]  ;;  %v4446_v18 = vld [vmem:[#allocation2 + $0xe0] sm:$0xf] }
 0x1f4   : > { %v2292_v58 = vpop.f32.mrf.mxu1 }
 0x1f5   : > { %v6499_v27 = vadd.f32 %v2381_v6, %v2292_v58  ;;  %v5264_v6 = vld [vmem:[%s7428_s4 + $0x1b0] sm:$0xff]  ;;  %v6517_v39 = vpop.f32.mrf.mxu0 }
 0x1f6   : > { %3444 = vmatpush.bf16.msra.mxu3 %v5264_v6  ;;  %7475 = vst [vmem:[#allocation20_spill] sm:$0xff] %v6517_v39  ;;  %v5216_v6 = vld [vmem:[#allocation2 + $0x64] sm:$0xf] }
 0x1f8   : > { %2422 = vmatmul.bf16.vlgmr.msrb.gmra.mxu3 %v6353_v48  ;;  %v2386_v48 = vpop.f32.mrf.mxu2 }
 0x1fa   : > { %2889 = vmatmul.bf16.gmra.mxu2 %v6501_v29 }
 0x1fb   : > { %v6507_v46 = vpop.f32.mrf.mxu3 }
 0x1fc   : > { %v2295_v53 = vpop.f32.mrf.mxu1 }
 0x1fd   : > { %v6509_v42 = vadd.f32 %v2384_v40, %v2295_v53  ;;  %3545 = vmatmul.bf16.gmra.mxu0 %v4803_v47  ;;  %v5280_v40 = vld [vmem:[%s7428_s4 + $0x230] sm:$0xff]  ;;  %v6524_v47 = vor.u32 %v5140_v2, %v4446_v18  ;;  %v6532_v38 = vpop.f32.mrf.mxu0 }
 0x1fe   : > { %3622 = vmatpush.bf16.msra.mxu1 %v5280_v40  ;;  %7476 = vst [vmem:[#allocation21_spill] sm:$0xff] %v6532_v38 }
 0x1ff   : > { %2790 = vmatmul.bf16.gmra.mxu1 %v6107_v10  ;;  %v4812_v10 = vld [vmem:[#allocation2 + $0x6c] sm:$0xf0] }
 0x200   : > { %v2389_v53 = vpop.f32.mrf.mxu2 }
 0x203   : > { %v6515_v58 = vpop.f32.mrf.mxu3 }
 0x204   : > { %v2297_v56 = vpop.f32.mrf.mxu1 }
 0x205   : > { %v6519_v61 = vadd.f32 %v2386_v48, %v2297_v56  ;;  %v4815_v48 = vor.u32 %v5216_v6, %v4812_v10  ;;  %v4824_v10 = vld [vmem:[#allocation2 + $0x84] sm:$0xf0]  ;;  %v5219_v6 = vld [vmem:[#allocation2 + $0x7c] sm:$0xf] }
 0x208   : > { %2427 = vmatmul.bf16.gmra.mxu3 %v6367_v21  ;;  %v2391_v40 = vpop.f32.mrf.mxu2 }
 0x20a   : > { %2894 = vmatmul.bf16.gmra.mxu2 %v6524_v47 }
 0x20b   : > { %v6528_v60 = vpop.f32.mrf.mxu3 }
 0x20c   : > { %v2300_v56 = vpop.f32.mrf.mxu1 }
 0x20d   : > { %v6530_v39 = vadd.f32 %v2389_v53, %v2300_v56  ;;  %3550 = vmatmul.bf16.gmra.mxu0 %v4815_v48  ;;  %v6542_v53 = vpop.f32.mrf.mxu0 }
 0x20e   : > { %7477 = vst [vmem:[#allocation22_spill] sm:$0xff] %v6542_v53  ;;  %v5146_v53 = vld [vmem:[#allocation2 + $0x118] sm:$0xf0] }
 0x20f   : > { %2795 = vmatmul.bf16.gmra.mxu1 %v6128_v35  ;;  %v4827_v35 = vor.u32 %v5219_v6, %v4824_v10  ;;  %v5279_v10 = vld [vmem:[%s7428_s4 + $0x228] sm:$0xff]  ;;  %v4470_v6 = vld [vmem:[#allocation2 + $0x110] sm:$0xf] }
 0x210   : > { %v6557_v62 = vpop.f32.mrf.mxu2  ;;  %3623 = vmatpush.bf16.msra.mxu1 %v5279_v10 }
 0x213   : > { %v6535_v2 = vpop.f32.mrf.mxu3 }
 0x214   : > { %v2302_v21 = vpop.f32.mrf.mxu1 }
 0x215   : > { %v6537_v18 = vadd.f32 %v2391_v40, %v2302_v21  ;;  %v5263_v40 = vld [vmem:[%s7428_s4 + $0x1a8] sm:$0xff] }
 0x216   : > { %3445 = vmatpush.bf16.msra.mxu3 %v5263_v40  ;;  %v5222_v40 = vld [vmem:[#allocation2 + $0x94] sm:$0xf] }
 0x218   : > { %2432 = vmatmul.bf16.gmra.mxu3 %v6385_v1  ;;  %v6553_v1 = vpop.f32.mrf.mxu0  ;;  %v6574_v52 = vpop.f32.mrf.mxu2 }
 0x219   : > { %7478 = vst [vmem:[#allocation23_spill] sm:$0xff] %v6553_v1 }
 0x21a   : > { %2899 = vmatmul.bf16.gmra.mxu2 %v6539_v20 }
 0x21b   : > { %v6545_v48 = vpop.f32.mrf.mxu3 }
 0x21c   : > { %v6547_v56 = vpop.f32.mrf.mxu1 }
 0x21d   : > { %3555 = vmatmul.bf16.gmra.mxu0 %v4827_v35  ;;  %v6564_v35 = vor.u32 %v5146_v53, %v4470_v6 }
 0x21f   : > { %2800 = vmatmul.bf16.gmra.mxu1 %v6159_v23  ;;  %v4836_v23 = vld [vmem:[#allocation2 + $0x9c] sm:$0xf0] }
 0x220   : > { %v4839_v38 = vor.u32 %v5222_v40, %v4836_v23  ;;  %v6572_v24 = vpop.f32.mrf.mxu0  ;;  %v6583_v31 = vpop.f32.mrf.mxu2  ;;  %v4848_v40 = vld [vmem:[#allocation2 + $0xb4] sm:$0xf0] }
 0x221   : > { %7479 = vst [vmem:[#allocation24_spill] sm:$0xff] %v6572_v24 }
 0x222   : > { %7482 = vst [vmem:[#allocation27_spill] sm:$0xff] %v6583_v31 }
 0x223   : > { %v6555_v59 = vpop.f32.mrf.mxu3 }
 0x224   : > { %v6559_v21 = vpop.f32.mrf.mxu1 }
 0x228   : > { %2437 = vmatmul.bf16.gmra.mxu3 %v6411_v0  ;;  %v5149_v0 = vld [vmem:[#allocation2 + $0x130] sm:$0xf0]  ;;  %v6581_v6 = vpop.f32.mrf.mxu0 }
 0x229   : > { %7481 = vst [vmem:[#allocation26_spill] sm:$0xff] %v6581_v6  ;;  %v6585_v23 = vor.u32 %v5149_v0, %v4482_v9  ;;  %v5262_v6 = vld [vmem:[%s7428_s4 + $0x1a0] sm:$0xff] }
 0x22a   : > { %2904 = vmatmul.bf16.gmra.mxu2 %v6564_v35  ;;  %3446 = vmatpush.bf16.msra.mxu3 %v5262_v6  ;;  %v5228_v6 = vld [vmem:[#allocation2 + $0xc4] sm:$0xf] }
 0x22b   : > { %v6568_v1 = vpop.f32.mrf.mxu3 }
 0x22c   : > { %v6570_v50 = vpop.f32.mrf.mxu1 }
 0x22d   : > { %3560 = vmatmul.bf16.gmra.mxu0 %v4839_v38  ;;  %v5225_v38 = vld [vmem:[#allocation2 + $0xac] sm:$0xf] }
 0x22f   : > { %2805 = vmatmul.bf16.gmra.mxu1 %v6183_v16  ;;  %v4851_v16 = vor.u32 %v5225_v38, %v4848_v40  ;;  %v5152_v38 = vld [vmem:[#allocation2 + $0x148] sm:$0xf0] }
 0x230   : > { %v6598_v9 = vpop.f32.mrf.mxu0 }
 0x231   : > { %7484 = vst [vmem:[#allocation29_spill] sm:$0xff] %v6598_v9 }
 0x233   : > { %v6577_v53 = vpop.f32.mrf.mxu3 }
 0x234   : > { %v6579_v10 = vpop.f32.mrf.mxu1 }
 0x235   : > { %7480 = vst [vmem:[#allocation25_spill] sm:$0xff] %v6579_v10 }
 0x238   : > { %2442 = vmatmul.bf16.gmra.mxu3 %v6443_v45  ;;  %v6600_v45 = vpop.f32.mrf.mxu2  ;;  %v6614_v9 = vpop.f32.mrf.mxu0 }
 0x239   : > { %7485 = vst [vmem:[#allocation30_spill] sm:$0xff] %v6600_v45 }
 0x23a   : > { %2909 = vmatmul.bf16.gmra.mxu2 %v6585_v23  ;;  %7487 = vst [vmem:[#allocation32_spill] sm:$0xff] %v6614_v9  ;;  %v4506_v9 = vld [vmem:[#allocation2 + $0x158] sm:$0xf] }
 0x23b   : > { %v2394_v24 = vpop.f32.mrf.mxu3 }
 0x23c   : > { %v6590_v54 = vadd.f32 %v2394_v24, %v6507_v46  ;;  %v6592_v10 = vpop.f32.mrf.mxu1  ;;  %v4494_v46 = vld [vmem:[#allocation2 + $0x140] sm:$0xf] }
 0x23d   : > { %7483 = vst [vmem:[#allocation28_spill] sm:$0xff] %v6592_v10  ;;  %3565 = vmatmul.bf16.gmra.mxu0 %v4851_v16  ;;  %v5278_v16 = vld [vmem:[%s7428_s4 + $0x220] sm:$0xff]  ;;  %v6610_v10 = vor.u32 %v5152_v38, %v4494_v46 }
 0x23e   : > { %3624 = vmatpush.bf16.msra.mxu1 %v5278_v16 }
 0x23f   : > { %2810 = vmatmul.bf16.gmra.mxu1 %v6223_v17  ;;  %v4860_v17 = vld [vmem:[#allocation2 + $0xcc] sm:$0xf0] }
 0x240   : > { %v6629_v16 = vpop.f32.mrf.mxu0 }
 0x241   : > { %7490 = vst [vmem:[#allocation35_spill] sm:$0xff] %v6629_v16  ;;  %v5261_v16 = vld [vmem:[%s7428_s4 + $0x198] sm:$0xff] }
 0x242   : > { %3447 = vmatpush.bf16.msra.mxu3 %v5261_v16 }
 0x243   : > { %v2396_v0 = vpop.f32.mrf.mxu3 }
 0x244   : > { %v6603_v40 = vadd.f32 %v2396_v0, %v6515_v58  ;;  %v6605_v24 = vpop.f32.mrf.mxu1  ;;  %v4863_v0 = vor.u32 %v5228_v6, %v4860_v17  ;;  %v5155_v17 = vld [vmem:[#allocation2 + $0x160] sm:$0xf0] }
 0x245   : > { %7486 = vst [vmem:[#allocation31_spill] sm:$0xff] %v6605_v24  ;;  %v6616_v24 = vpop.f32.mrf.mxu2 }
 0x246   : > { %7488 = vst [vmem:[#allocation33_spill] sm:$0xff] %v6616_v24  ;;  %v6633_v24 = vor.u32 %v5155_v17, %v4506_v9 }
 0x248   : > { %2447 = vmatmul.bf16.gmra.mxu3 %v6471_v22  ;;  %v6645_v9 = vpop.f32.mrf.mxu0 }
 0x249   : > { %7492 = vst [vmem:[#allocation37_spill] sm:$0xff] %v6645_v9 }
 0x24a   : > { %2914 = vmatmul.bf16.gmra.mxu2 %v6610_v10 }
 0x24b   : > { %v2399_v58 = vpop.f32.mrf.mxu3 }
 0x24c   : > { %v6619_v45 = vadd.f32 %v2399_v58, %v6528_v60  ;;  %v6621_v31 = vpop.f32.mrf.mxu1  ;;  %v4872_v60 = vld [vmem:[#allocation2 + $0xe4] sm:$0xf0] }
 0x24d   : > { %3570 = vmatmul.bf16.gmra.mxu0 %v4863_v0  ;;  %v6631_v6 = vpop.f32.mrf.mxu2 }
 0x24f   : > { %2815 = vmatmul.bf16.gmra.mxu1 %v6263_v3  ;;  %v5231_v3 = vld [vmem:[#allocation2 + $0xdc] sm:$0xf] }
 0x250   : > { %v4875_v0 = vor.u32 %v5231_v3, %v4872_v60  ;;  %v4518_v3 = vld [vmem:[#allocation2 + $0x170] sm:$0xf]  ;;  %v6661_v16 = vpop.f32.mrf.mxu0 }
 0x251   : > { %7495 = vst [vmem:[#allocation40_spill] sm:$0xff] %v6661_v16 }
 0x253   : > { %v2401_v46 = vpop.f32.mrf.mxu3 }
 0x254   : > { %v6625_v22 = vadd.f32 %v2401_v46, %v6535_v2  ;;  %v6627_v38 = vpop.f32.mrf.mxu1 }
 0x255   : > { %7489 = vst [vmem:[#allocation34_spill] sm:$0xff] %v6627_v38 }
 0x258   : > { %2452 = vmatmul.bf16.gmra.mxu3 %v6491_v63  ;;  %v6648_v63 = vpop.f32.mrf.mxu2 }
 0x259   : > { %7493 = vst [vmem:[#allocation38_spill] sm:$0xff] %v6648_v63 }
 0x25a   : > { %2919 = vmatmul.bf16.gmra.mxu2 %v6633_v24 }
 0x25b   : > { %v2404_v58 = vpop.f32.mrf.mxu3 }
 0x25c   : > { %v6638_v2 = vadd.f32 %v2404_v58, %v6545_v48  ;;  %v6640_v46 = vpop.f32.mrf.mxu1  ;;  %v5158_v58 = vld [vmem:[#allocation2 + $0x178] sm:$0xf0] }
 0x25d   : > { %7491 = vst [vmem:[#allocation36_spill] sm:$0xff] %v6640_v46  ;;  %3575 = vmatmul.bf16.gmra.mxu0 %v4875_v0  ;;  %v5277_v0 = vld [vmem:[%s7428_s4 + $0x218] sm:$0xff]  ;;  %v6658_v46 = vor.u32 %v5158_v58, %v4518_v3  ;;  %v6672_v3 = vpop.f32.mrf.mxu0 }
 0x25e   : > { %3625 = vmatpush.bf16.msra.mxu1 %v5277_v0  ;;  %7496 = vst [vmem:[#allocation41_spill] sm:$0xff] %v6672_v3 }
 0x25f   : > { %2820 = vmatmul.bf16.gmra.mxu1 %v6296_v51  ;;  %v4884_v51 = vld [vmem:[#allocation2 + $0xfc] sm:$0xf0] }
 0x260   : > { %v6663_v9 = vpop.f32.mrf.mxu2 }
 0x263   : > { %v2406_v17 = vpop.f32.mrf.mxu3 }
 0x264   : > { %v6651_v60 = vadd.f32 %v2406_v17, %v6555_v59  ;;  %v6653_v48 = vpop.f32.mrf.mxu1  ;;  %v5234_v59 = vld [vmem:[#allocation2 + $0xf4] sm:$0xf] }
 0x265   : > { %7494 = vst [vmem:[#allocation39_spill] sm:$0xff] %v6653_v48  ;;  %v4887_v48 = vor.u32 %v5234_v59, %v4884_v51  ;;  %v5289_v51 = vld [vmem:[%s7431_s7 + $0x38] sm:$0xff]  ;;  %v6691_v3 = vpop.f32.mrf.mxu0 }
 0x266   : > { %3926 = vmatpush.bf16.msra.mxu2 %v5289_v51  ;;  %7499 = vst [vmem:[#allocation44_spill] sm:$0xff] %v6691_v3  ;;  %v5275_v51 = vld [vmem:[%s7428_s4 + $0x208] sm:$0xff]  ;;  %v5240_v3 = vld [vmem:[#allocation2 + $0x124] sm:$0xf] }
 0x268   : > { %2457 = vmatmul.bf16.gmra.mxu3 %v6501_v29 }
 0x26a   : > { %2924 = vmatmul.bf16.gmra.mxu2 %v6658_v46 }
 0x26b   : > { %v2409_v17 = vpop.f32.mrf.mxu3 }
 0x26c   : > { %v6667_v38 = vadd.f32 %v2409_v17, %v6568_v1  ;;  %v6669_v63 = vpop.f32.mrf.mxu1  ;;  %v4896_v1 = vld [vmem:[#allocation2 + $0x114] sm:$0xf0] }
 0x26d   : > { %3580 = vmatmul.bf16.gmra.mxu0 %v4887_v48  ;;  %v5237_v48 = vld [vmem:[#allocation2 + $0x10c] sm:$0xf] }
 0x26e   : > { %v4899_v17 = vor.u32 %v5237_v48, %v4896_v1 }
 0x26f   : > { %2825 = vmatmul.bf16.gmra.mxu1 %v6409_v15  ;;  %v5276_v15 = vld [vmem:[%s7428_s4 + $0x210] sm:$0xff] }
 0x270   : > { %3626 = vmatpush.bf16.msra.mxu1 %v5276_v15 }
 0x273   : > { %v2411_v29 = vpop.f32.mrf.mxu3 }
 0x274   : > { %v6675_v58 = vadd.f32 %v2411_v29, %v6577_v53  ;;  %v6677_v0 = vpop.f32.mrf.mxu1  ;;  %3627 = vmatpush.bf16.msra.mxu1 %v5275_v51 }
 0x275   : > { %7497 = vst [vmem:[#allocation42_spill] sm:$0xff] %v6677_v0 }
 0x278   : > { %2462 = vmatmul.bf16.gmra.mxu3 %v6524_v47  ;;  %v5260_v47 = vld [vmem:[%s7428_s4 + $0x190] sm:$0xff] }
 0x279   : > { %3448 = vmatpush.bf16.msra.mxu3 %v5260_v47 }
 0x27b   : > { %v2423_v59 = vpop.f32.mrf.mxu3 }
 0x27c   : > { %v6687_v53 = vadd.f32 %v2423_v59, %v6277_v43  ;;  %v6689_v29 = vpop.f32.mrf.mxu1  ;;  %v5274_v43 = vld [vmem:[%s7428_s4 + $0x200] sm:$0xff]  ;;  %v6708_v59 = vpop.f32.mrf.mxu0 }
 0x27d   : > { %7498 = vst [vmem:[#allocation43_spill] sm:$0xff] %v6689_v29  ;;  %3585 = vmatmul.bf16.gmra.mxu0 %v4899_v17  ;;  %3628 = vmatpush.bf16.msra.mxu1 %v5274_v43  ;;  %v4908_v17 = vld [vmem:[#allocation2 + $0x12c] sm:$0xf0] }
 0x27e   : > { %7501 = vst [vmem:[#allocation46_spill] sm:$0xff] %v6708_v59  ;;  %v4911_v47 = vor.u32 %v5240_v3, %v4908_v17  ;;  %v5243_v3 = vld [vmem:[#allocation2 + $0x13c] sm:$0xf]  ;;  %v5212_v17 = vld [vmem:[#allocation2 + $0x40] sm:$0xf0] }
 0x27f   : > { %2830 = vmatmul.bf16.gmra.mxu1 %v6441_v7 }
 0x283   : > { %v2425_v1 = vpop.f32.mrf.mxu3 }
 0x284   : > { %v6704_v15 = vadd.f32 %v2425_v1, %v6294_v5  ;;  %v6706_v48 = vpop.f32.mrf.mxu1  ;;  %v6717_v5 = vpop.f32.mrf.mxu0 }
 0x285   : > { %7500 = vst [vmem:[#allocation45_spill] sm:$0xff] %v6706_v48 }
 0x286   : > { %7503 = vst [vmem:[#allocation48_spill] sm:$0xff] %v6717_v5 }
 0x288   : > { %2467 = vmatmul.bf16.gmra.mxu3 %v6539_v20  ;;  %v5288_v20 = vld [vmem:[%s7431_s7 + $0x30] sm:$0xff] }
 0x289   : > { %3927 = vmatpush.bf16.msra.mxu2 %v5288_v20 }
 0x28b   : > { %v2428_v7 = vpop.f32.mrf.mxu3 }
 0x28c   : > { %v6712_v51 = vadd.f32 %v2428_v7, %v6314_v37  ;;  %v6714_v16 = vpop.f32.mrf.mxu1  ;;  %v4920_v37 = vld [vmem:[#allocation2 + $0x144] sm:$0xf0]  ;;  %v6728_v7 = vpop.f32.mrf.mxu0 }
 0x28d   : > { %7502 = vst [vmem:[#allocation47_spill] sm:$0xff] %v6714_v16  ;;  %3590 = vmatmul.bf16.gmra.mxu0 %v4911_v47  ;;  %v4923_v47 = vor.u32 %v5243_v3, %v4920_v37  ;;  %v4932_v37 = vld [vmem:[#allocation2 + $0x15c] sm:$0xf0]  ;;  %v5215_v3 = vld [vmem:[#allocation2 + $0x58] sm:$0xf0] }
 0x28f   : > { %2835 = vmatmul.bf16.gmra.mxu1 %v6469_v32 }
 0x293   : > { %v2430_v1 = vpop.f32.mrf.mxu3 }
 0x294   : > { %v6720_v43 = vadd.f32 %v2430_v1, %v6323_v44  ;;  %v6725_v59 = vpop.f32.mrf.mxu1  ;;  %v4794_v44 = vld [vmem:[#allocation2 + $0x38] sm:$0xf]  ;;  %v6741_v48 = vpop.f32.mrf.mxu0 }
 0x295   : > { %7504 = vst [vmem:[#allocation49_spill] sm:$0xff] %v6725_v59  ;;  %v4795_v1 = vor.u32 %v5212_v17, %v4794_v44  ;;  %v5259_v59 = vld [vmem:[%s7428_s4 + $0x188] sm:$0xff] }
 0x296   : > { %3449 = vmatpush.bf16.msra.mxu3 %v5259_v59  ;;  %v4806_v59 = vld [vmem:[#allocation2 + $0x50] sm:$0xf] }
 0x298   : > { %2472 = vmatmul.bf16.gmra.mxu3 %v6564_v35 }
 0x29b   : > { %v2433_v32 = vpop.f32.mrf.mxu3 }
 0x29c   : > { %v6731_v5 = vadd.f32 %v2433_v32, %v6337_v19  ;;  %v6736_v35 = vpop.f32.mrf.mxu1  ;;  %v5246_v19 = vld [vmem:[#allocation2 + $0x154] sm:$0xf] }
 0x29d   : > { %3595 = vmatmul.bf16.gmra.mxu0 %v4923_v47  ;;  %7505 = vst [vmem:[#allocation50_spill] sm:$0xff] %v6736_v35  ;;  %v4935_v47 = vor.u32 %v5246_v19, %v4932_v37  ;;  %v6749_v35 = vpop.f32.mrf.mxu0  ;;  %v4944_v19 = vld [vmem:[#allocation2 + $0x174] sm:$0xf0] }
 0x29f   : > { %3629 = vmatmul.bf16.vlgmr.msra.gmra.mxu1 %v4795_v1  ;;  %v4807_v1 = vor.u32 %v5215_v3, %v4806_v59  ;;  %v5218_v3 = vld [vmem:[#allocation2 + $0x70] sm:$0xf0] }
 0x2a3   : > { %v2435_v20 = vpop.f32.mrf.mxu3 }
 0x2a4   : > { %v6739_v16 = vadd.f32 %v2435_v20, %v6349_v14  ;;  %v6744_v17 = vpop.f32.mrf.mxu1 }
 0x2a5   : > { %7506 = vst [vmem:[#allocation51_spill] sm:$0xff] %v6744_v17  ;;  %v5287_v17 = vld [vmem:[%s7431_s7 + $0x28] sm:$0xff]  ;;  %v6760_v37 = vpop.f32.mrf.mxu0 }
 0x2a6   : > { %3928 = vmatpush.bf16.msra.mxu2 %v5287_v17 }
 0x2a8   : > { %2477 = vmatmul.bf16.gmra.mxu3 %v6585_v23 }
 0x2ab   : > { %v2438_v32 = vpop.f32.mrf.mxu3 }
 0x2ac   : > { %v6747_v44 = vadd.f32 %v2438_v32, %v6359_v49  ;;  %v6754_v23 = vpop.f32.mrf.mxu1  ;;  %v5249_v49 = vld [vmem:[#allocation2 + $0x16c] sm:$0xf] }
 0x2ad   : > { %3600 = vmatmul.bf16.gmra.mxu0 %v4935_v47  ;;  %7507 = vst [vmem:[#allocation52_spill] sm:$0xff] %v6754_v23  ;;  %v4947_v47 = vor.u32 %v5249_v49, %v4944_v19  ;;  %v4956_v49 = vld [vmem:[#allocation2 + $0x18c] sm:$0xf0] }
 0x2af   : > { %3634 = vmatmul.bf16.gmra.mxu1 %v4807_v1 }
 0x2b3   : > { %v2440_v14 = vpop.f32.mrf.mxu3 }
 0x2b4   : > { %v6752_v20 = vadd.f32 %v2440_v14, %v6363_v33  ;;  %v4818_v33 = vld [vmem:[#allocation2 + $0x68] sm:$0xf]  ;;  %v5258_v14 = vld [vmem:[%s7428_s4 + $0x180] sm:$0xff]  ;;  %v6768_v17 = vpop.f32.mrf.mxu1 }
 0x2b5   : > { %v4819_v1 = vor.u32 %v5218_v3, %v4818_v33  ;;  %7508 = vst [vmem:[#allocation53_spill] sm:$0xff] %v6768_v17  ;;  %3450 = vmatpush.bf16.msra.mxu3 %v5258_v14  ;;  %v5221_v3 = vld [vmem:[#allocation2 + $0x88] sm:$0xf0] }
 0x2b8   : > { %2482 = vmatmul.bf16.gmra.mxu3 %v6610_v10  ;;  %v6770_v10 = vpop.f32.mrf.mxu0 }
 0x2bb   : > { %v2443_v32 = vpop.f32.mrf.mxu3 }
 0x2bc   : > { %v6763_v59 = vadd.f32 %v2443_v32, %v6373_v34  ;;  %v5252_v34 = vld [vmem:[#allocation2 + $0x184] sm:$0xf]  ;;  %v6776_v19 = vpop.f32.mrf.mxu1 }
 0x2bd   : > { %3605 = vmatmul.bf16.gmra.mxu0 %v4947_v47  ;;  %7509 = vst [vmem:[#allocation54_spill] sm:$0xff] %v6776_v19  ;;  %v4959_v47 = vor.u32 %v5252_v34, %v4956_v49  ;;  %v5286_v19 = vld [vmem:[%s7431_s7 + $0x20] sm:$0xff] }
 0x2be   : > { %3929 = vmatpush.bf16.msra.mxu2 %v5286_v19 }
 0x2bf   : > { %3639 = vmatmul.bf16.gmra.mxu1 %v4819_v1  ;;  %v4830_v1 = vld [vmem:[#allocation2 + $0x80] sm:$0xf] }
 0x2c0   : > { %v6781_v14 = vpop.f32.mrf.mxu0  ;;  %v4831_v17 = vor.u32 %v5221_v3, %v4830_v1  ;;  %v4842_v3 = vld [vmem:[#allocation2 + $0x98] sm:$0xf]  ;;  %v5185_v1 = vld [vmem:[#allocation2 + $0x190] sm:$0xf0] }
 0x2c3   : > { %v2445_v23 = vpop.f32.mrf.mxu3 }
 0x2c4   : > { %v6773_v29 = vadd.f32 %v2445_v23, %v6380_v30  ;;  %v6783_v30 = vpop.f32.mrf.mxu1 }
 0x2c5   : > { %7510 = vst [vmem:[#allocation55_spill] sm:$0xff] %v6783_v30 }
 0x2c8   : > { %2487 = vmatmul.bf16.gmra.mxu3 %v6633_v24 }
 0x2cb   : > { %v2448_v32 = vpop.f32.mrf.mxu3 }
 0x2cc   : > { %v6779_v33 = vadd.f32 %v2448_v32, %v6390_v8  ;;  %v5224_v8 = vld [vmem:[#allocation2 + $0xa0] sm:$0xf0] }
 0x2cd   : > { %3610 = vmatmul.bf16.gmra.mxu0 %v4959_v47  ;;  %v4843_v32 = vor.u32 %v5224_v8, %v4842_v3  ;;  %v5285_v3 = vld [vmem:[%s7431_s7 + $0x18] sm:$0xff] }
 0x2ce   : > { %3930 = vmatpush.bf16.msra.mxu2 %v5285_v3  ;;  %v4798_v3 = vld [vmem:[#allocation2 + $0x48] sm:$0xf] }
 0x2cf   : > { %3644 = vmatmul.bf16.gmra.mxu1 %v4831_v17  ;;  %v6795_v17 = vpop.f32.mrf.mxu1 }
 0x2d0   : > { %7512 = vst [vmem:[#allocation57_spill] sm:$0xff] %v6795_v17 }
 0x2d3   : > { %v2450_v23 = vpop.f32.mrf.mxu3 }
 0x2d4   : > { %v6786_v24 = vadd.f32 %v2450_v23, %v6401_v11  ;;  %v4530_v11 = vld [vmem:[#allocation2 + $0x188] sm:$0xf] }
 0x2d5   : > { %v4531_v30 = vor.u32 %v5185_v1, %v4530_v11 }
 0x2d7   : > { %v6800_v19 = vpop.f32.mrf.mxu1 }
 0x2d8   : > { %2492 = vmatmul.bf16.gmra.mxu3 %v6658_v46  ;;  %7513 = vst [vmem:[#allocation58_spill] sm:$0xff] %v6800_v19  ;;  %v5227_v46 = vld [vmem:[#allocation2 + $0xb8] sm:$0xf0]  ;;  %v5214_v19 = vld [vmem:[#allocation2 + $0x50] sm:$0xf0] }
 0x2db   : > { %v2453_v34 = vpop.f32.mrf.mxu3 }
 0x2dc   : > { %v6793_v49 = vadd.f32 %v2453_v34, %v6418_v12  ;;  %v4854_v34 = vld [vmem:[#allocation2 + $0xb0] sm:$0xf] }
 0x2de   : > { %7511 = vst [vmem:[#allocation56_spill] sm:$0xff] %v6793_v49  ;;  %v4855_v49 = vor.u32 %v5227_v46, %v4854_v34  ;;  %v4866_v46 = vld [vmem:[#allocation2 + $0xc8] sm:$0xf] }
 0x2df   : > { %3649 = vmatmul.bf16.gmra.mxu1 %v4843_v32  ;;  %v6805_v8 = vpop.f32.mrf.mxu1  ;;  %v5211_v32 = vld [vmem:[#allocation2 + $0x38] sm:$0xf0] }
 0x2e0   : > { %7514 = vst [vmem:[#allocation59_spill] sm:$0xff] %v6805_v8 }
 0x2e3   : > { %v2455_v47 = vpop.f32.mrf.mxu3 }
 0x2e4   : > { %v6798_v23 = vadd.f32 %v2455_v47, %v6433_v55 }
 0x2e8   : > { %2497 = vmatmul.bf16.gmra.mxu3 %v4531_v30  ;;  %v4786_v30 = vld [vmem:[#allocation2 + $0x30] sm:$0xf] }
 0x2e9   : > { %v4787_v11 = vor.u32 %v5211_v32, %v4786_v30  ;;  %v5233_v32 = vld [vmem:[#allocation2 + $0xe8] sm:$0xf0] }
 0x2eb   : > { %v2458_v0 = vpop.f32.mrf.mxu3 }
 0x2ec   : > { %v6803_v12 = vadd.f32 %v2458_v0, %v6452_v25  ;;  %v5230_v25 = vld [vmem:[#allocation2 + $0xd0] sm:$0xf0]  ;;  %v6813_v0 = vpop.f32.mrf.mxu1 }
 0x2ed   : > { %7515 = vst [vmem:[#allocation60_spill] sm:$0xff] %v6813_v0  ;;  %v4867_v34 = vor.u32 %v5230_v25, %v4866_v46  ;;  %v5217_v25 = vld [vmem:[#allocation2 + $0x68] sm:$0xf0] }
 0x2ef   : > { %3654 = vmatmul.bf16.gmra.mxu1 %v4855_v49 }
 0x2f3   : > { %v2460_v55 = vpop.f32.mrf.mxu3 }
 0x2f4   : > { %v6811_v47 = vadd.f32 %v2460_v55, %v6464_v36  ;;  %v6821_v36 = vpop.f32.mrf.mxu1  ;;  %v4799_v55 = vor.u32 %v5214_v19, %v4798_v3  ;;  %v4810_v19 = vld [vmem:[#allocation2 + $0x60] sm:$0xf]  ;;  %v5236_v3 = vld [vmem:[#allocation2 + $0x100] sm:$0xf0] }
 0x2f5   : > { %7516 = vst [vmem:[#allocation61_spill] sm:$0xff] %v6821_v36  ;;  %v5220_v36 = vld [vmem:[#allocation2 + $0x80] sm:$0xf0] }
 0x2f8   : > { %3451 = vmatmul.bf16.vlgmr.msra.gmra.mxu3 %v4787_v11 }
 0x2fb   : > { %v2463_v1 = vpop.f32.mrf.mxu3 }
 0x2fc   : > { %v6816_v49 = vadd.f32 %v2463_v1, %v6477_v26  ;;  %v4878_v26 = vld [vmem:[#allocation2 + $0xe0] sm:$0xf]  ;;  %v6826_v0 = vpop.f32.mrf.mxu1 }
 0x2fd   : > { %v4879_v1 = vor.u32 %v5233_v32, %v4878_v26  ;;  %7518 = vst [vmem:[#allocation63_spill] sm:$0xff] %v6826_v0 }
 0x2ff   : > { %3659 = vmatmul.bf16.gmra.mxu1 %v4867_v34  ;;  %v4811_v34 = vor.u32 %v5217_v25, %v4810_v19  ;;  %v6844_v25 = vpop.f32.mrf.mxu2  ;;  %v5239_v19 = vld [vmem:[#allocation2 + $0x118] sm:$0xf0] }
 0x303   : > { %v2465_v8 = vpop.f32.mrf.mxu3 }
 0x304   : > { %v6819_v17 = vadd.f32 %v2465_v8, %v6484_v41  ;;  %v5284_v41 = vld [vmem:[%s7431_s7 + $0x10] sm:$0xff] }
 0x305   : > { %3931 = vmatpush.bf16.msra.mxu2 %v5284_v41  ;;  %v4822_v41 = vld [vmem:[#allocation2 + $0x78] sm:$0xf] }
 0x308   : > { %3456 = vmatmul.bf16.gmra.mxu3 %v4799_v55 }
 0x30b   : > { %v2468_v30 = vpop.f32.mrf.mxu3 }
 0x30c   : > { %v6824_v11 = vadd.f32 %v2468_v30, %v6494_v13  ;;  %v6834_v13 = vpop.f32.mrf.mxu1  ;;  %v4890_v30 = vld [vmem:[#allocation2 + $0xf8] sm:$0xf] }
 0x30d   : > { %7520 = vst [vmem:[#allocation65_spill] sm:$0xff] %v6834_v13  ;;  %v4891_v26 = vor.u32 %v5236_v3, %v4890_v30 }
 0x30e   : > { %7517 = vst [vmem:[#allocation62_spill] sm:$0xff] %v6824_v11 }
 0x30f   : > { %3664 = vmatmul.bf16.gmra.mxu1 %v4879_v1 }
 0x313   : > { %v2470_v8 = vpop.f32.mrf.mxu3 }
 0x314   : > { %v6832_v46 = vadd.f32 %v2470_v8, %v6499_v27  ;;  %v6839_v1 = vpop.f32.mrf.mxu1  ;;  %v4823_v8 = vor.u32 %v5220_v36, %v4822_v41  ;;  %v5223_v36 = vld [vmem:[#allocation2 + $0x98] sm:$0xf0] }
 0x315   : > { %7522 = vst [vmem:[#allocation67_spill] sm:$0xff] %v6839_v1  ;;  %v4914_v1 = vld [vmem:[#allocation2 + $0x128] sm:$0xf] }
 0x316   : > { %7519 = vst [vmem:[#allocation64_spill] sm:$0xff] %v6832_v46  ;;  %v5251_v46 = vld [vmem:[#allocation2 + $0x178] sm:$0xf0] }
 0x318   : > { %3461 = vmatmul.bf16.gmra.mxu3 %v4811_v34 }
 0x31b   : > { %v2473_v55 = vpop.f32.mrf.mxu3 }
 0x31c   : > { %v6837_v32 = vadd.f32 %v2473_v55, %v6509_v42  ;;  %v4902_v55 = vld [vmem:[#allocation2 + $0x110] sm:$0xf]  ;;  %v6849_v3 = vpop.f32.mrf.mxu1 }
 0x31d   : > { %7525 = vst [vmem:[#allocation70_spill] sm:$0xff] %v6849_v3  ;;  %v4903_v30 = vor.u32 %v5239_v19, %v4902_v55  ;;  %v5242_v3 = vld [vmem:[#allocation2 + $0x130] sm:$0xf0] }
 0x31e   : > { %7521 = vst [vmem:[#allocation66_spill] sm:$0xff] %v6837_v32  ;;  %v4915_v13 = vor.u32 %v5242_v3, %v4914_v1  ;;  %v4950_v32 = vld [vmem:[#allocation2 + $0x170] sm:$0xf] }
 0x31f   : > { %3669 = vmatmul.bf16.gmra.mxu1 %v4891_v26  ;;  %v6851_v26 = vpop.f32.mrf.mxu2 }
 0x323   : > { %v2475_v0 = vpop.f32.mrf.mxu3 }
 0x324   : > { %v6842_v27 = vadd.f32 %v2475_v0, %v6519_v61  ;;  %v5283_v61 = vld [vmem:[%s7431_s7 + $0x8] sm:$0xff] }
 0x325   : > { %3932 = vmatpush.bf16.msra.mxu2 %v5283_v61 }
 0x326   : > { %7523 = vst [vmem:[#allocation68_spill] sm:$0xff] %v6842_v27 }
 0x327   : > { %v6861_v19 = vpop.f32.mrf.mxu2 }
 0x328   : > { %3466 = vmatmul.bf16.gmra.mxu3 %v4823_v8  ;;  %v4834_v8 = vld [vmem:[#allocation2 + $0x90] sm:$0xf] }
 0x32b   : > { %v2478_v34 = vpop.f32.mrf.mxu3 }
 0x32c   : > { %v6847_v42 = vadd.f32 %v2478_v34, %v6530_v39  ;;  %v4835_v39 = vor.u32 %v5223_v36, %v4834_v8  ;;  %v6859_v34 = vpop.f32.mrf.mxu1  ;;  %v4846_v8 = vld [vmem:[#allocation2 + $0xa8] sm:$0xf] }
 0x32d   : > { %7527 = vst [vmem:[#allocation72_spill] sm:$0xff] %v6859_v34  ;;  %v4926_v34 = vld [vmem:[#allocation2 + $0x140] sm:$0xf] }
 0x32e   : > { %7524 = vst [vmem:[#allocation69_spill] sm:$0xff] %v6847_v42 }
 0x32f   : > { %3674 = vmatmul.bf16.gmra.mxu1 %v4903_v30  ;;  %v6871_v36 = vpop.f32.mrf.mxu2 }
 0x333   : > { %v2480_v0 = vpop.f32.mrf.mxu3 }
 0x334   : > { %v6857_v41 = vadd.f32 %v2480_v0, %v6537_v18  ;;  %v6866_v42 = vpop.f32.mrf.mxu1  ;;  %v5226_v0 = vld [vmem:[#allocation2 + $0xb0] sm:$0xf0] }
 0x336   : > { %7526 = vst [vmem:[#allocation71_spill] sm:$0xff] %v6857_v41  ;;  %v5245_v41 = vld [vmem:[#allocation2 + $0x148] sm:$0xf0] }
 0x337   : > { %v6878_v3 = vpop.f32.mrf.mxu2 }
 0x338   : > { %3471 = vmatmul.bf16.gmra.mxu3 %v4835_v39  ;;  %v4847_v39 = vor.u32 %v5226_v0, %v4846_v8 }
 0x33b   : > { %v2483_v55 = vpop.f32.mrf.mxu3 }
 0x33c   : > { %v6864_v30 = vadd.f32 %v2483_v55, %v6590_v54  ;;  %v6873_v27 = vpop.f32.mrf.mxu1 }
 0x33e   : > { %7528 = vst [vmem:[#allocation73_spill] sm:$0xff] %v6864_v30 }
 0x33f   : > { %3679 = vmatmul.bf16.gmra.mxu1 %v4915_v13  ;;  %v4927_v13 = vor.u32 %v5245_v41, %v4926_v34  ;;  %v4938_v41 = vld [vmem:[#allocation2 + $0x158] sm:$0xf]  ;;  %v5248_v34 = vld [vmem:[#allocation2 + $0x160] sm:$0xf0] }
 0x343   : > { %v2485_v18 = vpop.f32.mrf.mxu3 }
 0x344   : > { %v6869_v61 = vadd.f32 %v2485_v18, %v6603_v40  ;;  %v5282_v40 = vld [vmem:[%s7431_s7] sm:$0xff]  ;;  %v5229_v18 = vld [vmem:[#allocation2 + $0xc8] sm:$0xf0]  ;;  %v6886_v8 = vpop.f32.mrf.mxu1 }
 0x345   : > { %3933 = vmatpush.bf16.msra.mxu2 %v5282_v40 }
 0x346   : > { %7529 = vst [vmem:[#allocation74_spill] sm:$0xff] %v6869_v61 }
 0x348   : > { %3476 = vmatmul.bf16.gmra.mxu3 %v4847_v39  ;;  %v4858_v39 = vld [vmem:[#allocation2 + $0xc0] sm:$0xf] }
 0x349   : > { %v4859_v61 = vor.u32 %v5229_v18, %v4858_v39 }
 0x34b   : > { %v2488_v54 = vpop.f32.mrf.mxu3 }
 0x34c   : > { %v6876_v1 = vadd.f32 %v2488_v54, %v6619_v45  ;;  %v6888_v45 = vpop.f32.mrf.mxu2  ;;  %v6893_v40 = vpop.f32.mrf.mxu1 }
 0x34e   : > { %7530 = vst [vmem:[#allocation75_spill] sm:$0xff] %v6876_v1  ;;  %v4939_v1 = vor.u32 %v5248_v34, %v4938_v41 }
 0x34f   : > { %3684 = vmatmul.bf16.gmra.mxu1 %v4927_v13 }
 0x353   : > { %v2490_v55 = vpop.f32.mrf.mxu3 }
 0x354   : > { %v6884_v0 = vadd.f32 %v2490_v55, %v6625_v22  ;;  %v6895_v30 = vpop.f32.mrf.mxu2  ;;  %v5232_v55 = vld [vmem:[#allocation2 + $0xe0] sm:$0xf0]  ;;  %v6900_v39 = vpop.f32.mrf.mxu1 }
 0x356   : > { %7531 = vst [vmem:[#allocation76_spill] sm:$0xff] %v6884_v0 }
 0x358   : > { %3481 = vmatmul.bf16.gmra.mxu3 %v4859_v61  ;;  %v4870_v61 = vld [vmem:[#allocation2 + $0xd8] sm:$0xf] }
 0x359   : > { %v4871_v18 = vor.u32 %v5232_v55, %v4870_v61  ;;  %v4882_v55 = vld [vmem:[#allocation2 + $0xf0] sm:$0xf] }
 0x35b   : > { %v2493_v54 = vpop.f32.mrf.mxu3 }
 0x35c   : > { %v6891_v13 = vadd.f32 %v2493_v54, %v6638_v2  ;;  %v6905_v34 = vpop.f32.mrf.mxu2  ;;  %v6907_v54 = vpop.f32.mrf.mxu1 }
 0x35e   : > { %7532 = vst [vmem:[#allocation77_spill] sm:$0xff] %v6891_v13 }
 0x35f   : > { %3689 = vmatmul.bf16.gmra.mxu1 %v4939_v1  ;;  %v4951_v1 = vor.u32 %v5251_v46, %v4950_v32 }
 0x363   : > { %v2495_v22 = vpop.f32.mrf.mxu3 }
 0x364   : > { %v6898_v0 = vadd.f32 %v2495_v22, %v6651_v60  ;;  %v5235_v60 = vld [vmem:[#allocation2 + $0xf8] sm:$0xf0]  ;;  %v6920_v11 = vpop.f32.mrf.mxu1 }
 0x365   : > { %v4883_v61 = vor.u32 %v5235_v60, %v4882_v55 }
 0x366   : > { %7533 = vst [vmem:[#allocation78_spill] sm:$0xff] %v6898_v0  ;;  %v2673_v0 = vadd.f32 %v6299_v57, %v6687_v53 }
 0x368   : > { %3486 = vmatmul.bf16.gmra.mxu3 %v4871_v18  ;;  %v6912_v18 = vpop.f32.mrf.mxu2  ;;  %v2762_v32 = vadd.f32 %v6547_v56, %v2673_v0  ;;  %v6932_v56 = vld [vmem:[%s7429_s5] ss:$0 sm:$0xff]  ;;  %v5238_v0 = vld [vmem:[#allocation2 + $0x110] sm:$0xf0] }
 0x36a   : > { %v2851_v57 = vadd.f32 %v6557_v62, %v2762_v32  ;;  %v6941_v62 = vld [vmem:[%s7430_s6] ss:$0 sm:$0xff] }
 0x36b   : > { %v2498_v2 = vpop.f32.mrf.mxu3 }
 0x36c   : > { %v6903_v41 = vadd.f32 %v2498_v2, %v6667_v38  ;;  %v4962_v38 = vld [vmem:[#allocation2 + $0x188] sm:$0xf]  ;;  %v5254_v2 = vld [vmem:[#allocation2 + $0x190] sm:$0xf0]  ;;  %v6945_v32 = vpop.f32.mrf.mxu1 }
 0x36e   : > { %7534 = vst [vmem:[#allocation79_spill] sm:$0xff] %v6903_v41  ;;  %v6916_v41 = vpop.f32.mrf.mxu0 }
 0x36f   : > { %3694 = vmatmul.bf16.gmra.mxu1 %v4951_v1 }
 0x370   : > { %v6926_v53 = vpop.f32.mrf.mxu2 }
 0x373   : > { %v2500_v13 = vpop.f32.mrf.mxu3 }
 0x374   : > { %v6910_v22 = vadd.f32 %v2500_v13, %v6675_v58  ;;  %v4963_v58 = vor.u32 %v5254_v2, %v4962_v38  ;;  %v2675_v13 = vadd.f32 %v6320_v28, %v6704_v15  ;;  %v4894_v15 = vld [vmem:[#allocation2 + $0x108] sm:$0xf] }
 0x376   : > { %v2764_v55 = vadd.f32 %v6559_v21, %v2675_v13  ;;  %v6935_v28 = vpop.f32.mrf.mxu0 }
 0x378   : > { %3491 = vmatmul.bf16.gmra.mxu3 %v4883_v61  ;;  %v2853_v21 = vadd.f32 %v6574_v52, %v2764_v55  ;;  %v7535_v55 = vld [vmem:[#allocation6_spill] sm:$0xff] }
 0x37b   : > { %v3452_v46 = vpop.f32.mrf.mxu3 }
 0x37c   : > { %v3542_v1 = vadd.f32 %v6728_v7, %v3452_v46  ;;  %v4895_v46 = vor.u32 %v5238_v0, %v4894_v15  ;;  %v7536_v15 = vld [vmem:[#allocation27_spill] sm:$0xff] }
 0x37e   : > { %v3631_v60 = vadd.f32 %v6866_v42, %v3542_v1 }
 0x37f   : > { %3699 = vmatmul.bf16.gmra.mxu1 %v4963_v58 }
 0x380   : > { %v3710_v61 = vadd.f32 %v3631_v60, %v2851_v57  ;;  %v6951_v60 = vpop.f32.mrf.mxu2 }
 0x382   : > { %v3746_v42 = vmul.f32 %v6932_v56, %v3710_v61 }
 0x383   : > { %v3454_v7 = vpop.f32.mrf.mxu3 }
 0x384   : > { %v3544_v38 = vadd.f32 %v6741_v48, %v3454_v7  ;;  %v2678_v48 = vadd.f32 %v6334_v4, %v6712_v51  ;;  %v3782_v58 = vadd.f32 %v6941_v62, %v3746_v42  ;;  %v2680_v7 = vadd.f32 %v7535_v55, %v6720_v43  ;;  %v7539_v55 = vld [vmem:[#allocation7_spill] sm:$0xff] }
 0x386   : > { %v3633_v2 = vadd.f32 %v6873_v27, %v3544_v38  ;;  %v2767_v61 = vadd.f32 %v6570_v50, %v2678_v48  ;;  %v3814_v0 = vmax.f32 %v3782_v58, 0.0  ;;  %v6959_v38 = vpop.f32.mrf.mxu0  ;;  %v4906_v58 = vld [vmem:[#allocation2 + $0x120] sm:$0xf] }
 0x388   : > { %v3711_v1 = vadd.f32 %v3633_v2, %v2853_v21  ;;  %3496 = vmatmul.bf16.gmra.mxu3 %v4895_v46  ;;  %v2856_v42 = vadd.f32 %v7536_v15, %v2767_v61  ;;  %v6962_v2 = vpop.f32.mrf.mxu1  ;;  %v7537_v46 = vld [vmem:[#allocation25_spill] sm:$0xff]  ;;  %v6966_v43 = vpop.f32.mrf.mxu2 }
 0x389   : > { %v2769_v50 = vadd.f32 %v7537_v46, %v2680_v7 }
 0x38a   : > { %v3747_v13 = vmul.f32 %v6932_v56, %v3711_v1 }
 0x38b   : > { %v3457_v57 = vpop.f32.mrf.mxu3 }
 0x38c   : > { %v3783_v52 = vadd.f32 %v6941_v62, %v3747_v13  ;;  %v3547_v27 = vadd.f32 %v6749_v35, %v3457_v57  ;;  %v5241_v35 = vld [vmem:[#allocation2 + $0x128] sm:$0xf0]  ;;  %v7538_v57 = vld [vmem:[#allocation30_spill] sm:$0xff] }
 0x38e   : > { %v3815_v4 = vmax.f32 %v3783_v52, 0.0  ;;  %v3636_v51 = vadd.f32 %v6886_v8, %v3547_v27  ;;  %v2858_v52 = vadd.f32 %v7538_v57, %v2769_v50  ;;  %v4907_v27 = vor.u32 %v5241_v35, %v4906_v58  ;;  %v7542_v57 = vld [vmem:[#allocation33_spill] sm:$0xff] }
 0x390   : > { %v3846_v21 = vpack.c.bf16 %v3815_v4, %v3814_v0  ;;  %v3712_v48 = vadd.f32 %v3636_v51, %v2856_v42  ;;  %v2683_v0 = vadd.f32 %v7539_v55, %v6731_v5  ;;  %v6973_v4 = vpop.f32.mrf.mxu0  ;;  %v6977_v15 = vpop.f32.mrf.mxu1 }
 0x391   : > { %v6985_v58 = vpop.f32.mrf.mxu2 }
 0x392   : > { %3934 = vmatmul.bf16.vlgmr.msra.gmra.mxu2 %v3846_v21  ;;  %v3748_v8 = vmul.f32 %v6932_v56, %v3712_v48  ;;  %v7540_v21 = vld [vmem:[#allocation28_spill] sm:$0xff] }
 0x393   : > { %v3459_v1 = vpop.f32.mrf.mxu3  ;;  %v2772_v46 = vadd.f32 %v7540_v21, %v2683_v0  ;;  %v7541_v48 = vld [vmem:[#allocation8_spill] sm:$0xff] }
 0x394   : > { %v3549_v13 = vadd.f32 %v6760_v37, %v3459_v1  ;;  %v3784_v37 = vadd.f32 %v6941_v62, %v3748_v8  ;;  %v2685_v5 = vadd.f32 %v7541_v48, %v6739_v16 }
 0x395   : > { %v2861_v8 = vadd.f32 %v7542_v57, %v2772_v46 }
 0x396   : > { %v3638_v61 = vadd.f32 %v6893_v40, %v3549_v13  ;;  %v3816_v35 = vmax.f32 %v3784_v37, 0.0 }
 0x398   : > { %v3713_v7 = vadd.f32 %v3638_v61, %v2858_v52  ;;  %3501 = vmatmul.bf16.gmra.mxu3 %v4907_v27  ;;  %v7543_v61 = vld [vmem:[#allocation31_spill] sm:$0xff]  ;;  %v6989_v0 = vpop.f32.mrf.mxu0  ;;  %v6992_v16 = vpop.f32.mrf.mxu1 }
 0x399   : > { %v2774_v27 = vadd.f32 %v7543_v61, %v2685_v5  ;;  %v6999_v5 = vpop.f32.mrf.mxu2 }
 0x39a   : > { %v3749_v51 = vmul.f32 %v6932_v56, %v3713_v7  ;;  %v5244_v7 = vld [vmem:[#allocation2 + $0x140] sm:$0xf0] }
 0x39b   : > { %v3462_v42 = vpop.f32.mrf.mxu3 }
 0x39c   : > { %v3552_v50 = vadd.f32 %v6770_v10, %v3462_v42  ;;  %v3785_v40 = vadd.f32 %v6941_v62, %v3749_v51  ;;  %v2863_v42 = vadd.f32 %v6631_v6, %v2774_v27 }
 0x39e   : > { %v3641_v1 = vadd.f32 %v6900_v39, %v3552_v50  ;;  %v3817_v13 = vmax.f32 %v3785_v40, 0.0  ;;  %v4918_v39 = vld [vmem:[#allocation2 + $0x138] sm:$0xf]  ;;  %v7544_v50 = vld [vmem:[#allocation9_spill] sm:$0xff] }
 0x39f   : > { %v4919_v46 = vor.u32 %v5244_v7, %v4918_v39  ;;  %v2688_v40 = vadd.f32 %v7544_v50, %v6747_v44  ;;  %v7547_v39 = vld [vmem:[#allocation34_spill] sm:$0xff] }
 0x3a0   : > { %v3847_v52 = vpack.c.bf16 %v3817_v13, %v3816_v35  ;;  %v3714_v55 = vadd.f32 %v3641_v1, %v2861_v8  ;;  %v7545_v8 = vld [vmem:[#allocation10_spill] sm:$0xff] }
 0x3a1   : > { %v2777_v13 = vadd.f32 %v6621_v31, %v2688_v40  ;;  %v2690_v44 = vadd.f32 %v7545_v8, %v6752_v20  ;;  %v5247_v20 = vld [vmem:[#allocation2 + $0x158] sm:$0xf0] }
 0x3a2   : > { %3939 = vmatmul.bf16.gmra.mxu2 %v3847_v52  ;;  %v3750_v37 = vmul.f32 %v6932_v56, %v3714_v55  ;;  %v7011_v55 = vpop.f32.mrf.mxu1 }
 0x3a3   : > { %v3464_v10 = vpop.f32.mrf.mxu3  ;;  %v2779_v31 = vadd.f32 %v7547_v39, %v2690_v44  ;;  %v7549_v44 = vld [vmem:[#allocation36_spill] sm:$0xff] }
 0x3a4   : > { %v3554_v51 = vadd.f32 %v6781_v14, %v3464_v10  ;;  %v3786_v14 = vadd.f32 %v6941_v62, %v3750_v37  ;;  %v7546_v10 = vld [vmem:[#allocation38_spill] sm:$0xff] }
 0x3a5   : > { %v2866_v7 = vadd.f32 %v7546_v10, %v2777_v13  ;;  %v2868_v50 = vadd.f32 %v6663_v9, %v2779_v31 }
 0x3a6   : > { %v3643_v21 = vadd.f32 %v6907_v54, %v3554_v51  ;;  %v7006_v54 = vpop.f32.mrf.mxu0  ;;  %v3818_v61 = vmax.f32 %v3786_v14, 0.0  ;;  %v7548_v14 = vld [vmem:[#allocation11_spill] sm:$0xff] }
 0x3a8   : > { %v3715_v48 = vadd.f32 %v3643_v21, %v2863_v42  ;;  %3506 = vmatmul.bf16.gmra.mxu3 %v4919_v46  ;;  %v4930_v21 = vld [vmem:[#allocation2 + $0x150] sm:$0xf] }
 0x3aa   : > { %v3751_v1 = vmul.f32 %v6932_v56, %v3715_v48  ;;  %v4931_v48 = vor.u32 %v5247_v20, %v4930_v21 }
 0x3ab   : > { %v3467_v35 = vpop.f32.mrf.mxu3 }
 0x3ac   : > { %v3557_v57 = vadd.f32 %v6916_v41, %v3467_v35  ;;  %v3787_v6 = vadd.f32 %v6941_v62, %v3751_v1  ;;  %v7015_v41 = vpop.f32.mrf.mxu2  ;;  %v2693_v35 = vadd.f32 %v7548_v14, %v6763_v59 }
 0x3ae   : > { %v3646_v52 = vadd.f32 %v6920_v11, %v3557_v57  ;;  %v3819_v27 = vmax.f32 %v3787_v6, 0.0  ;;  %v7021_v1 = vpop.f32.mrf.mxu0  ;;  %v7025_v57 = vpop.f32.mrf.mxu1 }
 0x3b0   : > { %v3848_v51 = vpack.c.bf16 %v3819_v27, %v3818_v61  ;;  %v3716_v37 = vadd.f32 %v3646_v52, %v2866_v7  ;;  %v2782_v52 = vadd.f32 %v7549_v44, %v2693_v35  ;;  %v7550_v27 = vld [vmem:[#allocation12_spill] sm:$0xff]  ;;  %v7552_v35 = vld [vmem:[#allocation13_spill] sm:$0xff]  ;;  %v5255_v44 = vld [vmem:[#allocation2 + $0x19c] sm:$0xf] }
 0x3b1   : > { %v2695_v59 = vadd.f32 %v7550_v27, %v6773_v29 }
 0x3b2   : > { %3944 = vmatmul.bf16.gmra.mxu2 %v3848_v51  ;;  %v3752_v11 = vmul.f32 %v6932_v56, %v3716_v37  ;;  %v2871_v39 = vadd.f32 %v6844_v25, %v2782_v52 }
 0x3b3   : > { %v3469_v42 = vpop.f32.mrf.mxu3 }
 0x3b4   : > { %v3559_v46 = vadd.f32 %v6935_v28, %v3469_v42  ;;  %v3788_v28 = vadd.f32 %v6941_v62, %v3752_v11  ;;  %v7032_v61 = vpop.f32.mrf.mxu2  ;;  %v7551_v42 = vld [vmem:[#allocation39_spill] sm:$0xff]  ;;  %v4942_v11 = vld [vmem:[#allocation2 + $0x168] sm:$0xf] }
 0x3b5   : > { %v2784_v21 = vadd.f32 %v7551_v42, %v2695_v59 }
 0x3b6   : > { %v3648_v40 = vadd.f32 %v6945_v32, %v3559_v46  ;;  %v3820_v7 = vmax.f32 %v3788_v28, 0.0  ;;  %v7038_v37 = vpop.f32.mrf.mxu0 }
 0x3b8   : > { %v3717_v13 = vadd.f32 %v3648_v40, %v2868_v50  ;;  %3511 = vmatmul.bf16.gmra.mxu3 %v4931_v48  ;;  %v5250_v50 = vld [vmem:[#allocation2 + $0x170] sm:$0xf0]  ;;  %v2873_v40 = vadd.f32 %v6851_v26, %v2784_v21 }
 0x3b9   : > { %v4943_v48 = vor.u32 %v5250_v50, %v4942_v11 }
 0x3ba   : > { %v3753_v6 = vmul.f32 %v6932_v56, %v3717_v13  ;;  %v2698_v13 = vadd.f32 %v7552_v35, %v6779_v33 }
 0x3bb   : > { %v3472_v8 = vpop.f32.mrf.mxu3 }
 0x3bc   : > { %v3562_v9 = vadd.f32 %v6959_v38, %v3472_v8  ;;  %v3789_v32 = vadd.f32 %v6941_v62, %v3753_v6  ;;  %v7041_v38 = vpop.f32.mrf.mxu1  ;;  %v7047_v14 = vpop.f32.mrf.mxu2  ;;  %v2787_v27 = vadd.f32 %v6669_v63, %v2698_v13 }
 0x3be   : > { %v3651_v10 = vadd.f32 %v6962_v2, %v3562_v9  ;;  %v3821_v51 = vmax.f32 %v3789_v32, 0.0  ;;  %v7053_v52 = vpop.f32.mrf.mxu0  ;;  %v4974_v32 = vld [vmem:[#allocation2 + $0x1a0] sm:$0xf] }
 0x3c0   : > { %v3849_v31 = vpack.c.bf16 %v3821_v51, %v3820_v7  ;;  %v3718_v46 = vadd.f32 %v3651_v10, %v2871_v39  ;;  %v7553_v51 = vld [vmem:[#allocation14_spill] sm:$0xff] }
 0x3c1   : > { %v2700_v39 = vadd.f32 %v7553_v51, %v6786_v24 }
 0x3c2   : > { %3949 = vmatmul.bf16.gmra.mxu2 %v3849_v31  ;;  %v3754_v2 = vmul.f32 %v6932_v56, %v3718_v46  ;;  %v2876_v46 = vadd.f32 %v6861_v19, %v2787_v27  ;;  %v7558_v27 = vld [vmem:[#allocation16_spill] sm:$0xff] }
 0x3c3   : > { %v3474_v20 = vpop.f32.mrf.mxu3 }
 0x3c4   : > { %v3564_v29 = vadd.f32 %v6973_v4, %v3474_v20  ;;  %v3790_v8 = vadd.f32 %v6941_v62, %v3754_v2  ;;  %v4968_v4 = vld [vmem:[#allocation2 + $0x1a4] sm:$0xf0]  ;;  %v7058_v7 = vpop.f32.mrf.mxu1  ;;  %v7064_v63 = vpop.f32.mrf.mxu2  ;;  %v4954_v2 = vld [vmem:[#allocation2 + $0x180] sm:$0xf] }
 0x3c5   : > { %v4971_v26 = vor.u32 %v5255_v44, %v4968_v4 }
 0x3c6   : > { %v3653_v25 = vadd.f32 %v6977_v15, %v3564_v29  ;;  %v5257_v15 = vld [vmem:[#allocation2 + $0x1a8] sm:$0xf0]  ;;  %v3822_v42 = vmax.f32 %v3790_v8, 0.0  ;;  %v3578_v24 = vpop.f32.mrf.mxu0 }
 0x3c7   : > { %v4975_v10 = vor.u32 %v5257_v15, %v4974_v32  ;;  %3615 = vmatmul.bf16.gmra.mxu0 %v4971_v26  ;;  %v7557_v32 = vld [vmem:[#allocation43_spill] sm:$0xff] }
 0x3c8   : > { %v3719_v6 = vadd.f32 %v3653_v25, %v2873_v40  ;;  %3516 = vmatmul.bf16.gmra.mxu3 %v4943_v48  ;;  %v5253_v40 = vld [vmem:[#allocation2 + $0x188] sm:$0xf0] }
 0x3c9   : > { %3704 = vmatmul.bf16.gmra.mxu1 %v4975_v10  ;;  %v4955_v19 = vor.u32 %v5253_v40, %v4954_v2 }
 0x3ca   : > { %v3755_v28 = vmul.f32 %v6932_v56, %v3719_v6  ;;  %v7555_v6 = vld [vmem:[#allocation56_spill] sm:$0xff] }
 0x3cb   : > { %v3477_v9 = vpop.f32.mrf.mxu3 }
 0x3cc   : > { %v3567_v59 = vadd.f32 %v6989_v0, %v3477_v9  ;;  %v3791_v33 = vadd.f32 %v6941_v62, %v3755_v28  ;;  %v7554_v0 = vld [vmem:[#allocation42_spill] sm:$0xff]  ;;  %v3667_v13 = vpop.f32.mrf.mxu1  ;;  %v7556_v28 = vld [vmem:[#allocation15_spill] sm:$0xff]  ;;  %v7075_v26 = vpop.f32.mrf.mxu2 }
 0x3cd   : > { %v2789_v11 = vadd.f32 %v7554_v0, %v2700_v39  ;;  %v2703_v8 = vadd.f32 %v7556_v28, %v7555_v6  ;;  %v7559_v0 = vld [vmem:[#allocation45_spill] sm:$0xff] }
 0x3ce   : > { %v3656_v31 = vadd.f32 %v6992_v16, %v3567_v59  ;;  %v3823_v21 = vmax.f32 %v3791_v33, 0.0  ;;  %v2705_v59 = vadd.f32 %v7558_v27, %v6798_v23  ;;  %v3581_v39 = vpop.f32.mrf.mxu0  ;;  %v7563_v27 = vld [vmem:[#allocation49_spill] sm:$0xff] }
 0x3cf   : > { %v2878_v48 = vadd.f32 %v6871_v36, %v2789_v11  ;;  %v2792_v15 = vadd.f32 %v7557_v32, %v2703_v8  ;;  %v7561_v8 = vld [vmem:[#allocation47_spill] sm:$0xff] }
 0x3d0   : > { %v3850_v20 = vpack.c.bf16 %v3823_v21, %v3822_v42  ;;  %v3720_v50 = vadd.f32 %v3656_v31, %v2876_v46  ;;  %v4966_v46 = vld [vmem:[#allocation2 + $0x198] sm:$0xf]  ;;  %v2794_v11 = vadd.f32 %v7559_v0, %v2705_v59 }
 0x3d1   : > { %v2881_v31 = vadd.f32 %v6878_v3, %v2792_v15 }
 0x3d2   : > { %3954 = vmatmul.bf16.gmra.mxu2 %v3850_v20  ;;  %v3756_v16 = vmul.f32 %v6932_v56, %v3720_v50  ;;  %v5256_v20 = vld [vmem:[#allocation2 + $0x1a0] sm:$0xf0]  ;;  %v2883_v40 = vadd.f32 %v6888_v45, %v2794_v11 }
 0x3d3   : > { %v3479_v29 = vpop.f32.mrf.mxu3  ;;  %v4967_v2 = vor.u32 %v5256_v20, %v4966_v46  ;;  %v7564_v46 = vld [vmem:[#allocation19_spill] sm:$0xff] }
 0x3d4   : > { %v3569_v25 = vadd.f32 %v7006_v54, %v3479_v29  ;;  %v3792_v9 = vadd.f32 %v6941_v62, %v3756_v16  ;;  %v3670_v21 = vpop.f32.mrf.mxu1  ;;  %v7086_v23 = vpop.f32.mrf.mxu2  ;;  %v2713_v20 = vadd.f32 %v7564_v46, %v6816_v49 }
 0x3d6   : > { %v3658_v35 = vadd.f32 %v7011_v55, %v3569_v25  ;;  %v3824_v10 = vmax.f32 %v3792_v9, 0.0  ;;  %v7560_v25 = vld [vmem:[#allocation17_spill] sm:$0xff] }
 0x3d7   : > { %v2708_v16 = vadd.f32 %v7560_v25, %v6803_v12 }
 0x3d8   : > { %v3721_v44 = vadd.f32 %v3658_v35, %v2878_v48  ;;  %3521 = vmatmul.bf16.gmra.mxu3 %v4955_v19  ;;  %v3583_v35 = vpop.f32.mrf.mxu0 }
 0x3da   : > { %v3757_v4 = vmul.f32 %v6932_v56, %v3721_v44  ;;  %v2797_v44 = vadd.f32 %v7561_v8, %v2708_v16 }
 0x3db   : > { %v3482_v54 = vpop.f32.mrf.mxu3 }
 0x3dc   : > { %v3572_v36 = vadd.f32 %v7021_v1, %v3482_v54  ;;  %v3793_v55 = vadd.f32 %v6941_v62, %v3757_v4  ;;  %v7101_v15 = vpop.f32.mrf.mxu2 }
 0x3de   : > { %v3661_v33 = vadd.f32 %v7025_v57, %v3572_v36  ;;  %v3825_v51 = vmax.f32 %v3793_v55, 0.0  ;;  %v2886_v36 = vadd.f32 %v6895_v30, %v2797_v44 }
 0x3e0   : > { %v3851_v42 = vpack.c.bf16 %v3825_v51, %v3824_v10  ;;  %v3722_v50 = vadd.f32 %v3661_v33, %v2881_v31  ;;  %v3586_v10 = vpop.f32.mrf.mxu0 }
 0x3e2   : > { %3959 = vmatmul.bf16.gmra.mxu2 %v3851_v42  ;;  %v3758_v57 = vmul.f32 %v6932_v56, %v3722_v50 }
 0x3e3   : > { %v3484_v1 = vpop.f32.mrf.mxu3 }
 0x3e4   : > { %v3574_v29 = vadd.f32 %v7038_v37, %v3484_v1  ;;  %v3794_v6 = vadd.f32 %v6941_v62, %v3758_v57  ;;  %v3672_v37 = vpop.f32.mrf.mxu1  ;;  %v7109_v11 = vpop.f32.mrf.mxu2 }
 0x3e6   : > { %v3663_v3 = vadd.f32 %v7041_v38, %v3574_v29  ;;  %v7562_v38 = vld [vmem:[#allocation18_spill] sm:$0xff]  ;;  %v3826_v54 = vmax.f32 %v3794_v6, 0.0  ;;  %v7567_v6 = vld [vmem:[#allocation51_spill] sm:$0xff] }
 0x3e7   : > { %v2710_v9 = vadd.f32 %v7562_v38, %v6811_v47  ;;  %v7565_v29 = vld [vmem:[#allocation50_spill] sm:$0xff] }
 0x3e8   : > { %v3723_v48 = vadd.f32 %v3663_v3, %v2883_v40  ;;  %3526 = vmatmul.bf16.gmra.mxu3 %v4967_v2  ;;  %v2802_v2 = vadd.f32 %v7565_v29, %v2713_v20  ;;  %v3588_v40 = vpop.f32.mrf.mxu0 }
 0x3e9   : > { %v2799_v59 = vadd.f32 %v7563_v27, %v2710_v9  ;;  %v7568_v9 = vld [vmem:[#allocation62_spill] sm:$0xff] }
 0x3ea   : > { %v3759_v19 = vmul.f32 %v6932_v56, %v3723_v48  ;;  %v2891_v48 = vadd.f32 %v6912_v18, %v2802_v2 }
 0x3eb   : > { %v3487_v28 = vpop.f32.mrf.mxu3  ;;  %v2888_v47 = vadd.f32 %v6905_v34, %v2799_v59  ;;  %v7566_v34 = vld [vmem:[#allocation20_spill] sm:$0xff] }
 0x3ec   : > { %v3577_v4 = vadd.f32 %v7053_v52, %v3487_v28  ;;  %v3795_v45 = vadd.f32 %v6941_v62, %v3759_v19  ;;  %v3675_v31 = vpop.f32.mrf.mxu1  ;;  %v7119_v44 = vpop.f32.mrf.mxu2  ;;  %v7570_v59 = vld [vmem:[#allocation52_spill] sm:$0xff] }
 0x3ee   : > { %v3666_v12 = vadd.f32 %v7058_v7, %v3577_v4  ;;  %v3827_v32 = vmax.f32 %v3795_v45, 0.0 }
 0x3f0   : > { %v3852_v55 = vpack.c.bf16 %v3827_v32, %v3826_v54  ;;  %v3724_v33 = vadd.f32 %v3666_v12, %v2886_v36  ;;  %v7569_v12 = vld [vmem:[#allocation21_spill] sm:$0xff] }
 0x3f1   : > { %v2718_v54 = vadd.f32 %v7569_v12, %v7568_v9 }
 0x3f2   : > { %3964 = vmatmul.bf16.gmra.mxu2 %v3852_v55  ;;  %v3760_v42 = vmul.f32 %v6932_v56, %v3724_v33 }
 0x3f3   : > { %v3489_v52 = vpop.f32.mrf.mxu3  ;;  %v2807_v33 = vadd.f32 %v7570_v59, %v2718_v54  ;;  %v7577_v54 = vld [vmem:[#allocation68_spill] sm:$0xff] }
 0x3f4   : > { %v3579_v51 = vadd.f32 %v3578_v24, %v3489_v52  ;;  %v3796_v50 = vadd.f32 %v6941_v62, %v3760_v42  ;;  %v3677_v16 = vpop.f32.mrf.mxu1 }
 0x3f5   : > { %v2896_v20 = vadd.f32 %v6951_v60, %v2807_v33  ;;  %v7143_v60 = vld [vmem:[%s7433_s9] ss:$0 sm:$0xff] }
 0x3f6   : > { %v3668_v7 = vadd.f32 %v3667_v13, %v3579_v51  ;;  %v2715_v13 = vadd.f32 %v7566_v34, %v6819_v17  ;;  %v3828_v25 = vmax.f32 %v3796_v50, 0.0  ;;  %v7129_v51 = vpop.f32.mrf.mxu2  ;;  %v7573_v50 = vld [vmem:[#allocation53_spill] sm:$0xff] }
 0x3f8   : > { %v3725_v0 = vadd.f32 %v3668_v7, %v2888_v47  ;;  %v2804_v28 = vadd.f32 %v7567_v6, %v2715_v13 }
 0x3fa   : > { %v3761_v30 = vmul.f32 %v6932_v56, %v3725_v0  ;;  %v2893_v38 = vadd.f32 %v6926_v53, %v2804_v28  ;;  %v7571_v53 = vld [vmem:[#allocation64_spill] sm:$0xff] }
 0x3fb   : > { %v3492_v1 = vpop.f32.mrf.mxu3 }
 0x3fc   : > { %v3582_v24 = vadd.f32 %v3581_v39, %v3492_v1  ;;  %v3797_v57 = vadd.f32 %v6941_v62, %v3761_v30  ;;  %v3680_v18 = vpop.f32.mrf.mxu1 }
 0x3fe   : > { %v3671_v3 = vadd.f32 %v3670_v21, %v3582_v24  ;;  %v3829_v49 = vmax.f32 %v3797_v57, 0.0  ;;  %v3591_v21 = vpop.f32.mrf.mxu0 }
 0x400   : > { %v3853_v19 = vpack.c.bf16 %v3829_v49, %v3828_v25  ;;  %v3726_v8 = vadd.f32 %v3671_v3, %v2891_v48  ;;  %v7574_v49 = vld [vmem:[#allocation66_spill] sm:$0xff]  ;;  %v7575_v48 = vld [vmem:[#allocation23_spill] sm:$0xff] }
 0x402   : > { %3969 = vmatmul.bf16.gmra.mxu2 %v3853_v19  ;;  %v3762_v45 = vmul.f32 %v6932_v56, %v3726_v8  ;;  %v2723_v19 = vadd.f32 %v7575_v48, %v7574_v49  ;;  %v5359_v8 = vld [vmem:[%s5573_s18] sm:$0xff] }
 0x403   : > { %v3494_v39 = vpop.f32.mrf.mxu3 }
 0x404   : > { %v3584_v4 = vadd.f32 %v3583_v35, %v3494_v39  ;;  %v3798_v55 = vadd.f32 %v6941_v62, %v3762_v45  ;;  %v3682_v2 = vpop.f32.mrf.mxu1 }
 0x406   : > { %v3673_v17 = vadd.f32 %v3672_v37, %v3584_v4  ;;  %v7572_v37 = vld [vmem:[#allocation22_spill] sm:$0xff]  ;;  %v3830_v7 = vmax.f32 %v3798_v55, 0.0  ;;  %v3593_v30 = vpop.f32.mrf.mxu0 }
 0x407   : > { %v2720_v42 = vadd.f32 %v7572_v37, %v7571_v53 }
 0x408   : > { %v3727_v32 = vadd.f32 %v3673_v17, %v2893_v38 }
 0x409   : > { %v2809_v1 = vadd.f32 %v7573_v50, %v2720_v42  ;;  %v7579_v42 = vld [vmem:[#allocation55_spill] sm:$0xff] }
 0x40a   : > { %v3763_v36 = vmul.f32 %v6932_v56, %v3727_v32  ;;  %v7578_v32 = vld [vmem:[#allocation24_spill] sm:$0xff] }
 0x40b   : > { %v3497_v27 = vpop.f32.mrf.mxu3  ;;  %v2898_v13 = vadd.f32 %v6966_v43, %v2809_v1  ;;  %v7576_v43 = vld [vmem:[#allocation54_spill] sm:$0xff] }
 0x40c   : > { %v3587_v52 = vadd.f32 %v3586_v10, %v3497_v27  ;;  %v3799_v35 = vadd.f32 %v6941_v62, %v3763_v36  ;;  %v7138_v10 = vld [vmem:[%s7432_s8] ss:$0 sm:$0xff]  ;;  %v2725_v36 = vadd.f32 %v7578_v32, %v7577_v54  ;;  %v3685_v55 = vpop.f32.mrf.mxu1 }
 0x40e   : > { %v3676_v47 = vadd.f32 %v3675_v31, %v3587_v52  ;;  %v3831_v46 = vmax.f32 %v3799_v35, 0.0  ;;  %v3596_v45 = vpop.f32.mrf.mxu0 }
 0x410   : > { %v3854_v0 = vpack.c.bf16 %v3831_v46, %v3830_v7  ;;  %v3728_v29 = vadd.f32 %v3676_v47, %v2896_v20  ;;  %v2814_v47 = vadd.f32 %v7579_v42, %v2725_v36  ;;  %v5360_v46 = vld [vmem:[%s5573_s18 + $0x8] sm:$0xff] }
 0x412   : > { %3974 = vmatmul.bf16.gmra.mxu2 %v3854_v0  ;;  %v3764_v34 = vmul.f32 %v6932_v56, %v3728_v29 }
 0x413   : > { %v3499_v24 = vpop.f32.mrf.mxu3 }
 0x414   : > { %v3589_v31 = vadd.f32 %v3588_v40, %v3499_v24  ;;  %v3800_v4 = vadd.f32 %v6941_v62, %v3764_v34  ;;  %v3687_v34 = vpop.f32.mrf.mxu1 }
 0x415   : > { %v3935_v57 = vpop.f32.mrf.mxu2 }
 0x416   : > { %v3678_v3 = vadd.f32 %v3677_v16, %v3589_v31  ;;  %v4019_v25 = vmul.f32 %v7138_v10, %v3935_v57  ;;  %v2812_v16 = vadd.f32 %v7576_v43, %v2723_v19  ;;  %v3832_v52 = vmax.f32 %v3800_v4, 0.0  ;;  %v3598_v1 = vpop.f32.mrf.mxu0  ;;  %v5361_v19 = vld [vmem:[%s5573_s18 + $0x10] sm:$0xff]  ;;  %v7584_v43 = vld [vmem:[#allocation29_spill] sm:$0xff] }
 0x418   : > { %v3729_v6 = vadd.f32 %v3678_v3, %v2898_v13  ;;  %v4055_v40 = vadd.f32 %v7143_v60, %v4019_v25  ;;  %v7580_v13 = vld [vmem:[#allocation69_spill] sm:$0xff]  ;;  %v7581_v3 = vld [vmem:[#allocation26_spill] sm:$0xff] }
 0x419   : > { %v2728_v25 = vadd.f32 %v7581_v3, %v7580_v13 }
 0x41a   : > { %v3765_v28 = vmul.f32 %v6932_v56, %v3729_v6  ;;  %v4087_v39 = vadd.f32 %v5359_v8, %v4055_v40  ;;  %v7582_v8 = vld [vmem:[#allocation57_spill] sm:$0xff] }
 0x41b   : > { %v3502_v38 = vpop.f32.mrf.mxu3 }
 0x41c   : > { %v4119_v17 = vmax.f32 %v4087_v39, 0.0  ;;  %v3592_v9 = vadd.f32 %v3591_v21, %v3502_v38  ;;  %v3801_v12 = vadd.f32 %v6941_v62, %v3765_v28  ;;  %v2901_v21 = vadd.f32 %v6985_v58, %v2812_v16  ;;  %v7583_v38 = vld [vmem:[#allocation71_spill] sm:$0xff] }
 0x41d   : > { %v3937_v27 = vpop.f32.mrf.mxu2  ;;  %v2903_v58 = vadd.f32 %v6999_v5, %v2814_v47  ;;  %v2817_v5 = vadd.f32 %v7582_v8, %v2728_v25  ;;  %v2730_v16 = vadd.f32 %v7584_v43, %v7583_v38 }
 0x41e   : > { %4151 = vst.msk [vmem:[%s7161_s11] sm:$0xff] %vm426_vm0, %v4119_v17  ;;  %v3681_v59 = vadd.f32 %v3680_v18, %v3592_v9  ;;  %v4020_v33 = vmul.f32 %v7138_v10, %v3937_v27  ;;  %v3833_v35 = vmax.f32 %v3801_v12, 0.0  ;;  %v3601_v36 = vpop.f32.mrf.mxu0 }
 0x41f   : > { %v2906_v27 = vadd.f32 %v7015_v41, %v2817_v5 }
 0x420   : > { %v4056_v53 = vadd.f32 %v7143_v60, %v4020_v33  ;;  %v3855_v37 = vpack.c.bf16 %v3833_v35, %v3832_v52  ;;  %v3730_v7 = vadd.f32 %v3681_v59, %v2901_v21  ;;  %v3690_v33 = vpop.f32.mrf.mxu1  ;;  %v7585_v52 = vld [vmem:[#allocation58_spill] sm:$0xff] }
 0x421   : > { %v2819_v35 = vadd.f32 %v7585_v52, %v2730_v16 }
 0x422   : > { %v4088_v20 = vadd.f32 %v5360_v46, %v4056_v53  ;;  %3979 = vmatmul.bf16.gmra.mxu2 %v3855_v37  ;;  %v3766_v24 = vmul.f32 %v6932_v56, %v3730_v7  ;;  %v5362_v53 = vld [vmem:[%s5573_s18 + $0x18] sm:$0xff] }
 0x423   : > { %v3504_v0 = vpop.f32.mrf.mxu3  ;;  %v2908_v41 = vadd.f32 %v7032_v61, %v2819_v35  ;;  %v7588_v61 = vld [vmem:[#allocation59_spill] sm:$0xff] }
 0x424   : > { %v4120_v50 = vmax.f32 %v4088_v20, 0.0  ;;  %v3594_v18 = vadd.f32 %v3593_v30, %v3504_v0  ;;  %v3802_v40 = vadd.f32 %v6941_v62, %v3766_v24 }
 0x425   : > { %v3940_v29 = vpop.f32.mrf.mxu2 }
 0x426   : > { %4152 = vst.msk [vmem:[%s7161_s11 + $0x8] sm:$0xff] %vm426_vm0, %v4120_v50  ;;  %v3683_v31 = vadd.f32 %v3682_v2, %v3594_v18  ;;  %v4021_v57 = vmul.f32 %v7138_v10, %v3940_v29  ;;  %v3834_v54 = vmax.f32 %v3802_v40, 0.0  ;;  %v7586_v50 = vld [vmem:[#allocation73_spill] sm:$0xff]  ;;  %v7587_v18 = vld [vmem:[#allocation32_spill] sm:$0xff]  ;;  %v7590_v40 = vld [vmem:[#allocation35_spill] sm:$0xff] }
 0x427   : > { %v2733_v29 = vadd.f32 %v7587_v18, %v7586_v50  ;;  %v7594_v18 = vld [vmem:[#allocation61_spill] sm:$0xff] }
 0x428   : > { %v3731_v49 = vadd.f32 %v3683_v31, %v2903_v58  ;;  %v4057_v48 = vadd.f32 %v7143_v60, %v4021_v57  ;;  %v3603_v31 = vpop.f32.mrf.mxu0  ;;  %v5363_v57 = vld [vmem:[%s5573_s18 + $0x20] sm:$0xff]  ;;  %v3692_v25 = vpop.f32.mrf.mxu1 }
 0x42a   : > { %v3767_v30 = vmul.f32 %v6932_v56, %v3731_v49  ;;  %v4089_v6 = vadd.f32 %v5361_v19, %v4057_v48 }
 0x42b   : > { %v3507_v28 = vpop.f32.mrf.mxu3 }
 0x42c   : > { %v4121_v2 = vmax.f32 %v4089_v6, 0.0  ;;  %v3597_v39 = vadd.f32 %v3596_v45, %v3507_v28  ;;  %v3803_v4 = vadd.f32 %v6941_v62, %v3767_v30  ;;  %v7589_v6 = vld [vmem:[#allocation74_spill] sm:$0xff] }
 0x42d   : > { %v3942_v17 = vpop.f32.mrf.mxu2  ;;  %v2735_v28 = vadd.f32 %v7590_v40, %v7589_v6  ;;  %v7597_v40 = vld [vmem:[#allocation63_spill] sm:$0xff] }
 0x42e   : > { %4153 = vst.msk [vmem:[%s7161_s11 + $0x10] sm:$0xff] %vm426_vm0, %v4121_v2  ;;  %v3686_v9 = vadd.f32 %v3685_v55, %v3597_v39  ;;  %v4022_v12 = vmul.f32 %v7138_v10, %v3942_v17  ;;  %v3835_v32 = vmax.f32 %v3803_v4, 0.0  ;;  %v7591_v17 = vld [vmem:[#allocation60_spill] sm:$0xff] }
 0x430   : > { %v4058_v45 = vadd.f32 %v7143_v60, %v4022_v12  ;;  %v3856_v59 = vpack.c.bf16 %v3835_v32, %v3834_v54  ;;  %v3732_v21 = vadd.f32 %v3686_v9, %v2906_v27  ;;  %v2824_v9 = vadd.f32 %v7591_v17, %v2735_v28  ;;  %v5364_v54 = vld [vmem:[%s5573_s18 + $0x28] sm:$0xff] }
 0x432   : > { %v4090_v37 = vadd.f32 %v5362_v53, %v4058_v45  ;;  %3984 = vmatmul.bf16.gmra.mxu2 %v3856_v59  ;;  %v3768_v46 = vmul.f32 %v6932_v56, %v3732_v21 }
 0x433   : > { %v3509_v55 = vpop.f32.mrf.mxu3 }
 0x434   : > { %v4122_v42 = vmax.f32 %v4090_v37, 0.0  ;;  %v3599_v47 = vadd.f32 %v3598_v1, %v3509_v55  ;;  %v3804_v3 = vadd.f32 %v6941_v62, %v3768_v46  ;;  %v7592_v37 = vld [vmem:[#allocation75_spill] sm:$0xff]  ;;  %v7593_v55 = vld [vmem:[#allocation37_spill] sm:$0xff] }
 0x435   : > { %v3945_v7 = vpop.f32.mrf.mxu2 }
 0x436   : > { %4154 = vst.msk [vmem:[%s7161_s11 + $0x18] sm:$0xff] %vm426_vm0, %v4122_v42  ;;  %v3688_v20 = vadd.f32 %v3687_v34, %v3599_v47  ;;  %v4023_v0 = vmul.f32 %v7138_v10, %v3945_v7  ;;  %v2822_v34 = vadd.f32 %v7588_v61, %v2733_v29  ;;  %v3836_v39 = vmax.f32 %v3804_v3, 0.0 }
 0x437   : > { %v2738_v42 = vadd.f32 %v7593_v55, %v7592_v37 }
 0x438   : > { %v3733_v24 = vadd.f32 %v3688_v20, %v2908_v41  ;;  %v4059_v58 = vadd.f32 %v7143_v60, %v4023_v0  ;;  %v2911_v38 = vadd.f32 %v7047_v14, %v2822_v34  ;;  %v2913_v14 = vadd.f32 %v7064_v63, %v2824_v9  ;;  %v5365_v41 = vld [vmem:[%s5573_s18 + $0x30] sm:$0xff] }
 0x439   : > { %v2827_v29 = vadd.f32 %v7594_v18, %v2738_v42 }
 0x43a   : > { %v3769_v1 = vmul.f32 %v6932_v56, %v3733_v24  ;;  %v4091_v13 = vadd.f32 %v5363_v57, %v4059_v58  ;;  %v7596_v57 = vld [vmem:[#allocation40_spill] sm:$0xff] }
 0x43b   : > { %v3512_v49 = vpop.f32.mrf.mxu3 }
 0x43c   : > { %v4123_v48 = vmax.f32 %v4091_v13, 0.0  ;;  %v3602_v30 = vadd.f32 %v3601_v36, %v3512_v49  ;;  %v3805_v19 = vadd.f32 %v6941_v62, %v3769_v1  ;;  %v3606_v36 = vpop.f32.mrf.mxu0  ;;  %v7595_v1 = vld [vmem:[#allocation76_spill] sm:$0xff] }
 0x43d   : > { %v3947_v8 = vpop.f32.mrf.mxu2  ;;  %v2740_v13 = vadd.f32 %v7596_v57, %v7595_v1 }
 0x43e   : > { %4155 = vst.msk [vmem:[%s7161_s11 + $0x20] sm:$0xff] %vm426_vm0, %v4123_v48  ;;  %v3691_v5 = vadd.f32 %v3690_v33, %v3602_v30  ;;  %v4024_v2 = vmul.f32 %v7138_v10, %v3947_v8  ;;  %v3837_v4 = vmax.f32 %v3805_v19, 0.0  ;;  %v3695_v33 = vpop.f32.mrf.mxu1  ;;  %v2916_v30 = vadd.f32 %v7075_v26, %v2827_v29 }
 0x43f   : > { %v2829_v28 = vadd.f32 %v7597_v40, %v2740_v13  ;;  %v5368_v13 = vld [vmem:[%s5573_s18 + $0x48] sm:$0xff]  ;;  %v7604_v40 = vld [vmem:[#allocation79_spill] sm:$0xff] }
 0x440   : > { %v4060_v43 = vadd.f32 %v7143_v60, %v4024_v2  ;;  %v3857_v16 = vpack.c.bf16 %v3837_v4, %v3836_v39  ;;  %v3734_v12 = vadd.f32 %v3691_v5, %v2911_v38  ;;  %v5366_v5 = vld [vmem:[%s5573_s18 + $0x38] sm:$0xff] }
 0x441   : > { %v2918_v26 = vadd.f32 %v7086_v23, %v2829_v28  ;;  %v7600_v23 = vld [vmem:[#allocation65_spill] sm:$0xff]  ;;  %v7605_v28 = vld [vmem:[#allocation46_spill] sm:$0xff] }
 0x442   : > { %v4092_v32 = vadd.f32 %v5364_v54, %v4060_v43  ;;  %3989 = vmatmul.bf16.gmra.mxu2 %v3857_v16  ;;  %v3770_v35 = vmul.f32 %v6932_v56, %v3734_v12  ;;  %v7598_v54 = vld [vmem:[#allocation77_spill] sm:$0xff] }
 0x443   : > { %v3514_v27 = vpop.f32.mrf.mxu3 }
 0x444   : > { %v4124_v45 = vmax.f32 %v4092_v32, 0.0  ;;  %v3604_v59 = vadd.f32 %v3603_v31, %v3514_v27  ;;  %v3806_v0 = vadd.f32 %v6941_v62, %v3770_v35  ;;  %v3608_v31 = vpop.f32.mrf.mxu0  ;;  %v7599_v32 = vld [vmem:[#allocation41_spill] sm:$0xff] }
 0x445   : > { %v3950_v52 = vpop.f32.mrf.mxu2 }
 0x446   : > { %4156 = vst.msk [vmem:[%s7161_s11 + $0x28] sm:$0xff] %vm426_vm0, %v4124_v45  ;;  %v3693_v21 = vadd.f32 %v3692_v25, %v3604_v59  ;;  %v4025_v53 = vmul.f32 %v7138_v10, %v3950_v52  ;;  %v3838_v61 = vmax.f32 %v3806_v0, 0.0  ;;  %v3697_v48 = vpop.f32.mrf.mxu1  ;;  %v5367_v52 = vld [vmem:[%s5573_s18 + $0x40] sm:$0xff] }
 0x448   : > { %v3735_v47 = vadd.f32 %v3693_v21, %v2913_v14  ;;  %v4061_v7 = vadd.f32 %v7143_v60, %v4025_v53 }
 0x44a   : > { %v3771_v46 = vmul.f32 %v6932_v56, %v3735_v47  ;;  %v4093_v20 = vadd.f32 %v5365_v41, %v4061_v7  ;;  %v7601_v47 = vld [vmem:[#allocation78_spill] sm:$0xff]  ;;  %v7602_v7 = vld [vmem:[#allocation44_spill] sm:$0xff] }
 0x44b   : > { %v3517_v50 = vpop.f32.mrf.mxu3 }
 0x44c   : > { %v4125_v63 = vmax.f32 %v4093_v20, 0.0  ;;  %v3607_v24 = vadd.f32 %v3606_v36, %v3517_v50  ;;  %v3807_v58 = vadd.f32 %v6941_v62, %v3771_v46  ;;  %v3611_v12 = vpop.f32.mrf.mxu0  ;;  %v2743_v36 = vadd.f32 %v7599_v32, %v7598_v54 }
 0x44d   : > { %v3952_v3 = vpop.f32.mrf.mxu2  ;;  %v2745_v46 = vadd.f32 %v7602_v7, %v7601_v47 }
 0x44e   : > { %4157 = vst.msk [vmem:[%s7161_s11 + $0x30] sm:$0xff] %vm426_vm0, %v4125_v63  ;;  %v3696_v25 = vadd.f32 %v3695_v33, %v3607_v24  ;;  %v4026_v49 = vmul.f32 %v7138_v10, %v3952_v3  ;;  %v3839_v34 = vmax.f32 %v3807_v58, 0.0  ;;  %v3700_v59 = vpop.f32.mrf.mxu1  ;;  %v2832_v53 = vadd.f32 %v7600_v23, %v2743_v36  ;;  %v7607_v36 = vld [vmem:[#allocation48_spill] sm:$0xff] }
 0x450   : > { %v4062_v19 = vadd.f32 %v7143_v60, %v4026_v49  ;;  %v3858_v6 = vpack.c.bf16 %v3839_v34, %v3838_v61  ;;  %v3736_v8 = vadd.f32 %v3696_v25, %v2916_v30  ;;  %v2921_v29 = vadd.f32 %v7101_v15, %v2832_v53  ;;  %v7608_v53 = vld [vmem:[#allocation72_spill] sm:$0xff] }
 0x452   : > { %v4094_v2 = vadd.f32 %v5366_v5, %v4062_v19  ;;  %3994 = vmatmul.bf16.gmra.mxu2 %v3858_v6  ;;  %v3772_v16 = vmul.f32 %v6932_v56, %v3736_v8  ;;  %v2748_v8 = vadd.f32 %v7605_v28, %v7604_v40 }
 0x453   : > { %v3519_v39 = vpop.f32.mrf.mxu3 }
 0x454   : > { %v4126_v4 = vmax.f32 %v4094_v2, 0.0  ;;  %v3609_v38 = vadd.f32 %v3608_v31, %v3519_v39  ;;  %v3808_v14 = vadd.f32 %v6941_v62, %v3772_v16  ;;  %v3613_v58 = vpop.f32.mrf.mxu0  ;;  %v7603_v31 = vld [vmem:[#allocation67_spill] sm:$0xff] }
 0x455   : > { %v3955_v43 = vpop.f32.mrf.mxu2  ;;  %v2834_v1 = vadd.f32 %v7603_v31, %v2745_v46  ;;  %v5372_v31 = vld [vmem:[%s5573_s18 + $0x60] sm:$0xff] }
 0x456   : > { %4158 = vst.msk [vmem:[%s7161_s11 + $0x38] sm:$0xff] %vm426_vm0, %v4126_v4  ;;  %v3698_v17 = vadd.f32 %v3697_v48, %v3609_v38  ;;  %v4027_v9 = vmul.f32 %v7138_v10, %v3955_v43  ;;  %v3840_v50 = vmax.f32 %v3808_v14, 0.0  ;;  %v3702_v25 = vpop.f32.mrf.mxu1  ;;  %v5369_v38 = vld [vmem:[%s5573_s18 + $0x50] sm:$0xff] }
 0x457   : > { %v2923_v15 = vadd.f32 %v7109_v11, %v2834_v1  ;;  %v7606_v11 = vld [vmem:[#allocation70_spill] sm:$0xff] }
 0x458   : > { %v3737_v27 = vadd.f32 %v3698_v17, %v2918_v26  ;;  %v4063_v45 = vadd.f32 %v7143_v60, %v4027_v9  ;;  %v2837_v9 = vadd.f32 %v7606_v11, %v2748_v8  ;;  %v5375_v8 = vld [vmem:[%s5573_s18 + $0x70] sm:$0xff] }
 0x45a   : > { %v3773_v33 = vmul.f32 %v6932_v56, %v3737_v27  ;;  %v4095_v35 = vadd.f32 %v5367_v52, %v4063_v45  ;;  %v2750_v27 = vadd.f32 %v7607_v36, %v6910_v22  ;;  %v2926_v14 = vadd.f32 %v7119_v44, %v2837_v9 }
 0x45b   : > { %v3522_v21 = vpop.f32.mrf.mxu3 }
 0x45c   : > { %v4127_v37 = vmax.f32 %v4095_v35, 0.0  ;;  %v3612_v55 = vadd.f32 %v3611_v12, %v3522_v21  ;;  %v3809_v42 = vadd.f32 %v6941_v62, %v3773_v33  ;;  %v3616_v39 = vpop.f32.mrf.mxu0 }
 0x45d   : > { %v3957_v41 = vpop.f32.mrf.mxu2 }
 0x45e   : > { %4159 = vst.msk [vmem:[%s7161_s11 + $0x40] sm:$0xff] %vm426_vm0, %v4127_v37  ;;  %v3701_v20 = vadd.f32 %v3700_v59, %v3612_v55  ;;  %v4028_v0 = vmul.f32 %v7138_v10, %v3957_v41  ;;  %v3841_v18 = vmax.f32 %v3809_v42, 0.0  ;;  %v3705_v26 = vpop.f32.mrf.mxu1  ;;  %v2839_v37 = vadd.f32 %v7608_v53, %v2750_v27  ;;  %v5370_v55 = vld [vmem:[%s5573_s18 + $0x58] sm:$0xff] }
 0x460   : > { %v4064_v63 = vadd.f32 %v7143_v60, %v4028_v0  ;;  %v3859_v24 = vpack.c.bf16 %v3841_v18, %v3840_v50  ;;  %v3738_v57 = vadd.f32 %v3701_v20, %v2921_v29  ;;  %v2928_v44 = vadd.f32 %v7129_v51, %v2839_v37 }
 0x462   : > { %v4096_v3 = vadd.f32 %v5368_v13, %v4064_v63  ;;  %3999 = vmatmul.bf16.gmra.mxu2 %v3859_v24  ;;  %v3774_v30 = vmul.f32 %v6932_v56, %v3738_v57  ;;  %v5371_v24 = vld [vmem:[%s7429_s5] ss:$0 sm:$0xff] }
 0x463   : > { %v3524_v49 = vpop.f32.mrf.mxu3 }
 0x464   : > { %v4128_v61 = vmax.f32 %v4096_v3, 0.0  ;;  %v3614_v34 = vadd.f32 %v3613_v58, %v3524_v49  ;;  %v3810_v16 = vadd.f32 %v6941_v62, %v3774_v30  ;;  %v3618_v22 = vpop.f32.mrf.mxu0  ;;  %v5374_v30 = vld [vmem:[%s5573_s18 + $0x68] sm:$0xff] }
 0x465   : > { %v3960_v48 = vpop.f32.mrf.mxu2 }
 0x466   : > { %4160 = vst.msk [vmem:[%s7161_s11 + $0x48] sm:$0xff] %vm426_vm0, %v4128_v61  ;;  %v3703_v19 = vadd.f32 %v3702_v25, %v3614_v34  ;;  %v4029_v6 = vmul.f32 %v7138_v10, %v3960_v48  ;;  %v3842_v52 = vmax.f32 %v3810_v16, 0.0  ;;  %v3707_v41 = vpop.f32.mrf.mxu1 }
 0x468   : > { %v3739_v5 = vadd.f32 %v3703_v19, %v2923_v15  ;;  %v4065_v2 = vadd.f32 %v7143_v60, %v4029_v6 }
 0x46a   : > { %v3775_v4 = vmul.f32 %v6932_v56, %v3739_v5  ;;  %v4097_v43 = vadd.f32 %v5369_v38, %v4065_v2 }
 0x46b   : > { %v3527_v17 = vpop.f32.mrf.mxu3 }
 0x46c   : > { %v4129_v12 = vmax.f32 %v4097_v43, 0.0  ;;  %v3617_v54 = vadd.f32 %v3616_v39, %v3527_v17  ;;  %v3811_v32 = vadd.f32 %v6941_v62, %v3775_v4  ;;  %v5376_v43 = vld [vmem:[%s5573_s18 + $0x78] sm:$0xff] }
 0x46d   : > { %v3962_v45 = vpop.f32.mrf.mxu2 }
 0x46e   : > { %4161 = vst.msk [vmem:[%s7161_s11 + $0x50] sm:$0xff] %vm426_vm0, %v4129_v12  ;;  %v3706_v59 = vadd.f32 %v3705_v26, %v3617_v54  ;;  %v4030_v33 = vmul.f32 %v7138_v10, %v3962_v45  ;;  %v3843_v35 = vmax.f32 %v3811_v32, 0.0  ;;  %v5377_v12 = vld [vmem:[%s5573_s18 + $0x80] sm:$0xff] }
 0x470   : > { %v4066_v21 = vadd.f32 %v7143_v60, %v4030_v33  ;;  %v3860_v23 = vpack.c.bf16 %v3843_v35, %v3842_v52  ;;  %v3740_v62 = vadd.f32 %v3706_v59, %v2926_v14  ;;  %v5378_v59 = vld [vmem:[%s5573_s18 + $0x88] sm:$0xff] }
 0x472   : > { %v4098_v42 = vadd.f32 %v5370_v55, %v4066_v21  ;;  %4004 = vmatmul.bf16.gmra.mxu2 %v3860_v23  ;;  %v3776_v0 = vmul.f32 %v6932_v56, %v3740_v62  ;;  %v5373_v56 = vld [vmem:[%s7430_s6] ss:$0 sm:$0xff]  ;;  %v5379_v23 = vld [vmem:[%s5573_s18 + $0x90] sm:$0xff] }
 0x473   : > { %v3529_v47 = vpop.f32.mrf.mxu3 }
 0x474   : > { %v4130_v7 = vmax.f32 %v4098_v42, 0.0  ;;  %v3619_v46 = vadd.f32 %v3618_v22, %v3529_v47  ;;  %v3812_v51 = vadd.f32 %v5373_v56, %v3776_v0  ;;  %v5380_v22 = vld [vmem:[%s5573_s18 + $0x98] sm:$0xff]  ;;  %v5381_v0 = vld [vmem:[%s5573_s18 + $0xa0] sm:$0xff] }
 0x475   : > { %v3965_v20 = vpop.f32.mrf.mxu2 }
 0x476   : > { %4162 = vst.msk [vmem:[%s7161_s11 + $0x58] sm:$0xff] %vm426_vm0, %v4130_v7  ;;  %v3708_v50 = vadd.f32 %v3707_v41, %v3619_v46  ;;  %v4031_v18 = vmul.f32 %v7138_v10, %v3965_v20  ;;  %v3844_v49 = vmax.f32 %v3812_v51, 0.0 }
 0x478   : > { %v3741_v29 = vadd.f32 %v3708_v50, %v2928_v44  ;;  %v4067_v63 = vadd.f32 %v7143_v60, %v4031_v18 }
 0x47a   : > { %v3777_v58 = vmul.f32 %v5371_v24, %v3741_v29  ;;  %v4099_v1 = vadd.f32 %v5372_v31, %v4067_v63  ;;  %v5382_v24 = vld [vmem:[%s5573_s18 + $0xa8] sm:$0xff] }
 0x47c   : > { %v4131_v57 = vmax.f32 %v4099_v1, 0.0  ;;  %v3813_v13 = vadd.f32 %v5373_v56, %v3777_v58 }
 0x47d   : > { %v3967_v3 = vpop.f32.mrf.mxu2 }
 0x47e   : > { %4163 = vst.msk [vmem:[%s7161_s11 + $0x60] sm:$0xff] %vm426_vm0, %v4131_v57  ;;  %v4032_v25 = vmul.f32 %v7138_v10, %v3967_v3  ;;  %v3845_v61 = vmax.f32 %v3813_v13, 0.0  ;;  %v5383_v57 = vld [vmem:[%s5573_s18 + $0xb0] sm:$0xff] }
 0x480   : > { %v4068_v34 = vadd.f32 %v7143_v60, %v4032_v25  ;;  %v3861_v48 = vpack.c.bf16 %v3845_v61, %v3844_v49 }
 0x482   : > { %v4100_v15 = vadd.f32 %v5374_v30, %v4068_v34  ;;  %4009 = vmatmul.bf16.gmra.mxu2 %v3861_v48  ;;  %v5384_v34 = vld [vmem:[%s5573_s18 + $0xb8] sm:$0xff] }
 0x484   : > { %v4132_v19 = vmax.f32 %v4100_v15, 0.0 }
 0x485   : > { %v3970_v6 = vpop.f32.mrf.mxu2 }
 0x486   : > { %4164 = vst.msk [vmem:[%s7161_s11 + $0x68] sm:$0xff] %vm426_vm0, %v4132_v19  ;;  %v4033_v40 = vmul.f32 %v7138_v10, %v3970_v6 }
 0x488   : > { %v4069_v28 = vadd.f32 %v7143_v60, %v4033_v40  ;;  %v5385_v40 = vld [vmem:[%s5573_s18 + $0xc0] sm:$0xff] }
 0x48a   : > { %v4101_v5 = vadd.f32 %v5375_v8, %v4069_v28 }
 0x48c   : > { %v4133_v2 = vmax.f32 %v4101_v5, 0.0 }
 0x48d   : > { %v3972_v39 = vpop.f32.mrf.mxu2 }
 0x48e   : > { %4165 = vst.msk [vmem:[%s7161_s11 + $0x70] sm:$0xff] %vm426_vm0, %v4133_v2  ;;  %v4034_v4 = vmul.f32 %v7138_v10, %v3972_v39 }
 0x490   : > { %v4070_v38 = vadd.f32 %v7143_v60, %v4034_v4  ;;  %v5386_v4 = vld [vmem:[%s5573_s18 + $0xc8] sm:$0xff] }
 0x492   : > { %v4102_v16 = vadd.f32 %v5376_v43, %v4070_v38 }
 0x494   : > { %v4134_v26 = vmax.f32 %v4102_v16, 0.0 }
 0x495   : > { %v3975_v17 = vpop.f32.mrf.mxu2 }
 0x496   : > { %4166 = vst.msk [vmem:[%s7161_s11 + $0x78] sm:$0xff] %vm426_vm0, %v4134_v26  ;;  %v4035_v11 = vmul.f32 %v7138_v10, %v3975_v17 }
 0x498   : > { %v4071_v9 = vadd.f32 %v7143_v60, %v4035_v11  ;;  %v5387_v11 = vld [vmem:[%s5573_s18 + $0xd0] sm:$0xff] }
 0x49a   : > { %v4103_v54 = vadd.f32 %v5377_v12, %v4071_v9 }
 0x49c   : > { %v4135_v32 = vmax.f32 %v4103_v54, 0.0 }
 0x49d   : > { %v3977_v36 = vpop.f32.mrf.mxu2 }
 0x49e   : > { %4167 = vst.msk [vmem:[%s7161_s11 + $0x80] sm:$0xff] %vm426_vm0, %v4135_v32  ;;  %v4036_v27 = vmul.f32 %v7138_v10, %v3977_v36 }
 0x4a0   : > { %v4072_v45 = vadd.f32 %v7143_v60, %v4036_v27  ;;  %v5388_v27 = vld [vmem:[%s5573_s18 + $0xd8] sm:$0xff] }
 0x4a2   : > { %v4104_v33 = vadd.f32 %v5378_v59, %v4072_v45 }
 0x4a4   : > { %v4136_v52 = vmax.f32 %v4104_v33, 0.0 }
 0x4a5   : > { %v3980_v35 = vpop.f32.mrf.mxu2 }
 0x4a6   : > { %4168 = vst.msk [vmem:[%s7161_s11 + $0x88] sm:$0xff] %vm426_vm0, %v4136_v52  ;;  %v4037_v14 = vmul.f32 %v7138_v10, %v3980_v35 }
 0x4a8   : > { %v4073_v21 = vadd.f32 %v7143_v60, %v4037_v14  ;;  %v5389_v14 = vld [vmem:[%s5573_s18 + $0xe0] sm:$0xff] }
 0x4aa   : > { %v4105_v53 = vadd.f32 %v5379_v23, %v4073_v21 }
 0x4ac   : > { %v4137_v37 = vmax.f32 %v4105_v53, 0.0 }
 0x4ad   : > { %v3982_v62 = vpop.f32.mrf.mxu2 }
 0x4ae   : > { %4169 = vst.msk [vmem:[%s7161_s11 + $0x90] sm:$0xff] %vm426_vm0, %v4137_v37  ;;  %v4038_v55 = vmul.f32 %v7138_v10, %v3982_v62 }
 0x4b0   : > { %v4074_v42 = vadd.f32 %v7143_v60, %v4038_v55  ;;  %v5390_v55 = vld [vmem:[%s5573_s18 + $0xe8] sm:$0xff] }
 0x4b2   : > { %v4106_v47 = vadd.f32 %v5380_v22, %v4074_v42 }
 0x4b4   : > { %v4138_v7 = vmax.f32 %v4106_v47, 0.0 }
 0x4b5   : > { %v3985_v46 = vpop.f32.mrf.mxu2 }
 0x4b6   : > { %4170 = vst.msk [vmem:[%s7161_s11 + $0x98] sm:$0xff] %vm426_vm0, %v4138_v7  ;;  %v4039_v41 = vmul.f32 %v7138_v10, %v3985_v46 }
 0x4b8   : > { %v4075_v20 = vadd.f32 %v7143_v60, %v4039_v41  ;;  %v5391_v41 = vld [vmem:[%s5573_s18 + $0xf0] sm:$0xff] }
 0x4ba   : > { %v4107_v44 = vadd.f32 %v5381_v0, %v4075_v20 }
 0x4bc   : > { %v4139_v50 = vmax.f32 %v4107_v44, 0.0 }
 0x4bd   : > { %v3987_v18 = vpop.f32.mrf.mxu2 }
 0x4be   : > { %4171 = vst.msk [vmem:[%s7161_s11 + $0xa0] sm:$0xff] %vm426_vm0, %v4139_v50  ;;  %v4040_v29 = vmul.f32 %v7138_v10, %v3987_v18 }
 0x4c0   : > { %v4076_v63 = vadd.f32 %v7143_v60, %v4040_v29  ;;  %v5392_v29 = vld [vmem:[%s5573_s18 + $0xf8] sm:$0xff] }
 0x4c2   : > { %v4108_v58 = vadd.f32 %v5382_v24, %v4076_v63 }
 0x4c4   : > { %v4140_v31 = vmax.f32 %v4108_v58, 0.0 }
 0x4c5   : > { %v3990_v1 = vpop.f32.mrf.mxu2 }
 0x4c6   : > { %4172 = vst.msk [vmem:[%s7161_s11 + $0xa8] sm:$0xff] %vm426_vm0, %v4140_v31  ;;  %v4041_v56 = vmul.f32 %v7138_v10, %v3990_v1 }
 0x4c8   : > { %v4077_v51 = vadd.f32 %v7143_v60, %v4041_v56 }
 0x4ca   : > { %v4109_v13 = vadd.f32 %v5383_v57, %v4077_v51 }
 0x4cc   : > { %v4141_v3 = vmax.f32 %v4109_v13, 0.0 }
 0x4cd   : > { %v3992_v25 = vpop.f32.mrf.mxu2 }
 0x4ce   : > { %4173 = vst.msk [vmem:[%s7161_s11 + $0xb0] sm:$0xff] %vm426_vm0, %v4141_v3  ;;  %v4042_v49 = vmul.f32 %v7138_v10, %v3992_v25 }
 0x4d0   : > { %v4078_v61 = vadd.f32 %v7143_v60, %v4042_v49 }
 0x4d2   : > { %v4110_v48 = vadd.f32 %v5384_v34, %v4078_v61 }
 0x4d4   : > { %v4142_v30 = vmax.f32 %v4110_v48, 0.0 }
 0x4d5   : > { %v3995_v15 = vpop.f32.mrf.mxu2 }
 0x4d6   : > { %4174 = vst.msk [vmem:[%s7161_s11 + $0xb8] sm:$0xff] %vm426_vm0, %v4142_v30  ;;  %v4043_v19 = vmul.f32 %v7138_v10, %v3995_v15 }
 0x4d8   : > { %v4079_v6 = vadd.f32 %v7143_v60, %v4043_v19 }
 0x4da   : > { %v4111_v28 = vadd.f32 %v5385_v40, %v4079_v6 }
 0x4dc   : > { %v4143_v8 = vmax.f32 %v4111_v28, 0.0 }
 0x4dd   : > { %v3997_v5 = vpop.f32.mrf.mxu2 }
 0x4de   : > { %4175 = vst.msk [vmem:[%s7161_s11 + $0xc0] sm:$0xff] %vm426_vm0, %v4143_v8  ;;  %v4044_v2 = vmul.f32 %v7138_v10, %v3997_v5 }
 0x4e0   : > { %v4080_v39 = vadd.f32 %v7143_v60, %v4044_v2 }
 0x4e2   : > { %v4112_v38 = vadd.f32 %v5386_v4, %v4080_v39 }
 0x4e4   : > { %v4144_v43 = vmax.f32 %v4112_v38, 0.0 }
 0x4e5   : > { %v4000_v16 = vpop.f32.mrf.mxu2 }
 0x4e6   : > { %4176 = vst.msk [vmem:[%s7161_s11 + $0xc8] sm:$0xff] %vm426_vm0, %v4144_v43  ;;  %v4045_v26 = vmul.f32 %v7138_v10, %v4000_v16 }
 0x4e8   : > { %v4081_v17 = vadd.f32 %v7143_v60, %v4045_v26 }
 0x4ea   : > { %v4113_v9 = vadd.f32 %v5387_v11, %v4081_v17 }
 0x4ec   : > { %v4145_v12 = vmax.f32 %v4113_v9, 0.0 }
 0x4ed   : > { %v4002_v54 = vpop.f32.mrf.mxu2 }
 0x4ee   : > { %4177 = vst.msk [vmem:[%s7161_s11 + $0xd0] sm:$0xff] %vm426_vm0, %v4145_v12  ;;  %v4046_v32 = vmul.f32 %v7138_v10, %v4002_v54 }
 0x4f0   : > { %v4082_v36 = vadd.f32 %v7143_v60, %v4046_v32 }
 0x4f2   : > { %v4114_v45 = vadd.f32 %v5388_v27, %v4082_v36 }
 0x4f4   : > { %v4146_v59 = vmax.f32 %v4114_v45, 0.0 }
 0x4f5   : > { %v4005_v33 = vpop.f32.mrf.mxu2 }
 0x4f6   : > { %4178 = vst.msk [vmem:[%s7161_s11 + $0xd8] sm:$0xff] %vm426_vm0, %v4146_v59  ;;  %v4047_v52 = vmul.f32 %v7138_v10, %v4005_v33 }
 0x4f8   : > { %v4083_v35 = vadd.f32 %v7143_v60, %v4047_v52 }
 0x4fa   : > { %v4115_v21 = vadd.f32 %v5389_v14, %v4083_v35 }
 0x4fc   : > { %v4147_v23 = vmax.f32 %v4115_v21, 0.0 }
 0x4fd   : > { %v4007_v53 = vpop.f32.mrf.mxu2 }
 0x4fe   : > { %4179 = vst.msk [vmem:[%s7161_s11 + $0xe0] sm:$0xff] %vm426_vm0, %v4147_v23  ;;  %v4048_v37 = vmul.f32 %v7138_v10, %v4007_v53 }
 0x500   : > { %v4084_v62 = vadd.f32 %v7143_v60, %v4048_v37 }
 0x502   : > { %v4116_v42 = vadd.f32 %v5390_v55, %v4084_v62 }
 0x504   : > { %v4148_v22 = vmax.f32 %v4116_v42, 0.0 }
 0x505   : > { %v4010_v47 = vpop.f32.mrf.mxu2 }
 0x506   : > { %4180 = vst.msk [vmem:[%s7161_s11 + $0xe8] sm:$0xff] %vm426_vm0, %v4148_v22  ;;  %v4049_v7 = vmul.f32 %v7138_v10, %v4010_v47 }
 0x508   : > { %v4085_v46 = vadd.f32 %v7143_v60, %v4049_v7 }
 0x50a   : > { %v4117_v20 = vadd.f32 %v5391_v41, %v4085_v46 }
 0x50c   : > { %v4149_v0 = vmax.f32 %v4117_v20, 0.0 }
 0x50d   : > { %v4012_v44 = vpop.f32.mrf.mxu2 }
 0x50e   : > { %4181 = vst.msk [vmem:[%s7161_s11 + $0xf0] sm:$0xff] %vm426_vm0, %v4149_v0  ;;  %v4050_v50 = vmul.f32 %v7138_v10, %v4012_v44 }
 0x510   : > { %v4086_v18 = vadd.f32 %v7143_v60, %v4050_v50 }
 0x512   : > { %v4118_v63 = vadd.f32 %v5392_v29, %v4086_v18 }
 0x514   : > { %v4150_v24 = vmax.f32 %v4118_v63, 0.0 }
 0x516   : > { %4182 = vst.msk [vmem:[%s7161_s11 + $0xf8] sm:$0xff] %vm426_vm0, %v4150_v24 }
 0x517   : > { %5420 = shalt.err (!%p5417_p3)
}
 0x518   : > { %s5458_s29 = smov 128   ;;  %s5459_s11 = smov 8  }
 0x519   : > { %5309 = dma.vmem_to_hbm [thread:$0]  (%p5553_p5), %s4197_s12, 4096, %s4199_s20, %s4184_s17, %s5458_s29, %s5458_s29, %s5459_s11  }
 0x51a PF: > { %p5315_p4 = scmp.ge.s32.totalorder %s5455_s16, 2  ;;  %s4213_s26 = sand.u32 1, %s5443_s13  }
 0x51b   : > { %s4214_s27 = scalar_lea.sflag [#allocation4], %s4213_s26 }
 0x51c   : > { %p5312_p7 = pnand %p5315_p4, %p5557_p6 }
 0x51e   : > { %p5313_p8 = pneg %p5312_p7 }
 0x520   : > { %5438 = dma.done.wait (%p5313_p8), %s4214_s27, 4096  }
 0x521   : > { %5440 = vsyncadd (%p5313_p8), %s4214_s27, 4294963200  ;;  %p20_p9 = scmp.ge.s32.totalorder %s5540_s19, 4   ;;  %s7609_s13 = smov %s5447_s14 }
 0x522   : > { %s7610_s14 = smov %s5451_s15  ;;  %s7611_s15 = smov %s5551_s22 }
 0x523   : > { %s7612_s16 = smov %s5540_s19  ;;  %22 = sbr.rel (!%p20_p9) target bundleno = 3 (0x3), region = 97 }
 0x528   :  { %4220 = vsyncpa [#allocation4], 1 }
 0x529   :  { %4222 = vsyncpa [#allocation4 + $0x1], 1 }

</bundles_post_ra>
